<compile_context>
chip_gen: v6e
topology: v6e:2x2x1
jax: 0.10.0
libtpu: 0.0.40
codegen_flags: <defaults>
</compile_context>

<pallas_src>
import jax
import jax.numpy as jnp
from jax.experimental import pallas as pl
from jax.experimental.pallas import tpu as pltpu


_PAD_W = 8  # sublane-aligned low-side halo width for the padded-phase scratch


def _leaky01(v):
    # F.leaky_relu default negative_slope = 0.01
    return jnp.where(v > 0, v, 0.01 * v)


def _phase_of(parity, tap):
    # For an interleaved index r = 2*i + parity and a 3x3 tap offset (tap - 1),
    # the source interleaved index is 2*i + u with u = parity + tap - 1.
    # It lives in phase (u mod 2) at row/col (i + u//2), u//2 in {-1, 0, +1}.
    u = parity + tap - 1
    return u % 2, u // 2


def _convup_kernel(x_ref, yph_ref, ctw_ref, ctb_ref, dww_ref, pww_ref, pwb_ref,
                   o_ref, apad_ref):
    # x_ref   : (B, H, W, Cin)              input feature map (channels-last)
    # yph_ref : (4, B, H, W, Cout)          residual y, split into 4 output phases
    # ctw_ref : (4, Cin, Cout)              ConvTranspose2d weights, k = 2*dy + dx
    # ctb_ref : (1, Cout)                   ConvTranspose2d bias
    # dww_ref : (3, 3, 1, Cout)             depthwise 3x3 weights (no bias)
    # pww_ref : (Cout, Cout)                pointwise 1x1 weights
    # pwb_ref : (1, Cout)                   pointwise bias
    # o_ref   : (4, B, H, W, Cout)          output, phase-major
    # apad_ref: (4, B, H+2, PAD_W+W+1, Cout) zero-padded per-phase activations (VMEM)
    B, H, W, Cin = x_ref.shape
    Cout = o_ref.shape[-1]
    BHW = B * H * W

    x2d = x_ref[...].reshape(BHW, Cin)        # layout-trivial: W is a multiple of 8
    ctb = ctb_ref[...]                        # (1, Cout), broadcast once
    pwb = pwb_ref[...]
    dww = dww_ref[...]                        # (3, 3, 1, Cout)
    pww = pww_ref[...]                        # (Cout, Cout)

    # Zero the halo ring once (interior is fully overwritten below).
    apad_ref[...] = jnp.zeros_like(apad_ref)

    # ---- Stage 1: ConvTranspose2d(2, 2) + bias + leaky_relu + residual y --------
    # One MXU matmul per output phase; result written into the padded-phase scratch.
    for dy in range(2):
        for dx in range(2):
            k = 2 * dy + dx
            acc = jnp.dot(x2d, ctw_ref[k],
                          preferred_element_type=jnp.float32) + ctb
            act = _leaky01(acc).reshape(B, H, W, Cout) + yph_ref[k]
            # sublane-aligned interior write: W-offset = _PAD_W = 8
            apad_ref[k, :, 1:1 + H, _PAD_W:_PAD_W + W, :] = act

    # ---- Stage 2: depthwise 3x3 (pad 1, no bias) + pointwise 1x1 + leaky_relu ---
    # Depthwise is evaluated in phase space: each output phase is a sum of 9 VPU
    # taps, every tap a contiguous slice of one (zero-padded) source phase.
    for dy in range(2):
        for dx in range(2):
            acc = None
            for ky in range(3):
                py, sy = _phase_of(dy, ky)
                for kx in range(3):
                    px, sx = _phase_of(dx, kx)
                    tap = apad_ref[2 * py + px, :,
                                   1 + sy:1 + sy + H,
                                   _PAD_W + sx:_PAD_W + sx + W, :]
                    term = tap * dww[ky, kx]               # (B,H,W,C) * (1,C)
                    acc = term if acc is None else acc + term
            z = jnp.dot(acc.reshape(BHW, Cout), pww,
                        preferred_element_type=jnp.float32) + pwb
            o_ref[2 * dy + dx] = _leaky01(z).reshape(B, H, W, Cout).astype(o_ref.dtype)


def conv_up_forward(params, x_nchw, y_nchw):
    """ConvUp.forward(x, y) with NCHW in / NCHW out (like the PyTorch module)."""
    B, Cin, H, W = x_nchw.shape
    Cout = Cin // 2
    assert y_nchw.shape == (B, Cout, 2 * H, 2 * W)

    # NCHW -> NHWC (channels on the lane dim).
    x = jnp.transpose(x_nchw, (0, 2, 3, 1))
    # y: NCHW -> phase-split channels-last: yph[2*a+b, n, i, j, c] = y[n, c, 2i+a, 2j+b]
    yph = jnp.transpose(y_nchw.reshape(B, Cout, H, 2, W, 2),
                        (3, 5, 0, 2, 4, 1)).reshape(4, B, H, W, Cout)

    ct_b2 = params["ct_b"].reshape(1, Cout)
    pw_b2 = params["pw_b"].reshape(1, Cout)

    out_ph = pl.pallas_call(
        _convup_kernel,
        grid=(1,),
        in_specs=[
            pl.BlockSpec((B, H, W, Cin), lambda i: (0, 0, 0, 0)),
            pl.BlockSpec((4, B, H, W, Cout), lambda i: (0, 0, 0, 0, 0)),
            pl.BlockSpec((4, Cin, Cout), lambda i: (0, 0, 0)),
            pl.BlockSpec((1, Cout), lambda i: (0, 0)),
            pl.BlockSpec((3, 3, 1, Cout), lambda i: (0, 0, 0, 0)),
            pl.BlockSpec((Cout, Cout), lambda i: (0, 0)),
            pl.BlockSpec((1, Cout), lambda i: (0, 0)),
        ],
        out_specs=pl.BlockSpec((4, B, H, W, Cout), lambda i: (0, 0, 0, 0, 0)),
        out_shape=jax.ShapeDtypeStruct((4, B, H, W, Cout), jnp.float32),
        scratch_shapes=[
            pltpu.VMEM((4, B, H + 2, _PAD_W + W + 1, Cout), jnp.float32),
        ],
        compiler_params=pltpu.CompilerParams(dimension_semantics=("arbitrary",)),
    )(x, yph, params["ct_w"], ct_b2, params["dw_w"], params["pw_w"], pw_b2)

    # De-phase + NHWC->NCHW in ONE XLA transpose (needed for NCHW output anyway):
    # out[n, c, 2i+a, 2j+b] = out_ph[2a+b, n, i, j, c]
    out6 = out_ph.reshape(2, 2, B, H, W, Cout)
    out = jnp.transpose(out6, (2, 5, 3, 0, 4, 1)).reshape(B, Cout, 2 * H, 2 * W)
    return out


# ---------------------------------------------------------------------------
# pure-JAX reference (interleaved-domain math) for a correctness check
# ---------------------------------------------------------------------------
def conv_up_reference(params, x_nchw, y_nchw):
    B, Cin, H, W = x_nchw.shape
    Cout = Cin // 2
    hp = jax.lax.Precision.HIGHEST
    x = jnp.transpose(x_nchw, (0, 2, 3, 1))
    y = jnp.transpose(y_nchw, (0, 2, 3, 1))
    ctw = params["ct_w"].reshape(2, 2, Cin, Cout)
    ph = jnp.einsum("nhwi,pqio->nhwpqo", x, ctw, precision=hp) + params["ct_b"]
    ph = jnp.where(ph > 0, ph, 0.01 * ph)
    up = jnp.transpose(ph, (0, 1, 3, 2, 4, 5)).reshape(B, 2 * H, 2 * W, Cout)
    a = up + y
    apad = jnp.pad(a, ((0, 0), (1, 1), (1, 1), (0, 0)))
    d = jnp.zeros_like(a)
    for ky in range(3):
        for kx in range(3):
            d = d + apad[:, ky:ky + 2 * H, kx:kx + 2 * W, :] * params["dw_w"][ky, kx]
    z = jnp.einsum("nhwc,cd->nhwd", d, params["pw_w"], precision=hp) + params["pw_b"]
    z = jnp.where(z > 0, z, 0.01 * z)
    return jnp.transpose(z, (0, 3, 1, 2))


# ---------------------------------------------------------------------------
# deterministic synthetic parameters
# ---------------------------------------------------------------------------
def init_params(key, in_channels):
    cin, cout = in_channels, in_channels // 2
    ks = jax.random.split(key, 5)
    nrm = lambda k, shape, s=0.1: s * jax.random.normal(k, shape, jnp.float32)
    return {
        # ConvTranspose2d weight Wt[ci, co, dy, dx] stored as ct_w[2*dy+dx, ci, co]
        "ct_w": nrm(ks[0], (4, cin, cout)),
        "ct_b": nrm(ks[1], (cout,), 0.01),
        # depthwise 3x3, groups = cout, bias=False
        "dw_w": nrm(ks[2], (3, 3, 1, cout)),
        # pointwise 1x1 weight Wp[co, ci] stored as pw_w[ci, co]
        "pw_w": nrm(ks[3], (cout, cout)),
        "pw_b": nrm(ks[4], (cout,), 0.01),
    }


# ---------------------------------------------------------------------------
if __name__ == "__main__":
    key = jax.random.PRNGKey(0)
    kx, ky_, kp = jax.random.split(key, 3)

    B, Cin, H, W = 2, 16, 8, 8                      # x: (2,16,8,8)  y: (2,8,16,16)
    x = jax.random.normal(kx, (B, Cin, H, W), jnp.float32)
    y = jax.random.normal(ky_, (B, Cin // 2, 2 * H, 2 * W), jnp.float32)
    params = init_params(kp, Cin)

    out = jax.jit(conv_up_forward)(params, x, y)
    out = jax.block_until_ready(out)
    assert out.shape == (B, Cin // 2, 2 * H, 2 * W), out.shape

    ref = conv_up_reference(params, x, y)
    err = float(jnp.max(jnp.abs(out - ref)))
    assert err < 2e-3, f"max abs err vs reference: {err}"

    print("KERNEL_OK")
</pallas_src>

<mosaic_0001>
module attributes {stable_mosaic.version = 11 : i64} {
  func.func @_convup_kernel(%arg0: i32, %arg1: memref<2x8x8x16xf32, #tpu.memory_space<vmem>>, %arg2: memref<4x2x8x8x8xf32, #tpu.memory_space<vmem>>, %arg3: memref<4x16x8xf32, #tpu.memory_space<vmem>>, %arg4: memref<1x8xf32, #tpu.memory_space<vmem>>, %arg5: memref<3x3x1x8xf32, #tpu.memory_space<vmem>>, %arg6: memref<8x8xf32, #tpu.memory_space<vmem>>, %arg7: memref<1x8xf32, #tpu.memory_space<vmem>>, %arg8: memref<4x2x8x8x8xf32, #tpu.memory_space<vmem>>, %arg9: memref<4x2x10x17x8xf32, #tpu.memory_space<vmem>>) attributes {dimension_semantics = [#tpu.dimension_semantics<arbitrary>], iteration_bounds = array<i64: 1>, scalar_prefetch = 0 : i64, scratch_operands = 1 : i64, tpu.core_type = #tpu.core_type<tc>, window_params = [{pipeline_mode = #tpu.pipeline_mode<synchronous>, transform_indices = @transform_0, window_bounds = array<i64: 2, 8, 8, 16>}, {pipeline_mode = #tpu.pipeline_mode<synchronous>, transform_indices = @transform_1, window_bounds = array<i64: 4, 2, 8, 8, 8>}, {pipeline_mode = #tpu.pipeline_mode<synchronous>, transform_indices = @transform_2, window_bounds = array<i64: 4, 16, 8>}, {pipeline_mode = #tpu.pipeline_mode<synchronous>, transform_indices = @transform_3, window_bounds = array<i64: 1, 8>}, {pipeline_mode = #tpu.pipeline_mode<synchronous>, transform_indices = @transform_4, window_bounds = array<i64: 3, 3, 1, 8>}, {pipeline_mode = #tpu.pipeline_mode<synchronous>, transform_indices = @transform_5, window_bounds = array<i64: 8, 8>}, {pipeline_mode = #tpu.pipeline_mode<synchronous>, transform_indices = @transform_6, window_bounds = array<i64: 1, 8>}, {pipeline_mode = #tpu.pipeline_mode<synchronous>, transform_indices = @transform_7, window_bounds = array<i64: 4, 2, 8, 8, 8>}]} {
    %c0 = arith.constant 0 : index
    %c0_0 = arith.constant 0 : index
    %c0_1 = arith.constant 0 : index
    %c0_2 = arith.constant 0 : index
    %0 = vector.load %arg1[%c0, %c0_0, %c0_1, %c0_2] : memref<2x8x8x16xf32, #tpu.memory_space<vmem>>, vector<2x8x8x16xf32>
    %1 = vector.shape_cast %0 : vector<2x8x8x16xf32> to vector<128x16xf32>
    %c0_3 = arith.constant 0 : index
    %c0_4 = arith.constant 0 : index
    %2 = vector.load %arg4[%c0_3, %c0_4] : memref<1x8xf32, #tpu.memory_space<vmem>>, vector<1x8xf32>
    %c0_5 = arith.constant 0 : index
    %c0_6 = arith.constant 0 : index
    %3 = vector.load %arg7[%c0_5, %c0_6] : memref<1x8xf32, #tpu.memory_space<vmem>>, vector<1x8xf32>
    %c0_7 = arith.constant 0 : index
    %c0_8 = arith.constant 0 : index
    %c0_9 = arith.constant 0 : index
    %c0_10 = arith.constant 0 : index
    %4 = vector.load %arg5[%c0_7, %c0_8, %c0_9, %c0_10] : memref<3x3x1x8xf32, #tpu.memory_space<vmem>>, vector<3x3x1x8xf32>
    %c0_11 = arith.constant 0 : index
    %c0_12 = arith.constant 0 : index
    %5 = vector.load %arg6[%c0_11, %c0_12] : memref<8x8xf32, #tpu.memory_space<vmem>>, vector<8x8xf32>
    %cst = arith.constant 0.000000e+00 : f32
    %6 = vector.broadcast %cst : f32 to vector<4x2x10x17x8xf32>
    %c0_13 = arith.constant 0 : index
    %c0_14 = arith.constant 0 : index
    %c0_15 = arith.constant 0 : index
    %c0_16 = arith.constant 0 : index
    %c0_17 = arith.constant 0 : index
    %7 = vector.load %arg9[%c0_13, %c0_14, %c0_15, %c0_16, %c0_17] : memref<4x2x10x17x8xf32, #tpu.memory_space<vmem>>, vector<4x2x10x17x8xf32>
    tpu.vector_store %arg9[%c0_13, %c0_14, %c0_15, %c0_16, %c0_17], %6 {strides = array<i32>} : memref<4x2x10x17x8xf32, #tpu.memory_space<vmem>>, vector<4x2x10x17x8xf32>,
    %c0_18 = arith.constant 0 : index
    %c0_19 = arith.constant 0 : index
    %c0_20 = arith.constant 0 : index
    %8 = vector.load %arg3[%c0_18, %c0_19, %c0_20] : memref<4x16x8xf32, #tpu.memory_space<vmem>>, vector<1x16x8xf32>
    %9 = vector.shape_cast %8 : vector<1x16x8xf32> to vector<16x8xf32>
    %cst_21 = arith.constant dense<0.000000e+00> : vector<128x8xf32>
    %10 = tpu.matmul %1, %9, %cst_21 {dimension_numbers = #tpu.dot_dimension_numbers<[1], [0], [0], [1], [0, 0, 1, 1], [], []>} : vector<128x16xf32>, vector<16x8xf32>, vector<128x8xf32> -> vector<128x8xf32>
    %11 = vector.broadcast %2 : vector<1x8xf32> to vector<128x8xf32>
    %12 = arith.addf %10, %11 : vector<128x8xf32>
    %cst_22 = arith.constant 0.000000e+00 : f32
    %13 = vector.broadcast %cst_22 : f32 to vector<128x8xf32>
    %14 = arith.cmpf ogt, %12, %13 : vector<128x8xf32>
    %cst_23 = arith.constant 0.00999999977 : f32
    %15 = vector.broadcast %cst_23 : f32 to vector<128x8xf32>
    %16 = arith.mulf %15, %12 : vector<128x8xf32>
    %17 = arith.select %14, %12, %16 : vector<128x8xi1>, vector<128x8xf32>
    %18 = vector.shape_cast %17 : vector<128x8xf32> to vector<2x8x8x8xf32>
    %c0_24 = arith.constant 0 : index
    %c0_25 = arith.constant 0 : index
    %c0_26 = arith.constant 0 : index
    %c0_27 = arith.constant 0 : index
    %c0_28 = arith.constant 0 : index
    %19 = vector.load %arg2[%c0_24, %c0_25, %c0_26, %c0_27, %c0_28] : memref<4x2x8x8x8xf32, #tpu.memory_space<vmem>>, vector<1x2x8x8x8xf32>
    %20 = vector.shape_cast %19 : vector<1x2x8x8x8xf32> to vector<2x8x8x8xf32>
    %21 = arith.addf %18, %20 : vector<2x8x8x8xf32>
    %c0_29 = arith.constant 0 : index
    %c0_30 = arith.constant 0 : index
    %c1 = arith.constant 1 : index
    %c8 = arith.constant 8 : index
    %c0_31 = arith.constant 0 : index
    %22 = vector.load %arg9[%c0_29, %c0_30, %c1, %c8, %c0_31] : memref<4x2x10x17x8xf32, #tpu.memory_space<vmem>>, vector<1x2x8x8x8xf32>
    %23 = vector.shape_cast %22 : vector<1x2x8x8x8xf32> to vector<2x8x8x8xf32>
    %24 = vector.shape_cast %21 : vector<2x8x8x8xf32> to vector<1x2x8x8x8xf32>
    tpu.vector_store %arg9[%c0_29, %c0_30, %c1, %c8, %c0_31], %24 {strides = array<i32>} : memref<4x2x10x17x8xf32, #tpu.memory_space<vmem>>, vector<1x2x8x8x8xf32>,
    %c1_32 = arith.constant 1 : index
    %c0_33 = arith.constant 0 : index
    %c0_34 = arith.constant 0 : index
    %25 = vector.load %arg3[%c1_32, %c0_33, %c0_34] : memref<4x16x8xf32, #tpu.memory_space<vmem>>, vector<1x16x8xf32>
    %26 = vector.shape_cast %25 : vector<1x16x8xf32> to vector<16x8xf32>
    %cst_35 = arith.constant dense<0.000000e+00> : vector<128x8xf32>
    %27 = tpu.matmul %1, %26, %cst_35 {dimension_numbers = #tpu.dot_dimension_numbers<[1], [0], [0], [1], [0, 0, 1, 1], [], []>} : vector<128x16xf32>, vector<16x8xf32>, vector<128x8xf32> -> vector<128x8xf32>
    %28 = vector.broadcast %2 : vector<1x8xf32> to vector<128x8xf32>
    %29 = arith.addf %27, %28 : vector<128x8xf32>
    %cst_36 = arith.constant 0.000000e+00 : f32
    %30 = vector.broadcast %cst_36 : f32 to vector<128x8xf32>
    %31 = arith.cmpf ogt, %29, %30 : vector<128x8xf32>
    %cst_37 = arith.constant 0.00999999977 : f32
    %32 = vector.broadcast %cst_37 : f32 to vector<128x8xf32>
    %33 = arith.mulf %32, %29 : vector<128x8xf32>
    %34 = arith.select %31, %29, %33 : vector<128x8xi1>, vector<128x8xf32>
    %35 = vector.shape_cast %34 : vector<128x8xf32> to vector<2x8x8x8xf32>
    %c1_38 = arith.constant 1 : index
    %c0_39 = arith.constant 0 : index
    %c0_40 = arith.constant 0 : index
    %c0_41 = arith.constant 0 : index
    %c0_42 = arith.constant 0 : index
    %36 = vector.load %arg2[%c1_38, %c0_39, %c0_40, %c0_41, %c0_42] : memref<4x2x8x8x8xf32, #tpu.memory_space<vmem>>, vector<1x2x8x8x8xf32>
    %37 = vector.shape_cast %36 : vector<1x2x8x8x8xf32> to vector<2x8x8x8xf32>
    %38 = arith.addf %35, %37 : vector<2x8x8x8xf32>
    %c1_43 = arith.constant 1 : index
    %c0_44 = arith.constant 0 : index
    %c1_45 = arith.constant 1 : index
    %c8_46 = arith.constant 8 : index
    %c0_47 = arith.constant 0 : index
    %39 = vector.load %arg9[%c1_43, %c0_44, %c1_45, %c8_46, %c0_47] : memref<4x2x10x17x8xf32, #tpu.memory_space<vmem>>, vector<1x2x8x8x8xf32>
    %40 = vector.shape_cast %39 : vector<1x2x8x8x8xf32> to vector<2x8x8x8xf32>
    %41 = vector.shape_cast %38 : vector<2x8x8x8xf32> to vector<1x2x8x8x8xf32>
    tpu.vector_store %arg9[%c1_43, %c0_44, %c1_45, %c8_46, %c0_47], %41 {strides = array<i32>} : memref<4x2x10x17x8xf32, #tpu.memory_space<vmem>>, vector<1x2x8x8x8xf32>,
    %c2 = arith.constant 2 : index
    %c0_48 = arith.constant 0 : index
    %c0_49 = arith.constant 0 : index
    %42 = vector.load %arg3[%c2, %c0_48, %c0_49] : memref<4x16x8xf32, #tpu.memory_space<vmem>>, vector<1x16x8xf32>
    %43 = vector.shape_cast %42 : vector<1x16x8xf32> to vector<16x8xf32>
    %cst_50 = arith.constant dense<0.000000e+00> : vector<128x8xf32>
    %44 = tpu.matmul %1, %43, %cst_50 {dimension_numbers = #tpu.dot_dimension_numbers<[1], [0], [0], [1], [0, 0, 1, 1], [], []>} : vector<128x16xf32>, vector<16x8xf32>, vector<128x8xf32> -> vector<128x8xf32>
    %45 = vector.broadcast %2 : vector<1x8xf32> to vector<128x8xf32>
    %46 = arith.addf %44, %45 : vector<128x8xf32>
    %cst_51 = arith.constant 0.000000e+00 : f32
    %47 = vector.broadcast %cst_51 : f32 to vector<128x8xf32>
    %48 = arith.cmpf ogt, %46, %47 : vector<128x8xf32>
    %cst_52 = arith.constant 0.00999999977 : f32
    %49 = vector.broadcast %cst_52 : f32 to vector<128x8xf32>
    %50 = arith.mulf %49, %46 : vector<128x8xf32>
    %51 = arith.select %48, %46, %50 : vector<128x8xi1>, vector<128x8xf32>
    %52 = vector.shape_cast %51 : vector<128x8xf32> to vector<2x8x8x8xf32>
    %c2_53 = arith.constant 2 : index
    %c0_54 = arith.constant 0 : index
    %c0_55 = arith.constant 0 : index
    %c0_56 = arith.constant 0 : index
    %c0_57 = arith.constant 0 : index
    %53 = vector.load %arg2[%c2_53, %c0_54, %c0_55, %c0_56, %c0_57] : memref<4x2x8x8x8xf32, #tpu.memory_space<vmem>>, vector<1x2x8x8x8xf32>
    %54 = vector.shape_cast %53 : vector<1x2x8x8x8xf32> to vector<2x8x8x8xf32>
    %55 = arith.addf %52, %54 : vector<2x8x8x8xf32>
    %c2_58 = arith.constant 2 : index
    %c0_59 = arith.constant 0 : index
    %c1_60 = arith.constant 1 : index
    %c8_61 = arith.constant 8 : index
    %c0_62 = arith.constant 0 : index
    %56 = vector.load %arg9[%c2_58, %c0_59, %c1_60, %c8_61, %c0_62] : memref<4x2x10x17x8xf32, #tpu.memory_space<vmem>>, vector<1x2x8x8x8xf32>
    %57 = vector.shape_cast %56 : vector<1x2x8x8x8xf32> to vector<2x8x8x8xf32>
    %58 = vector.shape_cast %55 : vector<2x8x8x8xf32> to vector<1x2x8x8x8xf32>
    tpu.vector_store %arg9[%c2_58, %c0_59, %c1_60, %c8_61, %c0_62], %58 {strides = array<i32>} : memref<4x2x10x17x8xf32, #tpu.memory_space<vmem>>, vector<1x2x8x8x8xf32>,
    %c3 = arith.constant 3 : index
    %c0_63 = arith.constant 0 : index
    %c0_64 = arith.constant 0 : index
    %59 = vector.load %arg3[%c3, %c0_63, %c0_64] : memref<4x16x8xf32, #tpu.memory_space<vmem>>, vector<1x16x8xf32>
    %60 = vector.shape_cast %59 : vector<1x16x8xf32> to vector<16x8xf32>
    %cst_65 = arith.constant dense<0.000000e+00> : vector<128x8xf32>
    %61 = tpu.matmul %1, %60, %cst_65 {dimension_numbers = #tpu.dot_dimension_numbers<[1], [0], [0], [1], [0, 0, 1, 1], [], []>} : vector<128x16xf32>, vector<16x8xf32>, vector<128x8xf32> -> vector<128x8xf32>
    %62 = vector.broadcast %2 : vector<1x8xf32> to vector<128x8xf32>
    %63 = arith.addf %61, %62 : vector<128x8xf32>
    %cst_66 = arith.constant 0.000000e+00 : f32
    %64 = vector.broadcast %cst_66 : f32 to vector<128x8xf32>
    %65 = arith.cmpf ogt, %63, %64 : vector<128x8xf32>
    %cst_67 = arith.constant 0.00999999977 : f32
    %66 = vector.broadcast %cst_67 : f32 to vector<128x8xf32>
    %67 = arith.mulf %66, %63 : vector<128x8xf32>
    %68 = arith.select %65, %63, %67 : vector<128x8xi1>, vector<128x8xf32>
    %69 = vector.shape_cast %68 : vector<128x8xf32> to vector<2x8x8x8xf32>
    %c3_68 = arith.constant 3 : index
    %c0_69 = arith.constant 0 : index
    %c0_70 = arith.constant 0 : index
    %c0_71 = arith.constant 0 : index
    %c0_72 = arith.constant 0 : index
    %70 = vector.load %arg2[%c3_68, %c0_69, %c0_70, %c0_71, %c0_72] : memref<4x2x8x8x8xf32, #tpu.memory_space<vmem>>, vector<1x2x8x8x8xf32>
    %71 = vector.shape_cast %70 : vector<1x2x8x8x8xf32> to vector<2x8x8x8xf32>
    %72 = arith.addf %69, %71 : vector<2x8x8x8xf32>
    %c3_73 = arith.constant 3 : index
    %c0_74 = arith.constant 0 : index
    %c1_75 = arith.constant 1 : index
    %c8_76 = arith.constant 8 : index
    %c0_77 = arith.constant 0 : index
    %73 = vector.load %arg9[%c3_73, %c0_74, %c1_75, %c8_76, %c0_77] : memref<4x2x10x17x8xf32, #tpu.memory_space<vmem>>, vector<1x2x8x8x8xf32>
    %74 = vector.shape_cast %73 : vector<1x2x8x8x8xf32> to vector<2x8x8x8xf32>
    %75 = vector.shape_cast %72 : vector<2x8x8x8xf32> to vector<1x2x8x8x8xf32>
    tpu.vector_store %arg9[%c3_73, %c0_74, %c1_75, %c8_76, %c0_77], %75 {strides = array<i32>} : memref<4x2x10x17x8xf32, #tpu.memory_space<vmem>>, vector<1x2x8x8x8xf32>,
    %c3_78 = arith.constant 3 : index
    %c0_79 = arith.constant 0 : index
    %c0_80 = arith.constant 0 : index
    %c7 = arith.constant 7 : index
    %c0_81 = arith.constant 0 : index
    %76 = vector.load %arg9[%c3_78, %c0_79, %c0_80, %c7, %c0_81] : memref<4x2x10x17x8xf32, #tpu.memory_space<vmem>>, vector<1x2x8x8x8xf32>
    %77 = vector.shape_cast %76 : vector<1x2x8x8x8xf32> to vector<2x8x8x8xf32>
    %78 = vector.extract_strided_slice %4 {offsets = [0, 0, 0, 0], sizes = [1, 1, 1, 8], strides = [1, 1, 1, 1]} : vector<3x3x1x8xf32> to vector<1x1x1x8xf32>
    %79 = vector.shape_cast %78 : vector<1x1x1x8xf32> to vector<1x8xf32>
    %80 = vector.shape_cast %79 : vector<1x8xf32> to vector<1x1x1x8xf32>
    %81 = vector.broadcast %80 : vector<1x1x1x8xf32> to vector<2x8x8x8xf32>
    %82 = arith.mulf %77, %81 : vector<2x8x8x8xf32>
    %c2_82 = arith.constant 2 : index
    %c0_83 = arith.constant 0 : index
    %c0_84 = arith.constant 0 : index
    %c8_85 = arith.constant 8 : index
    %c0_86 = arith.constant 0 : index
    %83 = vector.load %arg9[%c2_82, %c0_83, %c0_84, %c8_85, %c0_86] : memref<4x2x10x17x8xf32, #tpu.memory_space<vmem>>, vector<1x2x8x8x8xf32>
    %84 = vector.shape_cast %83 : vector<1x2x8x8x8xf32> to vector<2x8x8x8xf32>
    %85 = vector.extract_strided_slice %4 {offsets = [0, 1, 0, 0], sizes = [1, 1, 1, 8], strides = [1, 1, 1, 1]} : vector<3x3x1x8xf32> to vector<1x1x1x8xf32>
    %86 = vector.shape_cast %85 : vector<1x1x1x8xf32> to vector<1x8xf32>
    %87 = vector.shape_cast %86 : vector<1x8xf32> to vector<1x1x1x8xf32>
    %88 = vector.broadcast %87 : vector<1x1x1x8xf32> to vector<2x8x8x8xf32>
    %89 = arith.mulf %84, %88 : vector<2x8x8x8xf32>
    %90 = arith.addf %82, %89 : vector<2x8x8x8xf32>
    %c3_87 = arith.constant 3 : index
    %c0_88 = arith.constant 0 : index
    %c0_89 = arith.constant 0 : index
    %c8_90 = arith.constant 8 : index
    %c0_91 = arith.constant 0 : index
    %91 = vector.load %arg9[%c3_87, %c0_88, %c0_89, %c8_90, %c0_91] : memref<4x2x10x17x8xf32, #tpu.memory_space<vmem>>, vector<1x2x8x8x8xf32>
    %92 = vector.shape_cast %91 : vector<1x2x8x8x8xf32> to vector<2x8x8x8xf32>
    %93 = vector.extract_strided_slice %4 {offsets = [0, 2, 0, 0], sizes = [1, 1, 1, 8], strides = [1, 1, 1, 1]} : vector<3x3x1x8xf32> to vector<1x1x1x8xf32>
    %94 = vector.shape_cast %93 : vector<1x1x1x8xf32> to vector<1x8xf32>
    %95 = vector.shape_cast %94 : vector<1x8xf32> to vector<1x1x1x8xf32>
    %96 = vector.broadcast %95 : vector<1x1x1x8xf32> to vector<2x8x8x8xf32>
    %97 = arith.mulf %92, %96 : vector<2x8x8x8xf32>
    %98 = arith.addf %90, %97 : vector<2x8x8x8xf32>
    %c1_92 = arith.constant 1 : index
    %c0_93 = arith.constant 0 : index
    %c1_94 = arith.constant 1 : index
    %c7_95 = arith.constant 7 : index
    %c0_96 = arith.constant 0 : index
    %99 = vector.load %arg9[%c1_92, %c0_93, %c1_94, %c7_95, %c0_96] : memref<4x2x10x17x8xf32, #tpu.memory_space<vmem>>, vector<1x2x8x8x8xf32>
    %100 = vector.shape_cast %99 : vector<1x2x8x8x8xf32> to vector<2x8x8x8xf32>
    %101 = vector.extract_strided_slice %4 {offsets = [1, 0, 0, 0], sizes = [1, 1, 1, 8], strides = [1, 1, 1, 1]} : vector<3x3x1x8xf32> to vector<1x1x1x8xf32>
    %102 = vector.shape_cast %101 : vector<1x1x1x8xf32> to vector<1x8xf32>
    %103 = vector.shape_cast %102 : vector<1x8xf32> to vector<1x1x1x8xf32>
    %104 = vector.broadcast %103 : vector<1x1x1x8xf32> to vector<2x8x8x8xf32>
    %105 = arith.mulf %100, %104 : vector<2x8x8x8xf32>
    %106 = arith.addf %98, %105 : vector<2x8x8x8xf32>
    %c0_97 = arith.constant 0 : index
    %c0_98 = arith.constant 0 : index
    %c1_99 = arith.constant 1 : index
    %c8_100 = arith.constant 8 : index
    %c0_101 = arith.constant 0 : index
    %107 = vector.load %arg9[%c0_97, %c0_98, %c1_99, %c8_100, %c0_101] : memref<4x2x10x17x8xf32, #tpu.memory_space<vmem>>, vector<1x2x8x8x8xf32>
    %108 = vector.shape_cast %107 : vector<1x2x8x8x8xf32> to vector<2x8x8x8xf32>
    %109 = vector.extract_strided_slice %4 {offsets = [1, 1, 0, 0], sizes = [1, 1, 1, 8], strides = [1, 1, 1, 1]} : vector<3x3x1x8xf32> to vector<1x1x1x8xf32>
    %110 = vector.shape_cast %109 : vector<1x1x1x8xf32> to vector<1x8xf32>
    %111 = vector.shape_cast %110 : vector<1x8xf32> to vector<1x1x1x8xf32>
    %112 = vector.broadcast %111 : vector<1x1x1x8xf32> to vector<2x8x8x8xf32>
    %113 = arith.mulf %108, %112 : vector<2x8x8x8xf32>
    %114 = arith.addf %106, %113 : vector<2x8x8x8xf32>
    %c1_102 = arith.constant 1 : index
    %c0_103 = arith.constant 0 : index
    %c1_104 = arith.constant 1 : index
    %c8_105 = arith.constant 8 : index
    %c0_106 = arith.constant 0 : index
    %115 = vector.load %arg9[%c1_102, %c0_103, %c1_104, %c8_105, %c0_106] : memref<4x2x10x17x8xf32, #tpu.memory_space<vmem>>, vector<1x2x8x8x8xf32>
    %116 = vector.shape_cast %115 : vector<1x2x8x8x8xf32> to vector<2x8x8x8xf32>
    %117 = vector.extract_strided_slice %4 {offsets = [1, 2, 0, 0], sizes = [1, 1, 1, 8], strides = [1, 1, 1, 1]} : vector<3x3x1x8xf32> to vector<1x1x1x8xf32>
    %118 = vector.shape_cast %117 : vector<1x1x1x8xf32> to vector<1x8xf32>
    %119 = vector.shape_cast %118 : vector<1x8xf32> to vector<1x1x1x8xf32>
    %120 = vector.broadcast %119 : vector<1x1x1x8xf32> to vector<2x8x8x8xf32>
    %121 = arith.mulf %116, %120 : vector<2x8x8x8xf32>
    %122 = arith.addf %114, %121 : vector<2x8x8x8xf32>
    %c3_107 = arith.constant 3 : index
    %c0_108 = arith.constant 0 : index
    %c1_109 = arith.constant 1 : index
    %c7_110 = arith.constant 7 : index
    %c0_111 = arith.constant 0 : index
    %123 = vector.load %arg9[%c3_107, %c0_108, %c1_109, %c7_110, %c0_111] : memref<4x2x10x17x8xf32, #tpu.memory_space<vmem>>, vector<1x2x8x8x8xf32>
    %124 = vector.shape_cast %123 : vector<1x2x8x8x8xf32> to vector<2x8x8x8xf32>
    %125 = vector.extract_strided_slice %4 {offsets = [2, 0, 0, 0], sizes = [1, 1, 1, 8], strides = [1, 1, 1, 1]} : vector<3x3x1x8xf32> to vector<1x1x1x8xf32>
    %126 = vector.shape_cast %125 : vector<1x1x1x8xf32> to vector<1x8xf32>
    %127 = vector.shape_cast %126 : vector<1x8xf32> to vector<1x1x1x8xf32>
    %128 = vector.broadcast %127 : vector<1x1x1x8xf32> to vector<2x8x8x8xf32>
    %129 = arith.mulf %124, %128 : vector<2x8x8x8xf32>
    %130 = arith.addf %122, %129 : vector<2x8x8x8xf32>
    %c2_112 = arith.constant 2 : index
    %c0_113 = arith.constant 0 : index
    %c1_114 = arith.constant 1 : index
    %c8_115 = arith.constant 8 : index
    %c0_116 = arith.constant 0 : index
    %131 = vector.load %arg9[%c2_112, %c0_113, %c1_114, %c8_115, %c0_116] : memref<4x2x10x17x8xf32, #tpu.memory_space<vmem>>, vector<1x2x8x8x8xf32>
    %132 = vector.shape_cast %131 : vector<1x2x8x8x8xf32> to vector<2x8x8x8xf32>
    %133 = vector.extract_strided_slice %4 {offsets = [2, 1, 0, 0], sizes = [1, 1, 1, 8], strides = [1, 1, 1, 1]} : vector<3x3x1x8xf32> to vector<1x1x1x8xf32>
    %134 = vector.shape_cast %133 : vector<1x1x1x8xf32> to vector<1x8xf32>
    %135 = vector.shape_cast %134 : vector<1x8xf32> to vector<1x1x1x8xf32>
    %136 = vector.broadcast %135 : vector<1x1x1x8xf32> to vector<2x8x8x8xf32>
    %137 = arith.mulf %132, %136 : vector<2x8x8x8xf32>
    %138 = arith.addf %130, %137 : vector<2x8x8x8xf32>
    %c3_117 = arith.constant 3 : index
    %c0_118 = arith.constant 0 : index
    %c1_119 = arith.constant 1 : index
    %c8_120 = arith.constant 8 : index
    %c0_121 = arith.constant 0 : index
    %139 = vector.load %arg9[%c3_117, %c0_118, %c1_119, %c8_120, %c0_121] : memref<4x2x10x17x8xf32, #tpu.memory_space<vmem>>, vector<1x2x8x8x8xf32>
    %140 = vector.shape_cast %139 : vector<1x2x8x8x8xf32> to vector<2x8x8x8xf32>
    %141 = vector.extract_strided_slice %4 {offsets = [2, 2, 0, 0], sizes = [1, 1, 1, 8], strides = [1, 1, 1, 1]} : vector<3x3x1x8xf32> to vector<1x1x1x8xf32>
    %142 = vector.shape_cast %141 : vector<1x1x1x8xf32> to vector<1x8xf32>
    %143 = vector.shape_cast %142 : vector<1x8xf32> to vector<1x1x1x8xf32>
    %144 = vector.broadcast %143 : vector<1x1x1x8xf32> to vector<2x8x8x8xf32>
    %145 = arith.mulf %140, %144 : vector<2x8x8x8xf32>
    %146 = arith.addf %138, %145 : vector<2x8x8x8xf32>
    %147 = vector.shape_cast %146 : vector<2x8x8x8xf32> to vector<128x8xf32>
    %cst_122 = arith.constant dense<0.000000e+00> : vector<128x8xf32>
    %148 = tpu.matmul %147, %5, %cst_122 {dimension_numbers = #tpu.dot_dimension_numbers<[1], [0], [0], [1], [0, 0, 1, 1], [], []>} : vector<128x8xf32>, vector<8x8xf32>, vector<128x8xf32> -> vector<128x8xf32>
    %149 = vector.broadcast %3 : vector<1x8xf32> to vector<128x8xf32>
    %150 = arith.addf %148, %149 : vector<128x8xf32>
    %cst_123 = arith.constant 0.000000e+00 : f32
    %151 = vector.broadcast %cst_123 : f32 to vector<128x8xf32>
    %152 = arith.cmpf ogt, %150, %151 : vector<128x8xf32>
    %cst_124 = arith.constant 0.00999999977 : f32
    %153 = vector.broadcast %cst_124 : f32 to vector<128x8xf32>
    %154 = arith.mulf %153, %150 : vector<128x8xf32>
    %155 = arith.select %152, %150, %154 : vector<128x8xi1>, vector<128x8xf32>
    %156 = vector.shape_cast %155 : vector<128x8xf32> to vector<2x8x8x8xf32>
    %c0_125 = arith.constant 0 : index
    %c0_126 = arith.constant 0 : index
    %c0_127 = arith.constant 0 : index
    %c0_128 = arith.constant 0 : index
    %c0_129 = arith.constant 0 : index
    %157 = vector.load %arg8[%c0_125, %c0_126, %c0_127, %c0_128, %c0_129] : memref<4x2x8x8x8xf32, #tpu.memory_space<vmem>>, vector<1x2x8x8x8xf32>
    %158 = vector.shape_cast %157 : vector<1x2x8x8x8xf32> to vector<2x8x8x8xf32>
    %159 = vector.shape_cast %156 : vector<2x8x8x8xf32> to vector<1x2x8x8x8xf32>
    tpu.vector_store %arg8[%c0_125, %c0_126, %c0_127, %c0_128, %c0_129], %159 {strides = array<i32>} : memref<4x2x8x8x8xf32, #tpu.memory_space<vmem>>, vector<1x2x8x8x8xf32>,
    %c2_130 = arith.constant 2 : index
    %c0_131 = arith.constant 0 : index
    %c0_132 = arith.constant 0 : index
    %c8_133 = arith.constant 8 : index
    %c0_134 = arith.constant 0 : index
    %160 = vector.load %arg9[%c2_130, %c0_131, %c0_132, %c8_133, %c0_134] : memref<4x2x10x17x8xf32, #tpu.memory_space<vmem>>, vector<1x2x8x8x8xf32>
    %161 = vector.shape_cast %160 : vector<1x2x8x8x8xf32> to vector<2x8x8x8xf32>
    %162 = vector.extract_strided_slice %4 {offsets = [0, 0, 0, 0], sizes = [1, 1, 1, 8], strides = [1, 1, 1, 1]} : vector<3x3x1x8xf32> to vector<1x1x1x8xf32>
    %163 = vector.shape_cast %162 : vector<1x1x1x8xf32> to vector<1x8xf32>
    %164 = vector.shape_cast %163 : vector<1x8xf32> to vector<1x1x1x8xf32>
    %165 = vector.broadcast %164 : vector<1x1x1x8xf32> to vector<2x8x8x8xf32>
    %166 = arith.mulf %161, %165 : vector<2x8x8x8xf32>
    %c3_135 = arith.constant 3 : index
    %c0_136 = arith.constant 0 : index
    %c0_137 = arith.constant 0 : index
    %c8_138 = arith.constant 8 : index
    %c0_139 = arith.constant 0 : index
    %167 = vector.load %arg9[%c3_135, %c0_136, %c0_137, %c8_138, %c0_139] : memref<4x2x10x17x8xf32, #tpu.memory_space<vmem>>, vector<1x2x8x8x8xf32>
    %168 = vector.shape_cast %167 : vector<1x2x8x8x8xf32> to vector<2x8x8x8xf32>
    %169 = vector.extract_strided_slice %4 {offsets = [0, 1, 0, 0], sizes = [1, 1, 1, 8], strides = [1, 1, 1, 1]} : vector<3x3x1x8xf32> to vector<1x1x1x8xf32>
    %170 = vector.shape_cast %169 : vector<1x1x1x8xf32> to vector<1x8xf32>
    %171 = vector.shape_cast %170 : vector<1x8xf32> to vector<1x1x1x8xf32>
    %172 = vector.broadcast %171 : vector<1x1x1x8xf32> to vector<2x8x8x8xf32>
    %173 = arith.mulf %168, %172 : vector<2x8x8x8xf32>
    %174 = arith.addf %166, %173 : vector<2x8x8x8xf32>
    %c2_140 = arith.constant 2 : index
    %c0_141 = arith.constant 0 : index
    %c0_142 = arith.constant 0 : index
    %c9 = arith.constant 9 : index
    %c0_143 = arith.constant 0 : index
    %175 = vector.load %arg9[%c2_140, %c0_141, %c0_142, %c9, %c0_143] : memref<4x2x10x17x8xf32, #tpu.memory_space<vmem>>, vector<1x2x8x8x8xf32>
    %176 = vector.shape_cast %175 : vector<1x2x8x8x8xf32> to vector<2x8x8x8xf32>
    %177 = vector.extract_strided_slice %4 {offsets = [0, 2, 0, 0], sizes = [1, 1, 1, 8], strides = [1, 1, 1, 1]} : vector<3x3x1x8xf32> to vector<1x1x1x8xf32>
    %178 = vector.shape_cast %177 : vector<1x1x1x8xf32> to vector<1x8xf32>
    %179 = vector.shape_cast %178 : vector<1x8xf32> to vector<1x1x1x8xf32>
    %180 = vector.broadcast %179 : vector<1x1x1x8xf32> to vector<2x8x8x8xf32>
    %181 = arith.mulf %176, %180 : vector<2x8x8x8xf32>
    %182 = arith.addf %174, %181 : vector<2x8x8x8xf32>
    %c0_144 = arith.constant 0 : index
    %c0_145 = arith.constant 0 : index
    %c1_146 = arith.constant 1 : index
    %c8_147 = arith.constant 8 : index
    %c0_148 = arith.constant 0 : index
    %183 = vector.load %arg9[%c0_144, %c0_145, %c1_146, %c8_147, %c0_148] : memref<4x2x10x17x8xf32, #tpu.memory_space<vmem>>, vector<1x2x8x8x8xf32>
    %184 = vector.shape_cast %183 : vector<1x2x8x8x8xf32> to vector<2x8x8x8xf32>
    %185 = vector.extract_strided_slice %4 {offsets = [1, 0, 0, 0], sizes = [1, 1, 1, 8], strides = [1, 1, 1, 1]} : vector<3x3x1x8xf32> to vector<1x1x1x8xf32>
    %186 = vector.shape_cast %185 : vector<1x1x1x8xf32> to vector<1x8xf32>
    %187 = vector.shape_cast %186 : vector<1x8xf32> to vector<1x1x1x8xf32>
    %188 = vector.broadcast %187 : vector<1x1x1x8xf32> to vector<2x8x8x8xf32>
    %189 = arith.mulf %184, %188 : vector<2x8x8x8xf32>
    %190 = arith.addf %182, %189 : vector<2x8x8x8xf32>
    %c1_149 = arith.constant 1 : index
    %c0_150 = arith.constant 0 : index
    %c1_151 = arith.constant 1 : index
    %c8_152 = arith.constant 8 : index
    %c0_153 = arith.constant 0 : index
    %191 = vector.load %arg9[%c1_149, %c0_150, %c1_151, %c8_152, %c0_153] : memref<4x2x10x17x8xf32, #tpu.memory_space<vmem>>, vector<1x2x8x8x8xf32>
    %192 = vector.shape_cast %191 : vector<1x2x8x8x8xf32> to vector<2x8x8x8xf32>
    %193 = vector.extract_strided_slice %4 {offsets = [1, 1, 0, 0], sizes = [1, 1, 1, 8], strides = [1, 1, 1, 1]} : vector<3x3x1x8xf32> to vector<1x1x1x8xf32>
    %194 = vector.shape_cast %193 : vector<1x1x1x8xf32> to vector<1x8xf32>
    %195 = vector.shape_cast %194 : vector<1x8xf32> to vector<1x1x1x8xf32>
    %196 = vector.broadcast %195 : vector<1x1x1x8xf32> to vector<2x8x8x8xf32>
    %197 = arith.mulf %192, %196 : vector<2x8x8x8xf32>
    %198 = arith.addf %190, %197 : vector<2x8x8x8xf32>
    %c0_154 = arith.constant 0 : index
    %c0_155 = arith.constant 0 : index
    %c1_156 = arith.constant 1 : index
    %c9_157 = arith.constant 9 : index
    %c0_158 = arith.constant 0 : index
    %199 = vector.load %arg9[%c0_154, %c0_155, %c1_156, %c9_157, %c0_158] : memref<4x2x10x17x8xf32, #tpu.memory_space<vmem>>, vector<1x2x8x8x8xf32>
    %200 = vector.shape_cast %199 : vector<1x2x8x8x8xf32> to vector<2x8x8x8xf32>
    %201 = vector.extract_strided_slice %4 {offsets = [1, 2, 0, 0], sizes = [1, 1, 1, 8], strides = [1, 1, 1, 1]} : vector<3x3x1x8xf32> to vector<1x1x1x8xf32>
    %202 = vector.shape_cast %201 : vector<1x1x1x8xf32> to vector<1x8xf32>
    %203 = vector.shape_cast %202 : vector<1x8xf32> to vector<1x1x1x8xf32>
    %204 = vector.broadcast %203 : vector<1x1x1x8xf32> to vector<2x8x8x8xf32>
    %205 = arith.mulf %200, %204 : vector<2x8x8x8xf32>
    %206 = arith.addf %198, %205 : vector<2x8x8x8xf32>
    %c2_159 = arith.constant 2 : index
    %c0_160 = arith.constant 0 : index
    %c1_161 = arith.constant 1 : index
    %c8_162 = arith.constant 8 : index
    %c0_163 = arith.constant 0 : index
    %207 = vector.load %arg9[%c2_159, %c0_160, %c1_161, %c8_162, %c0_163] : memref<4x2x10x17x8xf32, #tpu.memory_space<vmem>>, vector<1x2x8x8x8xf32>
    %208 = vector.shape_cast %207 : vector<1x2x8x8x8xf32> to vector<2x8x8x8xf32>
    %209 = vector.extract_strided_slice %4 {offsets = [2, 0, 0, 0], sizes = [1, 1, 1, 8], strides = [1, 1, 1, 1]} : vector<3x3x1x8xf32> to vector<1x1x1x8xf32>
    %210 = vector.shape_cast %209 : vector<1x1x1x8xf32> to vector<1x8xf32>
    %211 = vector.shape_cast %210 : vector<1x8xf32> to vector<1x1x1x8xf32>
    %212 = vector.broadcast %211 : vector<1x1x1x8xf32> to vector<2x8x8x8xf32>
    %213 = arith.mulf %208, %212 : vector<2x8x8x8xf32>
    %214 = arith.addf %206, %213 : vector<2x8x8x8xf32>
    %c3_164 = arith.constant 3 : index
    %c0_165 = arith.constant 0 : index
    %c1_166 = arith.constant 1 : index
    %c8_167 = arith.constant 8 : index
    %c0_168 = arith.constant 0 : index
    %215 = vector.load %arg9[%c3_164, %c0_165, %c1_166, %c8_167, %c0_168] : memref<4x2x10x17x8xf32, #tpu.memory_space<vmem>>, vector<1x2x8x8x8xf32>
    %216 = vector.shape_cast %215 : vector<1x2x8x8x8xf32> to vector<2x8x8x8xf32>
    %217 = vector.extract_strided_slice %4 {offsets = [2, 1, 0, 0], sizes = [1, 1, 1, 8], strides = [1, 1, 1, 1]} : vector<3x3x1x8xf32> to vector<1x1x1x8xf32>
    %218 = vector.shape_cast %217 : vector<1x1x1x8xf32> to vector<1x8xf32>
    %219 = vector.shape_cast %218 : vector<1x8xf32> to vector<1x1x1x8xf32>
    %220 = vector.broadcast %219 : vector<1x1x1x8xf32> to vector<2x8x8x8xf32>
    %221 = arith.mulf %216, %220 : vector<2x8x8x8xf32>
    %222 = arith.addf %214, %221 : vector<2x8x8x8xf32>
    %c2_169 = arith.constant 2 : index
    %c0_170 = arith.constant 0 : index
    %c1_171 = arith.constant 1 : index
    %c9_172 = arith.constant 9 : index
    %c0_173 = arith.constant 0 : index
    %223 = vector.load %arg9[%c2_169, %c0_170, %c1_171, %c9_172, %c0_173] : memref<4x2x10x17x8xf32, #tpu.memory_space<vmem>>, vector<1x2x8x8x8xf32>
    %224 = vector.shape_cast %223 : vector<1x2x8x8x8xf32> to vector<2x8x8x8xf32>
    %225 = vector.extract_strided_slice %4 {offsets = [2, 2, 0, 0], sizes = [1, 1, 1, 8], strides = [1, 1, 1, 1]} : vector<3x3x1x8xf32> to vector<1x1x1x8xf32>
    %226 = vector.shape_cast %225 : vector<1x1x1x8xf32> to vector<1x8xf32>
    %227 = vector.shape_cast %226 : vector<1x8xf32> to vector<1x1x1x8xf32>
    %228 = vector.broadcast %227 : vector<1x1x1x8xf32> to vector<2x8x8x8xf32>
    %229 = arith.mulf %224, %228 : vector<2x8x8x8xf32>
    %230 = arith.addf %222, %229 : vector<2x8x8x8xf32>
    %231 = vector.shape_cast %230 : vector<2x8x8x8xf32> to vector<128x8xf32>
    %cst_174 = arith.constant dense<0.000000e+00> : vector<128x8xf32>
    %232 = tpu.matmul %231, %5, %cst_174 {dimension_numbers = #tpu.dot_dimension_numbers<[1], [0], [0], [1], [0, 0, 1, 1], [], []>} : vector<128x8xf32>, vector<8x8xf32>, vector<128x8xf32> -> vector<128x8xf32>
    %233 = vector.broadcast %3 : vector<1x8xf32> to vector<128x8xf32>
    %234 = arith.addf %232, %233 : vector<128x8xf32>
    %cst_175 = arith.constant 0.000000e+00 : f32
    %235 = vector.broadcast %cst_175 : f32 to vector<128x8xf32>
    %236 = arith.cmpf ogt, %234, %235 : vector<128x8xf32>
    %cst_176 = arith.constant 0.00999999977 : f32
    %237 = vector.broadcast %cst_176 : f32 to vector<128x8xf32>
    %238 = arith.mulf %237, %234 : vector<128x8xf32>
    %239 = arith.select %236, %234, %238 : vector<128x8xi1>, vector<128x8xf32>
    %240 = vector.shape_cast %239 : vector<128x8xf32> to vector<2x8x8x8xf32>
    %c1_177 = arith.constant 1 : index
    %c0_178 = arith.constant 0 : index
    %c0_179 = arith.constant 0 : index
    %c0_180 = arith.constant 0 : index
    %c0_181 = arith.constant 0 : index
    %241 = vector.load %arg8[%c1_177, %c0_178, %c0_179, %c0_180, %c0_181] : memref<4x2x8x8x8xf32, #tpu.memory_space<vmem>>, vector<1x2x8x8x8xf32>
    %242 = vector.shape_cast %241 : vector<1x2x8x8x8xf32> to vector<2x8x8x8xf32>
    %243 = vector.shape_cast %240 : vector<2x8x8x8xf32> to vector<1x2x8x8x8xf32>
    tpu.vector_store %arg8[%c1_177, %c0_178, %c0_179, %c0_180, %c0_181], %243 {strides = array<i32>} : memref<4x2x8x8x8xf32, #tpu.memory_space<vmem>>, vector<1x2x8x8x8xf32>,
    %c1_182 = arith.constant 1 : index
    %c0_183 = arith.constant 0 : index
    %c1_184 = arith.constant 1 : index
    %c7_185 = arith.constant 7 : index
    %c0_186 = arith.constant 0 : index
    %244 = vector.load %arg9[%c1_182, %c0_183, %c1_184, %c7_185, %c0_186] : memref<4x2x10x17x8xf32, #tpu.memory_space<vmem>>, vector<1x2x8x8x8xf32>
    %245 = vector.shape_cast %244 : vector<1x2x8x8x8xf32> to vector<2x8x8x8xf32>
    %246 = vector.extract_strided_slice %4 {offsets = [0, 0, 0, 0], sizes = [1, 1, 1, 8], strides = [1, 1, 1, 1]} : vector<3x3x1x8xf32> to vector<1x1x1x8xf32>
    %247 = vector.shape_cast %246 : vector<1x1x1x8xf32> to vector<1x8xf32>
    %248 = vector.shape_cast %247 : vector<1x8xf32> to vector<1x1x1x8xf32>
    %249 = vector.broadcast %248 : vector<1x1x1x8xf32> to vector<2x8x8x8xf32>
    %250 = arith.mulf %245, %249 : vector<2x8x8x8xf32>
    %c0_187 = arith.constant 0 : index
    %c0_188 = arith.constant 0 : index
    %c1_189 = arith.constant 1 : index
    %c8_190 = arith.constant 8 : index
    %c0_191 = arith.constant 0 : index
    %251 = vector.load %arg9[%c0_187, %c0_188, %c1_189, %c8_190, %c0_191] : memref<4x2x10x17x8xf32, #tpu.memory_space<vmem>>, vector<1x2x8x8x8xf32>
    %252 = vector.shape_cast %251 : vector<1x2x8x8x8xf32> to vector<2x8x8x8xf32>
    %253 = vector.extract_strided_slice %4 {offsets = [0, 1, 0, 0], sizes = [1, 1, 1, 8], strides = [1, 1, 1, 1]} : vector<3x3x1x8xf32> to vector<1x1x1x8xf32>
    %254 = vector.shape_cast %253 : vector<1x1x1x8xf32> to vector<1x8xf32>
    %255 = vector.shape_cast %254 : vector<1x8xf32> to vector<1x1x1x8xf32>
    %256 = vector.broadcast %255 : vector<1x1x1x8xf32> to vector<2x8x8x8xf32>
    %257 = arith.mulf %252, %256 : vector<2x8x8x8xf32>
    %258 = arith.addf %250, %257 : vector<2x8x8x8xf32>
    %c1_192 = arith.constant 1 : index
    %c0_193 = arith.constant 0 : index
    %c1_194 = arith.constant 1 : index
    %c8_195 = arith.constant 8 : index
    %c0_196 = arith.constant 0 : index
    %259 = vector.load %arg9[%c1_192, %c0_193, %c1_194, %c8_195, %c0_196] : memref<4x2x10x17x8xf32, #tpu.memory_space<vmem>>, vector<1x2x8x8x8xf32>
    %260 = vector.shape_cast %259 : vector<1x2x8x8x8xf32> to vector<2x8x8x8xf32>
    %261 = vector.extract_strided_slice %4 {offsets = [0, 2, 0, 0], sizes = [1, 1, 1, 8], strides = [1, 1, 1, 1]} : vector<3x3x1x8xf32> to vector<1x1x1x8xf32>
    %262 = vector.shape_cast %261 : vector<1x1x1x8xf32> to vector<1x8xf32>
    %263 = vector.shape_cast %262 : vector<1x8xf32> to vector<1x1x1x8xf32>
    %264 = vector.broadcast %263 : vector<1x1x1x8xf32> to vector<2x8x8x8xf32>
    %265 = arith.mulf %260, %264 : vector<2x8x8x8xf32>
    %266 = arith.addf %258, %265 : vector<2x8x8x8xf32>
    %c3_197 = arith.constant 3 : index
    %c0_198 = arith.constant 0 : index
    %c1_199 = arith.constant 1 : index
    %c7_200 = arith.constant 7 : index
    %c0_201 = arith.constant 0 : index
    %267 = vector.load %arg9[%c3_197, %c0_198, %c1_199, %c7_200, %c0_201] : memref<4x2x10x17x8xf32, #tpu.memory_space<vmem>>, vector<1x2x8x8x8xf32>
    %268 = vector.shape_cast %267 : vector<1x2x8x8x8xf32> to vector<2x8x8x8xf32>
    %269 = vector.extract_strided_slice %4 {offsets = [1, 0, 0, 0], sizes = [1, 1, 1, 8], strides = [1, 1, 1, 1]} : vector<3x3x1x8xf32> to vector<1x1x1x8xf32>
    %270 = vector.shape_cast %269 : vector<1x1x1x8xf32> to vector<1x8xf32>
    %271 = vector.shape_cast %270 : vector<1x8xf32> to vector<1x1x1x8xf32>
    %272 = vector.broadcast %271 : vector<1x1x1x8xf32> to vector<2x8x8x8xf32>
    %273 = arith.mulf %268, %272 : vector<2x8x8x8xf32>
    %274 = arith.addf %266, %273 : vector<2x8x8x8xf32>
    %c2_202 = arith.constant 2 : index
    %c0_203 = arith.constant 0 : index
    %c1_204 = arith.constant 1 : index
    %c8_205 = arith.constant 8 : index
    %c0_206 = arith.constant 0 : index
    %275 = vector.load %arg9[%c2_202, %c0_203, %c1_204, %c8_205, %c0_206] : memref<4x2x10x17x8xf32, #tpu.memory_space<vmem>>, vector<1x2x8x8x8xf32>
    %276 = vector.shape_cast %275 : vector<1x2x8x8x8xf32> to vector<2x8x8x8xf32>
    %277 = vector.extract_strided_slice %4 {offsets = [1, 1, 0, 0], sizes = [1, 1, 1, 8], strides = [1, 1, 1, 1]} : vector<3x3x1x8xf32> to vector<1x1x1x8xf32>
    %278 = vector.shape_cast %277 : vector<1x1x1x8xf32> to vector<1x8xf32>
    %279 = vector.shape_cast %278 : vector<1x8xf32> to vector<1x1x1x8xf32>
    %280 = vector.broadcast %279 : vector<1x1x1x8xf32> to vector<2x8x8x8xf32>
    %281 = arith.mulf %276, %280 : vector<2x8x8x8xf32>
    %282 = arith.addf %274, %281 : vector<2x8x8x8xf32>
    %c3_207 = arith.constant 3 : index
    %c0_208 = arith.constant 0 : index
    %c1_209 = arith.constant 1 : index
    %c8_210 = arith.constant 8 : index
    %c0_211 = arith.constant 0 : index
    %283 = vector.load %arg9[%c3_207, %c0_208, %c1_209, %c8_210, %c0_211] : memref<4x2x10x17x8xf32, #tpu.memory_space<vmem>>, vector<1x2x8x8x8xf32>
    %284 = vector.shape_cast %283 : vector<1x2x8x8x8xf32> to vector<2x8x8x8xf32>
    %285 = vector.extract_strided_slice %4 {offsets = [1, 2, 0, 0], sizes = [1, 1, 1, 8], strides = [1, 1, 1, 1]} : vector<3x3x1x8xf32> to vector<1x1x1x8xf32>
    %286 = vector.shape_cast %285 : vector<1x1x1x8xf32> to vector<1x8xf32>
    %287 = vector.shape_cast %286 : vector<1x8xf32> to vector<1x1x1x8xf32>
    %288 = vector.broadcast %287 : vector<1x1x1x8xf32> to vector<2x8x8x8xf32>
    %289 = arith.mulf %284, %288 : vector<2x8x8x8xf32>
    %290 = arith.addf %282, %289 : vector<2x8x8x8xf32>
    %c1_212 = arith.constant 1 : index
    %c0_213 = arith.constant 0 : index
    %c2_214 = arith.constant 2 : index
    %c7_215 = arith.constant 7 : index
    %c0_216 = arith.constant 0 : index
    %291 = vector.load %arg9[%c1_212, %c0_213, %c2_214, %c7_215, %c0_216] : memref<4x2x10x17x8xf32, #tpu.memory_space<vmem>>, vector<1x2x8x8x8xf32>
    %292 = vector.shape_cast %291 : vector<1x2x8x8x8xf32> to vector<2x8x8x8xf32>
    %293 = vector.extract_strided_slice %4 {offsets = [2, 0, 0, 0], sizes = [1, 1, 1, 8], strides = [1, 1, 1, 1]} : vector<3x3x1x8xf32> to vector<1x1x1x8xf32>
    %294 = vector.shape_cast %293 : vector<1x1x1x8xf32> to vector<1x8xf32>
    %295 = vector.shape_cast %294 : vector<1x8xf32> to vector<1x1x1x8xf32>
    %296 = vector.broadcast %295 : vector<1x1x1x8xf32> to vector<2x8x8x8xf32>
    %297 = arith.mulf %292, %296 : vector<2x8x8x8xf32>
    %298 = arith.addf %290, %297 : vector<2x8x8x8xf32>
    %c0_217 = arith.constant 0 : index
    %c0_218 = arith.constant 0 : index
    %c2_219 = arith.constant 2 : index
    %c8_220 = arith.constant 8 : index
    %c0_221 = arith.constant 0 : index
    %299 = vector.load %arg9[%c0_217, %c0_218, %c2_219, %c8_220, %c0_221] : memref<4x2x10x17x8xf32, #tpu.memory_space<vmem>>, vector<1x2x8x8x8xf32>
    %300 = vector.shape_cast %299 : vector<1x2x8x8x8xf32> to vector<2x8x8x8xf32>
    %301 = vector.extract_strided_slice %4 {offsets = [2, 1, 0, 0], sizes = [1, 1, 1, 8], strides = [1, 1, 1, 1]} : vector<3x3x1x8xf32> to vector<1x1x1x8xf32>
    %302 = vector.shape_cast %301 : vector<1x1x1x8xf32> to vector<1x8xf32>
    %303 = vector.shape_cast %302 : vector<1x8xf32> to vector<1x1x1x8xf32>
    %304 = vector.broadcast %303 : vector<1x1x1x8xf32> to vector<2x8x8x8xf32>
    %305 = arith.mulf %300, %304 : vector<2x8x8x8xf32>
    %306 = arith.addf %298, %305 : vector<2x8x8x8xf32>
    %c1_222 = arith.constant 1 : index
    %c0_223 = arith.constant 0 : index
    %c2_224 = arith.constant 2 : index
    %c8_225 = arith.constant 8 : index
    %c0_226 = arith.constant 0 : index
    %307 = vector.load %arg9[%c1_222, %c0_223, %c2_224, %c8_225, %c0_226] : memref<4x2x10x17x8xf32, #tpu.memory_space<vmem>>, vector<1x2x8x8x8xf32>
    %308 = vector.shape_cast %307 : vector<1x2x8x8x8xf32> to vector<2x8x8x8xf32>
    %309 = vector.extract_strided_slice %4 {offsets = [2, 2, 0, 0], sizes = [1, 1, 1, 8], strides = [1, 1, 1, 1]} : vector<3x3x1x8xf32> to vector<1x1x1x8xf32>
    %310 = vector.shape_cast %309 : vector<1x1x1x8xf32> to vector<1x8xf32>
    %311 = vector.shape_cast %310 : vector<1x8xf32> to vector<1x1x1x8xf32>
    %312 = vector.broadcast %311 : vector<1x1x1x8xf32> to vector<2x8x8x8xf32>
    %313 = arith.mulf %308, %312 : vector<2x8x8x8xf32>
    %314 = arith.addf %306, %313 : vector<2x8x8x8xf32>
    %315 = vector.shape_cast %314 : vector<2x8x8x8xf32> to vector<128x8xf32>
    %cst_227 = arith.constant dense<0.000000e+00> : vector<128x8xf32>
    %316 = tpu.matmul %315, %5, %cst_227 {dimension_numbers = #tpu.dot_dimension_numbers<[1], [0], [0], [1], [0, 0, 1, 1], [], []>} : vector<128x8xf32>, vector<8x8xf32>, vector<128x8xf32> -> vector<128x8xf32>
    %317 = vector.broadcast %3 : vector<1x8xf32> to vector<128x8xf32>
    %318 = arith.addf %316, %317 : vector<128x8xf32>
    %cst_228 = arith.constant 0.000000e+00 : f32
    %319 = vector.broadcast %cst_228 : f32 to vector<128x8xf32>
    %320 = arith.cmpf ogt, %318, %319 : vector<128x8xf32>
    %cst_229 = arith.constant 0.00999999977 : f32
    %321 = vector.broadcast %cst_229 : f32 to vector<128x8xf32>
    %322 = arith.mulf %321, %318 : vector<128x8xf32>
    %323 = arith.select %320, %318, %322 : vector<128x8xi1>, vector<128x8xf32>
    %324 = vector.shape_cast %323 : vector<128x8xf32> to vector<2x8x8x8xf32>
    %c2_230 = arith.constant 2 : index
    %c0_231 = arith.constant 0 : index
    %c0_232 = arith.constant 0 : index
    %c0_233 = arith.constant 0 : index
    %c0_234 = arith.constant 0 : index
    %325 = vector.load %arg8[%c2_230, %c0_231, %c0_232, %c0_233, %c0_234] : memref<4x2x8x8x8xf32, #tpu.memory_space<vmem>>, vector<1x2x8x8x8xf32>
    %326 = vector.shape_cast %325 : vector<1x2x8x8x8xf32> to vector<2x8x8x8xf32>
    %327 = vector.shape_cast %324 : vector<2x8x8x8xf32> to vector<1x2x8x8x8xf32>
    tpu.vector_store %arg8[%c2_230, %c0_231, %c0_232, %c0_233, %c0_234], %327 {strides = array<i32>} : memref<4x2x8x8x8xf32, #tpu.memory_space<vmem>>, vector<1x2x8x8x8xf32>,
    %c0_235 = arith.constant 0 : index
    %c0_236 = arith.constant 0 : index
    %c1_237 = arith.constant 1 : index
    %c8_238 = arith.constant 8 : index
    %c0_239 = arith.constant 0 : index
    %328 = vector.load %arg9[%c0_235, %c0_236, %c1_237, %c8_238, %c0_239] : memref<4x2x10x17x8xf32, #tpu.memory_space<vmem>>, vector<1x2x8x8x8xf32>
    %329 = vector.shape_cast %328 : vector<1x2x8x8x8xf32> to vector<2x8x8x8xf32>
    %330 = vector.extract_strided_slice %4 {offsets = [0, 0, 0, 0], sizes = [1, 1, 1, 8], strides = [1, 1, 1, 1]} : vector<3x3x1x8xf32> to vector<1x1x1x8xf32>
    %331 = vector.shape_cast %330 : vector<1x1x1x8xf32> to vector<1x8xf32>
    %332 = vector.shape_cast %331 : vector<1x8xf32> to vector<1x1x1x8xf32>
    %333 = vector.broadcast %332 : vector<1x1x1x8xf32> to vector<2x8x8x8xf32>
    %334 = arith.mulf %329, %333 : vector<2x8x8x8xf32>
    %c1_240 = arith.constant 1 : index
    %c0_241 = arith.constant 0 : index
    %c1_242 = arith.constant 1 : index
    %c8_243 = arith.constant 8 : index
    %c0_244 = arith.constant 0 : index
    %335 = vector.load %arg9[%c1_240, %c0_241, %c1_242, %c8_243, %c0_244] : memref<4x2x10x17x8xf32, #tpu.memory_space<vmem>>, vector<1x2x8x8x8xf32>
    %336 = vector.shape_cast %335 : vector<1x2x8x8x8xf32> to vector<2x8x8x8xf32>
    %337 = vector.extract_strided_slice %4 {offsets = [0, 1, 0, 0], sizes = [1, 1, 1, 8], strides = [1, 1, 1, 1]} : vector<3x3x1x8xf32> to vector<1x1x1x8xf32>
    %338 = vector.shape_cast %337 : vector<1x1x1x8xf32> to vector<1x8xf32>
    %339 = vector.shape_cast %338 : vector<1x8xf32> to vector<1x1x1x8xf32>
    %340 = vector.broadcast %339 : vector<1x1x1x8xf32> to vector<2x8x8x8xf32>
    %341 = arith.mulf %336, %340 : vector<2x8x8x8xf32>
    %342 = arith.addf %334, %341 : vector<2x8x8x8xf32>
    %c0_245 = arith.constant 0 : index
    %c0_246 = arith.constant 0 : index
    %c1_247 = arith.constant 1 : index
    %c9_248 = arith.constant 9 : index
    %c0_249 = arith.constant 0 : index
    %343 = vector.load %arg9[%c0_245, %c0_246, %c1_247, %c9_248, %c0_249] : memref<4x2x10x17x8xf32, #tpu.memory_space<vmem>>, vector<1x2x8x8x8xf32>
    %344 = vector.shape_cast %343 : vector<1x2x8x8x8xf32> to vector<2x8x8x8xf32>
    %345 = vector.extract_strided_slice %4 {offsets = [0, 2, 0, 0], sizes = [1, 1, 1, 8], strides = [1, 1, 1, 1]} : vector<3x3x1x8xf32> to vector<1x1x1x8xf32>
    %346 = vector.shape_cast %345 : vector<1x1x1x8xf32> to vector<1x8xf32>
    %347 = vector.shape_cast %346 : vector<1x8xf32> to vector<1x1x1x8xf32>
    %348 = vector.broadcast %347 : vector<1x1x1x8xf32> to vector<2x8x8x8xf32>
    %349 = arith.mulf %344, %348 : vector<2x8x8x8xf32>
    %350 = arith.addf %342, %349 : vector<2x8x8x8xf32>
    %c2_250 = arith.constant 2 : index
    %c0_251 = arith.constant 0 : index
    %c1_252 = arith.constant 1 : index
    %c8_253 = arith.constant 8 : index
    %c0_254 = arith.constant 0 : index
    %351 = vector.load %arg9[%c2_250, %c0_251, %c1_252, %c8_253, %c0_254] : memref<4x2x10x17x8xf32, #tpu.memory_space<vmem>>, vector<1x2x8x8x8xf32>
    %352 = vector.shape_cast %351 : vector<1x2x8x8x8xf32> to vector<2x8x8x8xf32>
    %353 = vector.extract_strided_slice %4 {offsets = [1, 0, 0, 0], sizes = [1, 1, 1, 8], strides = [1, 1, 1, 1]} : vector<3x3x1x8xf32> to vector<1x1x1x8xf32>
    %354 = vector.shape_cast %353 : vector<1x1x1x8xf32> to vector<1x8xf32>
    %355 = vector.shape_cast %354 : vector<1x8xf32> to vector<1x1x1x8xf32>
    %356 = vector.broadcast %355 : vector<1x1x1x8xf32> to vector<2x8x8x8xf32>
    %357 = arith.mulf %352, %356 : vector<2x8x8x8xf32>
    %358 = arith.addf %350, %357 : vector<2x8x8x8xf32>
    %c3_255 = arith.constant 3 : index
    %c0_256 = arith.constant 0 : index
    %c1_257 = arith.constant 1 : index
    %c8_258 = arith.constant 8 : index
    %c0_259 = arith.constant 0 : index
    %359 = vector.load %arg9[%c3_255, %c0_256, %c1_257, %c8_258, %c0_259] : memref<4x2x10x17x8xf32, #tpu.memory_space<vmem>>, vector<1x2x8x8x8xf32>
    %360 = vector.shape_cast %359 : vector<1x2x8x8x8xf32> to vector<2x8x8x8xf32>
    %361 = vector.extract_strided_slice %4 {offsets = [1, 1, 0, 0], sizes = [1, 1, 1, 8], strides = [1, 1, 1, 1]} : vector<3x3x1x8xf32> to vector<1x1x1x8xf32>
    %362 = vector.shape_cast %361 : vector<1x1x1x8xf32> to vector<1x8xf32>
    %363 = vector.shape_cast %362 : vector<1x8xf32> to vector<1x1x1x8xf32>
    %364 = vector.broadcast %363 : vector<1x1x1x8xf32> to vector<2x8x8x8xf32>
    %365 = arith.mulf %360, %364 : vector<2x8x8x8xf32>
    %366 = arith.addf %358, %365 : vector<2x8x8x8xf32>
    %c2_260 = arith.constant 2 : index
    %c0_261 = arith.constant 0 : index
    %c1_262 = arith.constant 1 : index
    %c9_263 = arith.constant 9 : index
    %c0_264 = arith.constant 0 : index
    %367 = vector.load %arg9[%c2_260, %c0_261, %c1_262, %c9_263, %c0_264] : memref<4x2x10x17x8xf32, #tpu.memory_space<vmem>>, vector<1x2x8x8x8xf32>
    %368 = vector.shape_cast %367 : vector<1x2x8x8x8xf32> to vector<2x8x8x8xf32>
    %369 = vector.extract_strided_slice %4 {offsets = [1, 2, 0, 0], sizes = [1, 1, 1, 8], strides = [1, 1, 1, 1]} : vector<3x3x1x8xf32> to vector<1x1x1x8xf32>
    %370 = vector.shape_cast %369 : vector<1x1x1x8xf32> to vector<1x8xf32>
    %371 = vector.shape_cast %370 : vector<1x8xf32> to vector<1x1x1x8xf32>
    %372 = vector.broadcast %371 : vector<1x1x1x8xf32> to vector<2x8x8x8xf32>
    %373 = arith.mulf %368, %372 : vector<2x8x8x8xf32>
    %374 = arith.addf %366, %373 : vector<2x8x8x8xf32>
    %c0_265 = arith.constant 0 : index
    %c0_266 = arith.constant 0 : index
    %c2_267 = arith.constant 2 : index
    %c8_268 = arith.constant 8 : index
    %c0_269 = arith.constant 0 : index
    %375 = vector.load %arg9[%c0_265, %c0_266, %c2_267, %c8_268, %c0_269] : memref<4x2x10x17x8xf32, #tpu.memory_space<vmem>>, vector<1x2x8x8x8xf32>
    %376 = vector.shape_cast %375 : vector<1x2x8x8x8xf32> to vector<2x8x8x8xf32>
    %377 = vector.extract_strided_slice %4 {offsets = [2, 0, 0, 0], sizes = [1, 1, 1, 8], strides = [1, 1, 1, 1]} : vector<3x3x1x8xf32> to vector<1x1x1x8xf32>
    %378 = vector.shape_cast %377 : vector<1x1x1x8xf32> to vector<1x8xf32>
    %379 = vector.shape_cast %378 : vector<1x8xf32> to vector<1x1x1x8xf32>
    %380 = vector.broadcast %379 : vector<1x1x1x8xf32> to vector<2x8x8x8xf32>
    %381 = arith.mulf %376, %380 : vector<2x8x8x8xf32>
    %382 = arith.addf %374, %381 : vector<2x8x8x8xf32>
    %c1_270 = arith.constant 1 : index
    %c0_271 = arith.constant 0 : index
    %c2_272 = arith.constant 2 : index
    %c8_273 = arith.constant 8 : index
    %c0_274 = arith.constant 0 : index
    %383 = vector.load %arg9[%c1_270, %c0_271, %c2_272, %c8_273, %c0_274] : memref<4x2x10x17x8xf32, #tpu.memory_space<vmem>>, vector<1x2x8x8x8xf32>
    %384 = vector.shape_cast %383 : vector<1x2x8x8x8xf32> to vector<2x8x8x8xf32>
    %385 = vector.extract_strided_slice %4 {offsets = [2, 1, 0, 0], sizes = [1, 1, 1, 8], strides = [1, 1, 1, 1]} : vector<3x3x1x8xf32> to vector<1x1x1x8xf32>
    %386 = vector.shape_cast %385 : vector<1x1x1x8xf32> to vector<1x8xf32>
    %387 = vector.shape_cast %386 : vector<1x8xf32> to vector<1x1x1x8xf32>
    %388 = vector.broadcast %387 : vector<1x1x1x8xf32> to vector<2x8x8x8xf32>
    %389 = arith.mulf %384, %388 : vector<2x8x8x8xf32>
    %390 = arith.addf %382, %389 : vector<2x8x8x8xf32>
    %c0_275 = arith.constant 0 : index
    %c0_276 = arith.constant 0 : index
    %c2_277 = arith.constant 2 : index
    %c9_278 = arith.constant 9 : index
    %c0_279 = arith.constant 0 : index
    %391 = vector.load %arg9[%c0_275, %c0_276, %c2_277, %c9_278, %c0_279] : memref<4x2x10x17x8xf32, #tpu.memory_space<vmem>>, vector<1x2x8x8x8xf32>
    %392 = vector.shape_cast %391 : vector<1x2x8x8x8xf32> to vector<2x8x8x8xf32>
    %393 = vector.extract_strided_slice %4 {offsets = [2, 2, 0, 0], sizes = [1, 1, 1, 8], strides = [1, 1, 1, 1]} : vector<3x3x1x8xf32> to vector<1x1x1x8xf32>
    %394 = vector.shape_cast %393 : vector<1x1x1x8xf32> to vector<1x8xf32>
    %395 = vector.shape_cast %394 : vector<1x8xf32> to vector<1x1x1x8xf32>
    %396 = vector.broadcast %395 : vector<1x1x1x8xf32> to vector<2x8x8x8xf32>
    %397 = arith.mulf %392, %396 : vector<2x8x8x8xf32>
    %398 = arith.addf %390, %397 : vector<2x8x8x8xf32>
    %399 = vector.shape_cast %398 : vector<2x8x8x8xf32> to vector<128x8xf32>
    %cst_280 = arith.constant dense<0.000000e+00> : vector<128x8xf32>
    %400 = tpu.matmul %399, %5, %cst_280 {dimension_numbers = #tpu.dot_dimension_numbers<[1], [0], [0], [1], [0, 0, 1, 1], [], []>} : vector<128x8xf32>, vector<8x8xf32>, vector<128x8xf32> -> vector<128x8xf32>
    %401 = vector.broadcast %3 : vector<1x8xf32> to vector<128x8xf32>
    %402 = arith.addf %400, %401 : vector<128x8xf32>
    %cst_281 = arith.constant 0.000000e+00 : f32
    %403 = vector.broadcast %cst_281 : f32 to vector<128x8xf32>
    %404 = arith.cmpf ogt, %402, %403 : vector<128x8xf32>
    %cst_282 = arith.constant 0.00999999977 : f32
    %405 = vector.broadcast %cst_282 : f32 to vector<128x8xf32>
    %406 = arith.mulf %405, %402 : vector<128x8xf32>
    %407 = arith.select %404, %402, %406 : vector<128x8xi1>, vector<128x8xf32>
    %408 = vector.shape_cast %407 : vector<128x8xf32> to vector<2x8x8x8xf32>
    %c3_283 = arith.constant 3 : index
    %c0_284 = arith.constant 0 : index
    %c0_285 = arith.constant 0 : index
    %c0_286 = arith.constant 0 : index
    %c0_287 = arith.constant 0 : index
    %409 = vector.load %arg8[%c3_283, %c0_284, %c0_285, %c0_286, %c0_287] : memref<4x2x8x8x8xf32, #tpu.memory_space<vmem>>, vector<1x2x8x8x8xf32>
    %410 = vector.shape_cast %409 : vector<1x2x8x8x8xf32> to vector<2x8x8x8xf32>
    %411 = vector.shape_cast %408 : vector<2x8x8x8xf32> to vector<1x2x8x8x8xf32>
    tpu.vector_store %arg8[%c3_283, %c0_284, %c0_285, %c0_286, %c0_287], %411 {strides = array<i32>} : memref<4x2x8x8x8xf32, #tpu.memory_space<vmem>>, vector<1x2x8x8x8xf32>,
    return
  }
  func.func @transform_0(%arg0: i32) -> (i32, i32, i32, i32) {
    %c0_i32 = arith.constant 0 : i32
    %c0_i32_0 = arith.constant 0 : i32
    %c0_i32_1 = arith.constant 0 : i32
    %c0_i32_2 = arith.constant 0 : i32
    %c0_i32_3 = arith.constant 0 : i32
    return %c0_i32, %c0_i32_0, %c0_i32_1, %c0_i32_2 : i32, i32, i32, i32
  }
  func.func @transform_1(%arg0: i32) -> (i32, i32, i32, i32, i32) {
    %c0_i32 = arith.constant 0 : i32
    %c0_i32_0 = arith.constant 0 : i32
    %c0_i32_1 = arith.constant 0 : i32
    %c0_i32_2 = arith.constant 0 : i32
    %c0_i32_3 = arith.constant 0 : i32
    %c0_i32_4 = arith.constant 0 : i32
    return %c0_i32, %c0_i32_0, %c0_i32_1, %c0_i32_2, %c0_i32_3 : i32, i32, i32, i32, i32
  }
  func.func @transform_2(%arg0: i32) -> (i32, i32, i32) {
    %c0_i32 = arith.constant 0 : i32
    %c0_i32_0 = arith.constant 0 : i32
    %c0_i32_1 = arith.constant 0 : i32
    %c0_i32_2 = arith.constant 0 : i32
    return %c0_i32, %c0_i32_0, %c0_i32_1 : i32, i32, i32
  }
  func.func @transform_3(%arg0: i32) -> (i32, i32) {
    %c0_i32 = arith.constant 0 : i32
    %c0_i32_0 = arith.constant 0 : i32
    %c0_i32_1 = arith.constant 0 : i32
    return %c0_i32, %c0_i32_0 : i32, i32
  }
  func.func @transform_4(%arg0: i32) -> (i32, i32, i32, i32) {
    %c0_i32 = arith.constant 0 : i32
    %c0_i32_0 = arith.constant 0 : i32
    %c0_i32_1 = arith.constant 0 : i32
    %c0_i32_2 = arith.constant 0 : i32
    %c0_i32_3 = arith.constant 0 : i32
    return %c0_i32, %c0_i32_0, %c0_i32_1, %c0_i32_2 : i32, i32, i32, i32
  }
  func.func @transform_5(%arg0: i32) -> (i32, i32) {
    %c0_i32 = arith.constant 0 : i32
    %c0_i32_0 = arith.constant 0 : i32
    %c0_i32_1 = arith.constant 0 : i32
    return %c0_i32, %c0_i32_0 : i32, i32
  }
  func.func @transform_6(%arg0: i32) -> (i32, i32) {
    %c0_i32 = arith.constant 0 : i32
    %c0_i32_0 = arith.constant 0 : i32
    %c0_i32_1 = arith.constant 0 : i32
    return %c0_i32, %c0_i32_0 : i32, i32
  }
  func.func @transform_7(%arg0: i32) -> (i32, i32, i32, i32, i32) {
    %c0_i32 = arith.constant 0 : i32
    %c0_i32_0 = arith.constant 0 : i32
    %c0_i32_1 = arith.constant 0 : i32
    %c0_i32_2 = arith.constant 0 : i32
    %c0_i32_3 = arith.constant 0 : i32
    %c0_i32_4 = arith.constant 0 : i32
    return %c0_i32, %c0_i32_0, %c0_i32_1, %c0_i32_2, %c0_i32_3 : i32, i32, i32, i32, i32
  }
}

</mosaic_0001>

<bundles_post_ra>
// kernel: conv_up_forward.1
= control target key start
LH: loop header
LB: loop body
LE: loop exit
PB: predicated region body
PF: predicated region fallthrough
CT: control target
= control target key end

     0   :  { %vm54_vm0 = vcmask 64512   ;;  %v4717_v3 = vmov 0.0   ;;  %vm304_vm1 = vcmask 130048   ;;  %vm57_vm2 = vcmask 57344   ;;  %s7075_s2 = inlined_call_operand.vmem [shape: f32[4,16,8], index: 2, kind: input, shape index: {}]   ;;  %s7076_s0 = inlined_call_operand.vmem [shape: f32[2,8,8,16], index: 0, kind: input, shape index: {}]   ;;  %s7077_s5 = inlined_call_operand.vmem [shape: f32[8,8], index: 5, kind: input, shape index: {}]   ;;  %s7078_s4 = inlined_call_operand.vmem [shape: f32[3,3,1,8], index: 4, kind: input, shape index: {}]   ;;  %s7079_s3 = inlined_call_operand.vmem [shape: f32[1,8], index: 3, kind: input, shape index: {}]   ;;  %s7080_s1 = inlined_call_operand.vmem [shape: f32[4,2,8,8,8], index: 1, kind: input, shape index: {}]   ;;  %s7081_s6 = inlined_call_operand.vmem [shape: f32[1,8], index: 6, kind: input, shape index: {}]   ;;  %s7082_s7 = inlined_call_operand.vmem [shape: f32[4,2,8,8,8], index: 7, kind: output, shape index: {}]  }
   0x1   :  { %v4761_v0 = vld [vmem:[%s7075_s2 + $0x8] sm:$0xff]  ;;  %v4766_v1 = vld [vmem:[%s7075_s2 + $0x18] sm:$0xff]  ;;  %v4771_v2 = vld [vmem:[%s7075_s2] sm:$0xff]  ;;  %63 = vst.msk [vmem:[#allocation2 + $0x38] sm:$0xff] %vm54_vm0, %v4717_v3 }
   0x2   :  { %60 = vst.msk [vmem:[#allocation2 + $0x20] sm:$0xff] %vm54_vm0, %v4717_v3  ;;  %66 = vst.msk [vmem:[#allocation2 + $0x50] sm:$0xff] %vm54_vm0, %v4717_v3  ;;  %4477 = vmatprep.subr.mxu0 %v4761_v0  ;;  %4505 = vmatprep.subr.mxu1 %v4766_v1  ;;  %v4113_v4 = vld [vmem:[%s7075_s2 + $0x10] sm:$0xff]  ;;  %v4997_v5 = vld [vmem:[%s7076_s0] sm:$0xff] }
   0x3   :  { %69 = vst.msk [vmem:[#allocation2 + $0x68] sm:$0xff] %vm54_vm0, %v4717_v3  ;;  %72 = vst.msk [vmem:[#allocation2 + $0x80] sm:$0xff] %vm54_vm0, %v4717_v3  ;;  %4478 = vmatpush3.msra.mxu0 %v4761_v0  ;;  %4506 = vmatpush3.msra.mxu1 %v4766_v1  ;;  %v5005_v6 = vld [vmem:[%s7076_s0 + $0x8] sm:$0xff]  ;;  %v4182_v8 = vld [vmem:[%s7075_s2 + $0x38] sm:$0xff] }
   0x4   :  { %75 = vst.msk [vmem:[#allocation2 + $0x98] sm:$0xff] %vm54_vm0, %v4717_v3  ;;  %78 = vst.msk [vmem:[#allocation2 + $0xb0] sm:$0xff] %vm54_vm0, %v4717_v3  ;;  %4479 = vmatprep.subr.mxu0 %v4771_v2  ;;  %4507 = vmatprep.subr.mxu1 %v4113_v4  ;;  %v4148_v7 = vld [vmem:[%s7075_s2 + $0x28] sm:$0xff]  ;;  %v28_v9 = vld [vmem:[%s7076_s0 + $0x10] sm:$0xff] }
   0x5   :  { %81 = vst.msk [vmem:[#allocation2 + $0xc8] sm:$0xff] %vm54_vm0, %v4717_v3  ;;  %84 = vst.msk [vmem:[#allocation2 + $0xe0] sm:$0xff] %vm54_vm0, %v4717_v3  ;;  %4480 = vmatpush3.msra.mxu0 %v4771_v2  ;;  %4481 = vmatprep.mubr.msk.f32.mxu0 %vm304_vm1, %v4997_v5  ;;  %v29_v10 = vld [vmem:[%s7076_s0 + $0x18] sm:$0xff]  ;;  %v30_v11 = vld [vmem:[%s7076_s0 + $0x20] sm:$0xff] }
   0x6   :  { %90 = vst.msk [vmem:[#allocation2 + $0x110] sm:$0xff] %vm54_vm0, %v4717_v3  ;;  %93 = vst.msk [vmem:[#allocation2 + $0x128] sm:$0xff] %vm54_vm0, %v4717_v3  ;;  %4508 = vmatpush3.msra.mxu1 %v4113_v4  ;;  %4509 = vmatprep.mubr.msk.f32.mxu1 %vm304_vm1, %v4997_v5  ;;  %v4147_v12 = vld [vmem:[%s7075_s2 + $0x20] sm:$0xff]  ;;  %v4181_v13 = vld [vmem:[%s7075_s2 + $0x30] sm:$0xff] }
   0x7   :  { %96 = vst.msk [vmem:[#allocation2 + $0x140] sm:$0xff] %vm54_vm0, %v4717_v3  ;;  %99 = vst.msk [vmem:[#allocation2 + $0x158] sm:$0xff] %vm54_vm0, %v4717_v3  ;;  %4482 = vmatmul.mubr.msk.f32.vlgmr.msra.gmra.mxu0 %vm304_vm1, %v5005_v6  ;;  %4510 = vmatmul.mubr.msk.f32.vlgmr.msra.gmra.mxu1 %vm304_vm1, %v5005_v6  ;;  %v31_v14 = vld [vmem:[%s7076_s0 + $0x28] sm:$0xff]  ;;  %v32_v15 = vld [vmem:[%s7076_s0 + $0x30] sm:$0xff] }
   0x8   :  { %102 = vst.msk [vmem:[#allocation2 + $0x170] sm:$0xff] %vm54_vm0, %v4717_v3  ;;  %105 = vst.msk [vmem:[#allocation2 + $0x188] sm:$0xff] %vm54_vm0, %v4717_v3  ;;  %4533 = vmatprep.subr.mxu0 %v4148_v7  ;;  %4561 = vmatprep.subr.mxu1 %v4182_v8  ;;  %v33_v16 = vld [vmem:[%s7076_s0 + $0x38] sm:$0xff]  ;;  %v34_v17 = vld [vmem:[%s7076_s0 + $0x40] sm:$0xff] }
   0x9   :  { %108 = vst.msk [vmem:[#allocation2 + $0x1a0] sm:$0xff] %vm54_vm0, %v4717_v3  ;;  %111 = vst.msk [vmem:[#allocation2 + $0x1b8] sm:$0xff] %vm54_vm0, %v4717_v3  ;;  %4534 = vmatpush3.msra.mxu0 %v4148_v7  ;;  %4562 = vmatpush3.msra.mxu1 %v4182_v8  ;;  %v35_v18 = vld [vmem:[%s7076_s0 + $0x48] sm:$0xff]  ;;  %v36_v19 = vld [vmem:[%s7076_s0 + $0x50] sm:$0xff] }
   0xa   :  { %114 = vst.msk [vmem:[#allocation2 + $0x1d0] sm:$0xff] %vm54_vm0, %v4717_v3  ;;  %119 = vst.msk [vmem:[#allocation2 + $0x1f8] sm:$0xff] %vm54_vm0, %v4717_v3  ;;  %4484 = vmatprep.mubr.msk.f32.mxu0 %vm304_vm1, %v28_v9  ;;  %4512 = vmatprep.mubr.msk.f32.mxu1 %vm304_vm1, %v28_v9  ;;  %v37_v20 = vld [vmem:[%s7076_s0 + $0x58] sm:$0xff]  ;;  %v38_v21 = vld [vmem:[%s7076_s0 + $0x60] sm:$0xff] }
   0xb   :  { %120 = vst.msk [vmem:[#allocation2 + $0x200] sm:$0xff] %vm54_vm0, %v4717_v3  ;;  %122 = vst.msk [vmem:[#allocation2 + $0x210] sm:$0xff] %vm54_vm0, %v4717_v3  ;;  %4485 = vmatmul.mubr.msk.f32.gmra.mxu0 %vm304_vm1, %v29_v10  ;;  %4513 = vmatmul.mubr.msk.f32.gmra.mxu1 %vm304_vm1, %v29_v10  ;;  %v39_v22 = vld [vmem:[%s7076_s0 + $0x68] sm:$0xff]  ;;  %v40_v23 = vld [vmem:[%s7076_s0 + $0x70] sm:$0xff] }
   0xc   :  { %123 = vst.msk [vmem:[#allocation2 + $0x218] sm:$0xff] %vm54_vm0, %v4717_v3  ;;  %125 = vst.msk [vmem:[#allocation2 + $0x228] sm:$0xff] %vm54_vm0, %v4717_v3  ;;  %4487 = vmatprep.mubr.msk.f32.mxu0 %vm304_vm1, %v30_v11  ;;  %4515 = vmatprep.mubr.msk.f32.mxu1 %vm304_vm1, %v30_v11  ;;  %v41_v24 = vld [vmem:[%s7076_s0 + $0x78] sm:$0xff]  ;;  %v53_v25 = vld [vmem:[%s7077_s5] sm:$0xff] }
   0xd   :  { %126 = vst.msk [vmem:[#allocation2 + $0x230] sm:$0xff] %vm54_vm0, %v4717_v3  ;;  %128 = vst.msk [vmem:[#allocation2 + $0x240] sm:$0xff] %vm54_vm0, %v4717_v3  ;;  %4535 = vmatprep.subr.mxu0 %v4147_v12  ;;  %4563 = vmatprep.subr.mxu1 %v4181_v13  ;;  %v4215_v26 = vld [vmem:[%s7078_s4] ss:$0 sm:$0xff]  ;;  %v4216_v27 = vld [vmem:[%s7078_s4 + $0x1] ss:$0 sm:$0xff] }
   0xe   :  { %129 = vst.msk [vmem:[#allocation2 + $0x248] sm:$0xff] %vm54_vm0, %v4717_v3  ;;  %131 = vst.msk [vmem:[#allocation2 + $0x258] sm:$0xff] %vm54_vm0, %v4717_v3  ;;  %4536 = vmatpush3.msra.mxu0 %v4147_v12  ;;  %4564 = vmatpush3.msra.mxu1 %v4181_v13  ;;  %v4217_v35 = vld [vmem:[%s7078_s4 + $0x2] ss:$0 sm:$0xff]  ;;  %v5221_v37 = vld [vmem:[%s7079_s3] ss:$0 sm:$0xff] }
   0xf   :  { %132 = vst.msk [vmem:[#allocation2 + $0x260] sm:$0xff] %vm54_vm0, %v4717_v3  ;;  %134 = vst.msk [vmem:[#allocation2 + $0x270] sm:$0xff] %vm54_vm0, %v4717_v3  ;;  %4488 = vmatmul.mubr.msk.f32.gmra.mxu0 %vm304_vm1, %v31_v14  ;;  %4516 = vmatmul.mubr.msk.f32.gmra.mxu1 %vm304_vm1, %v31_v14  ;;  %v547_v46 = vld [vmem:[%s7080_s1 + $0x8] sm:$0xff]  ;;  %v546_v1 = vld [vmem:[%s7080_s1] sm:$0xff] }
  0x10   :  { %135 = vst.msk [vmem:[#allocation2 + $0x278] sm:$0xff] %vm54_vm0, %v4717_v3  ;;  %137 = vst.msk [vmem:[#allocation2 + $0x288] sm:$0xff] %vm54_vm0, %v4717_v3  ;;  %4490 = vmatprep.mubr.msk.f32.mxu0 %vm304_vm1, %v32_v15  ;;  %4518 = vmatprep.mubr.msk.f32.mxu1 %vm304_vm1, %v32_v15  ;;  %v4132_v47 = vld [vmem:[%s7080_s1 + $0x88] sm:$0xff]  ;;  %v4131_v2 = vld [vmem:[%s7080_s1 + $0x80] sm:$0xff] }
  0x11   :  { %138 = vst.msk [vmem:[#allocation2 + $0x290] sm:$0xff] %vm54_vm0, %v4717_v3  ;;  %140 = vst.msk [vmem:[#allocation2 + $0x2a0] sm:$0xff] %vm54_vm0, %v4717_v3  ;;  %4589 = vmatprep.subr.mxu0 %v53_v25  ;;  %4615 = vmatprep.subr.mxu1 %v53_v25 }
  0x12   :  { %141 = vst.msk [vmem:[#allocation2 + $0x2a8] sm:$0xff] %vm54_vm0, %v4717_v3  ;;  %143 = vst.msk [vmem:[#allocation2 + $0x2b8] sm:$0xff] %vm54_vm0, %v4717_v3 }
  0x13   :  { %144 = vst.msk [vmem:[#allocation2 + $0x2c0] sm:$0xff] %vm54_vm0, %v4717_v3  ;;  %149 = vst.msk [vmem:[#allocation2 + $0x2e8] sm:$0xff] %vm54_vm0, %v4717_v3  ;;  %4491 = vmatmul.mubr.msk.f32.gmra.mxu0 %vm304_vm1, %v33_v16  ;;  %4519 = vmatmul.mubr.msk.f32.gmra.mxu1 %vm304_vm1, %v33_v16 }
  0x14   :  { %150 = vst.msk [vmem:[#allocation2 + $0x2f0] sm:$0xff] %vm54_vm0, %v4717_v3  ;;  %152 = vst.msk [vmem:[#allocation2 + $0x300] sm:$0xff] %vm54_vm0, %v4717_v3  ;;  %4493 = vmatprep.mubr.msk.f32.mxu0 %vm304_vm1, %v34_v17  ;;  %4521 = vmatprep.mubr.msk.f32.mxu1 %vm304_vm1, %v34_v17 }
  0x15   :  { %153 = vst.msk [vmem:[#allocation2 + $0x308] sm:$0xff] %vm54_vm0, %v4717_v3  ;;  %155 = vst.msk [vmem:[#allocation2 + $0x318] sm:$0xff] %vm54_vm0, %v4717_v3 }
  0x16   :  { %156 = vst.msk [vmem:[#allocation2 + $0x320] sm:$0xff] %vm54_vm0, %v4717_v3  ;;  %158 = vst.msk [vmem:[#allocation2 + $0x330] sm:$0xff] %vm54_vm0, %v4717_v3 }
  0x17   :  { %159 = vst.msk [vmem:[#allocation2 + $0x338] sm:$0xff] %vm54_vm0, %v4717_v3  ;;  %161 = vst.msk [vmem:[#allocation2 + $0x348] sm:$0xff] %vm54_vm0, %v4717_v3  ;;  %4494 = vmatmul.mubr.msk.f32.gmra.mxu0 %vm304_vm1, %v35_v18  ;;  %4522 = vmatmul.mubr.msk.f32.gmra.mxu1 %vm304_vm1, %v35_v18 }
  0x18   :  { %162 = vst.msk [vmem:[#allocation2 + $0x350] sm:$0xff] %vm54_vm0, %v4717_v3  ;;  %164 = vst.msk [vmem:[#allocation2 + $0x360] sm:$0xff] %vm54_vm0, %v4717_v3  ;;  %4496 = vmatprep.mubr.msk.f32.mxu0 %vm304_vm1, %v36_v19  ;;  %4524 = vmatprep.mubr.msk.f32.mxu1 %vm304_vm1, %v36_v19 }
  0x19   :  { %165 = vst.msk [vmem:[#allocation2 + $0x368] sm:$0xff] %vm54_vm0, %v4717_v3  ;;  %167 = vst.msk [vmem:[#allocation2 + $0x378] sm:$0xff] %vm54_vm0, %v4717_v3 }
  0x1a   :  { %168 = vst.msk [vmem:[#allocation2 + $0x380] sm:$0xff] %vm54_vm0, %v4717_v3  ;;  %170 = vst.msk [vmem:[#allocation2 + $0x390] sm:$0xff] %vm54_vm0, %v4717_v3 }
  0x1b   :  { %171 = vst.msk [vmem:[#allocation2 + $0x398] sm:$0xff] %vm54_vm0, %v4717_v3  ;;  %173 = vst.msk [vmem:[#allocation2 + $0x3a8] sm:$0xff] %vm54_vm0, %v4717_v3  ;;  %4497 = vmatmul.mubr.msk.f32.gmra.mxu0 %vm304_vm1, %v37_v20  ;;  %4525 = vmatmul.mubr.msk.f32.gmra.mxu1 %vm304_vm1, %v37_v20 }
  0x1c   :  { %174 = vst.msk [vmem:[#allocation2 + $0x3b0] sm:$0xff] %vm54_vm0, %v4717_v3  ;;  %177 = vst.msk [vmem:[#allocation2 + $0x3c8] sm:$0xff] %vm54_vm0, %v4717_v3  ;;  %4499 = vmatprep.mubr.msk.f32.mxu0 %vm304_vm1, %v38_v21  ;;  %4527 = vmatprep.mubr.msk.f32.mxu1 %vm304_vm1, %v38_v21 }
  0x1d   :  { %180 = vst.msk [vmem:[#allocation2 + $0x3e0] sm:$0xff] %vm54_vm0, %v4717_v3  ;;  %183 = vst.msk [vmem:[#allocation2 + $0x3f8] sm:$0xff] %vm54_vm0, %v4717_v3 }
  0x1e   :  { %186 = vst.msk [vmem:[#allocation2 + $0x410] sm:$0xff] %vm54_vm0, %v4717_v3  ;;  %189 = vst.msk [vmem:[#allocation2 + $0x428] sm:$0xff] %vm54_vm0, %v4717_v3 }
  0x1f   :  { %192 = vst.msk [vmem:[#allocation2 + $0x440] sm:$0xff] %vm54_vm0, %v4717_v3  ;;  %195 = vst.msk [vmem:[#allocation2 + $0x458] sm:$0xff] %vm54_vm0, %v4717_v3  ;;  %4500 = vmatmul.mubr.msk.f32.gmra.mxu0 %vm304_vm1, %v39_v22  ;;  %4528 = vmatmul.mubr.msk.f32.gmra.mxu1 %vm304_vm1, %v39_v22 }
  0x20   :  { %198 = vst.msk [vmem:[#allocation2 + $0x470] sm:$0xff] %vm54_vm0, %v4717_v3  ;;  %201 = vst.msk [vmem:[#allocation2 + $0x488] sm:$0xff] %vm54_vm0, %v4717_v3  ;;  %4502 = vmatprep.mubr.msk.f32.mxu0 %vm304_vm1, %v40_v23  ;;  %4530 = vmatprep.mubr.msk.f32.mxu1 %vm304_vm1, %v40_v23 }
  0x21   :  { %207 = vst.msk [vmem:[#allocation2 + $0x4b8] sm:$0xff] %vm54_vm0, %v4717_v3  ;;  %210 = vst.msk [vmem:[#allocation2 + $0x4d0] sm:$0xff] %vm54_vm0, %v4717_v3 }
  0x22   :  { %213 = vst.msk [vmem:[#allocation2 + $0x4e8] sm:$0xff] %vm54_vm0, %v4717_v3  ;;  %216 = vst.msk [vmem:[#allocation2 + $0x500] sm:$0xff] %vm54_vm0, %v4717_v3 }
  0x23   :  { %219 = vst.msk [vmem:[#allocation2 + $0x518] sm:$0xff] %vm54_vm0, %v4717_v3  ;;  %222 = vst.msk [vmem:[#allocation2 + $0x530] sm:$0xff] %vm54_vm0, %v4717_v3  ;;  %4503 = vmatmul.mubr.msk.f32.gmra.mxu0 %vm304_vm1, %v41_v24  ;;  %4531 = vmatmul.mubr.msk.f32.gmra.mxu1 %vm304_vm1, %v41_v24  ;;  %v1373_v29 = vld [vmem:[#allocation2 + $0x3c8] sm:$0xff] }
  0x24   :  { %225 = vst.msk [vmem:[#allocation2 + $0x548] sm:$0xff] %vm54_vm0, %v4717_v3  ;;  %228 = vst.msk [vmem:[#allocation2 + $0x560] sm:$0xff] %vm54_vm0, %v4717_v3  ;;  %4537 = vmatprep.mubr.msk.f32.mxu0 %vm304_vm1, %v4997_v5  ;;  %4565 = vmatprep.mubr.msk.f32.mxu1 %vm304_vm1, %v4997_v5  ;;  %v1395_v32 = vmul.f32 %v4216_v27, %v1373_v29  ;;  %v2084_v33 = vmul.f32 %v4215_v26, %v1373_v29 }
  0x25   :  { %231 = vst.msk [vmem:[#allocation2 + $0x578] sm:$0xff] %vm54_vm0, %v4717_v3  ;;  %236 = vst.msk [vmem:[#allocation2 + $0x5a0] sm:$0xff] %vm54_vm0, %v4717_v3 }
  0x26   :  { %237 = vst.msk [vmem:[#allocation2 + $0x5a8] sm:$0xff] %vm54_vm0, %v4717_v3  ;;  %239 = vst.msk [vmem:[#allocation2 + $0x5b8] sm:$0xff] %vm54_vm0, %v4717_v3 }
  0x27   :  { %240 = vst.msk [vmem:[#allocation2 + $0x5c0] sm:$0xff] %vm54_vm0, %v4717_v3  ;;  %242 = vst.msk [vmem:[#allocation2 + $0x5d0] sm:$0xff] %vm54_vm0, %v4717_v3  ;;  %4538 = vmatmul.mubr.msk.f32.vlgmr.msra.gmra.mxu0 %vm304_vm1, %v5005_v6  ;;  %4566 = vmatmul.mubr.msk.f32.vlgmr.msra.gmra.mxu1 %vm304_vm1, %v5005_v6 }
  0x28   :  { %243 = vst.msk [vmem:[#allocation2 + $0x5d8] sm:$0xff] %vm54_vm0, %v4717_v3  ;;  %245 = vst.msk [vmem:[#allocation2 + $0x5e8] sm:$0xff] %vm54_vm0, %v4717_v3  ;;  %4540 = vmatprep.mubr.msk.f32.mxu0 %vm304_vm1, %v28_v9  ;;  %4568 = vmatprep.mubr.msk.f32.mxu1 %vm304_vm1, %v28_v9 }
  0x29   :  { %246 = vst.msk [vmem:[#allocation2 + $0x5f0] sm:$0xff] %vm54_vm0, %v4717_v3  ;;  %248 = vst.msk [vmem:[#allocation2 + $0x600] sm:$0xff] %vm54_vm0, %v4717_v3  ;;  %4590 = vmatpush3.msra.mxu0 %v53_v25  ;;  %4616 = vmatpush3.msra.mxu1 %v53_v25 }
  0x2a   :  { %249 = vst.msk [vmem:[#allocation2 + $0x608] sm:$0xff] %vm54_vm0, %v4717_v3  ;;  %251 = vst.msk [vmem:[#allocation2 + $0x618] sm:$0xff] %vm54_vm0, %v4717_v3  ;;  %4641 = vmatprep.subr.mxu0 %v53_v25  ;;  %4667 = vmatprep.subr.mxu1 %v53_v25 }
  0x2b   :  { %252 = vst.msk [vmem:[#allocation2 + $0x620] sm:$0xff] %vm54_vm0, %v4717_v3  ;;  %254 = vst.msk [vmem:[#allocation2 + $0x630] sm:$0xff] %vm54_vm0, %v4717_v3  ;;  %4541 = vmatmul.mubr.msk.f32.gmra.mxu0 %vm304_vm1, %v29_v10  ;;  %4569 = vmatmul.mubr.msk.f32.gmra.mxu1 %vm304_vm1, %v29_v10  ;;  %v4134_v10 = vld [vmem:[%s7080_s1 + $0x98] sm:$0xff] }
  0x2c   :  { %255 = vst.msk [vmem:[#allocation2 + $0x638] sm:$0xff] %vm54_vm0, %v4717_v3  ;;  %257 = vst.msk [vmem:[#allocation2 + $0x648] sm:$0xff] %vm54_vm0, %v4717_v3  ;;  %4543 = vmatprep.mubr.msk.f32.mxu0 %vm304_vm1, %v30_v11  ;;  %4571 = vmatprep.mubr.msk.f32.mxu1 %vm304_vm1, %v30_v11 }
  0x2d   :  { %258 = vst.msk [vmem:[#allocation2 + $0x650] sm:$0xff] %vm54_vm0, %v4717_v3  ;;  %260 = vst.msk [vmem:[#allocation2 + $0x660] sm:$0xff] %vm54_vm0, %v4717_v3  ;;  %v1334_v28 = vld [vmem:[#allocation2 + $0x5a7] sm:$0xff] }
  0x2e   :  { %261 = vst.msk [vmem:[#allocation2 + $0x668] sm:$0xff] %vm54_vm0, %v4717_v3  ;;  %266 = vst.msk [vmem:[#allocation2 + $0x690] sm:$0xff] %vm54_vm0, %v4717_v3  ;;  %v1427_v30 = vld [vmem:[#allocation2 + $0x5a8] sm:$0xff]  ;;  %v1356_v31 = vmul.f32 %v4215_v26, %v1334_v28 }
  0x2f   :  { %267 = vst.msk [vmem:[#allocation2 + $0x698] sm:$0xff] %vm54_vm0, %v4717_v3  ;;  %269 = vst.msk [vmem:[#allocation2 + $0x6a8] sm:$0xff] %vm54_vm0, %v4717_v3  ;;  %4544 = vmatmul.mubr.msk.f32.gmra.mxu0 %vm304_vm1, %v31_v14  ;;  %4572 = vmatmul.mubr.msk.f32.gmra.mxu1 %vm304_vm1, %v31_v14  ;;  %v2116_v34 = vmul.f32 %v4216_v27, %v1427_v30  ;;  %v1449_v41 = vmul.f32 %v4217_v35, %v1427_v30  ;;  %v4133_v27 = vld [vmem:[%s7080_s1 + $0x90] sm:$0xff] }
  0x30   :  { %270 = vst.msk [vmem:[#allocation2 + $0x6b0] sm:$0xff] %vm54_vm0, %v4717_v3  ;;  %272 = vst.msk [vmem:[#allocation2 + $0x6c0] sm:$0xff] %vm54_vm0, %v4717_v3  ;;  %4546 = vmatprep.mubr.msk.f32.mxu0 %vm304_vm1, %v32_v15  ;;  %4574 = vmatprep.mubr.msk.f32.mxu1 %vm304_vm1, %v32_v15  ;;  %v1411_v40 = vadd.f32 %v1395_v32, %v1356_v31 }
  0x31   :  { %273 = vst.msk [vmem:[#allocation2 + $0x6c8] sm:$0xff] %vm54_vm0, %v4717_v3  ;;  %275 = vst.msk [vmem:[#allocation2 + $0x6d8] sm:$0xff] %vm54_vm0, %v4717_v3  ;;  %v2132_v42 = vadd.f32 %v2116_v34, %v2084_v33 }
  0x32   :  { %276 = vst.msk [vmem:[#allocation2 + $0x6e0] sm:$0xff] %vm54_vm0, %v4717_v3  ;;  %278 = vst.msk [vmem:[#allocation2 + $0x6f0] sm:$0xff] %vm54_vm0, %v4717_v3  ;;  %v5233_v56 = vadd.f32 %v1449_v41, %v1411_v40 }
  0x33   :  { %279 = vst.msk [vmem:[#allocation2 + $0x6f8] sm:$0xff] %vm54_vm0, %v4717_v3  ;;  %281 = vst.msk [vmem:[#allocation2 + $0x708] sm:$0xff] %vm54_vm0, %v4717_v3  ;;  %4547 = vmatmul.mubr.msk.f32.gmra.mxu0 %vm304_vm1, %v33_v16  ;;  %4575 = vmatmul.mubr.msk.f32.gmra.mxu1 %vm304_vm1, %v33_v16 }
  0x34   :  { %282 = vst.msk [vmem:[#allocation2 + $0x710] sm:$0xff] %vm54_vm0, %v4717_v3  ;;  %284 = vst.msk [vmem:[#allocation2 + $0x720] sm:$0xff] %vm54_vm0, %v4717_v3  ;;  %4549 = vmatprep.mubr.msk.f32.mxu0 %vm304_vm1, %v34_v17  ;;  %4577 = vmatprep.mubr.msk.f32.mxu1 %vm304_vm1, %v34_v17 }
  0x35   :  { %285 = vst.msk [vmem:[#allocation2 + $0x728] sm:$0xff] %vm54_vm0, %v4717_v3  ;;  %287 = vst.msk [vmem:[#allocation2 + $0x738] sm:$0xff] %vm54_vm0, %v4717_v3 }
  0x36   :  { %288 = vst.msk [vmem:[#allocation2 + $0x740] sm:$0xff] %vm54_vm0, %v4717_v3  ;;  %290 = vst.msk [vmem:[#allocation2 + $0x750] sm:$0xff] %vm54_vm0, %v4717_v3 }
  0x37   :  { %291 = vst.msk [vmem:[#allocation2 + $0x758] sm:$0xff] %vm54_vm0, %v4717_v3  ;;  %4550 = vmatmul.mubr.msk.f32.gmra.mxu0 %vm304_vm1, %v35_v18  ;;  %4578 = vmatmul.mubr.msk.f32.gmra.mxu1 %vm304_vm1, %v35_v18 }
  0x38   :  { %4552 = vmatprep.mubr.msk.f32.mxu0 %vm304_vm1, %v36_v19  ;;  %4580 = vmatprep.mubr.msk.f32.mxu1 %vm304_vm1, %v36_v19  ;;  %61 = vst.msk [vmem:[#allocation2 + $0x28] sm:$0x1] %vm57_vm2, %v4717_v3  ;;  %178 = vst.msk [vmem:[#allocation2 + $0x3d0] sm:$0x1] %vm57_vm2, %v4717_v3 }
  0x39   :  { %181 = vst.msk [vmem:[#allocation2 + $0x3e8] sm:$0x1] %vm57_vm2, %v4717_v3  ;;  %64 = vst.msk [vmem:[#allocation2 + $0x40] sm:$0x1] %vm57_vm2, %v4717_v3 }
  0x3a   :  { %67 = vst.msk [vmem:[#allocation2 + $0x58] sm:$0x1] %vm57_vm2, %v4717_v3  ;;  %70 = vst.msk [vmem:[#allocation2 + $0x70] sm:$0x1] %vm57_vm2, %v4717_v3 }
  0x3b   :  { %4553 = vmatmul.mubr.msk.f32.gmra.mxu0 %vm304_vm1, %v37_v20  ;;  %4581 = vmatmul.mubr.msk.f32.gmra.mxu1 %vm304_vm1, %v37_v20  ;;  %73 = vst.msk [vmem:[#allocation2 + $0x88] sm:$0x1] %vm57_vm2, %v4717_v3  ;;  %76 = vst.msk [vmem:[#allocation2 + $0xa0] sm:$0x1] %vm57_vm2, %v4717_v3 }
  0x3c   :  { %4555 = vmatprep.mubr.msk.f32.mxu0 %vm304_vm1, %v38_v21  ;;  %4583 = vmatprep.mubr.msk.f32.mxu1 %vm304_vm1, %v38_v21  ;;  %79 = vst.msk [vmem:[#allocation2 + $0xb8] sm:$0x1] %vm57_vm2, %v4717_v3  ;;  %82 = vst.msk [vmem:[#allocation2 + $0xd0] sm:$0x1] %vm57_vm2, %v4717_v3  ;;  %v548_v21 = vld [vmem:[%s7080_s1 + $0x10] sm:$0xff] }
  0x3d   :  { %85 = vst.msk [vmem:[#allocation2 + $0xe8] sm:$0x1] %vm57_vm2, %v4717_v3  ;;  %91 = vst.msk [vmem:[#allocation2 + $0x118] sm:$0x1] %vm57_vm2, %v4717_v3 }
  0x3e   :  { %94 = vst.msk [vmem:[#allocation2 + $0x130] sm:$0x1] %vm57_vm2, %v4717_v3  ;;  %97 = vst.msk [vmem:[#allocation2 + $0x148] sm:$0x1] %vm57_vm2, %v4717_v3 }
  0x3f   :  { %4556 = vmatmul.mubr.msk.f32.gmra.mxu0 %vm304_vm1, %v39_v22  ;;  %4584 = vmatmul.mubr.msk.f32.gmra.mxu1 %vm304_vm1, %v39_v22  ;;  %100 = vst.msk [vmem:[#allocation2 + $0x160] sm:$0x1] %vm57_vm2, %v4717_v3  ;;  %103 = vst.msk [vmem:[#allocation2 + $0x178] sm:$0x1] %vm57_vm2, %v4717_v3  ;;  %v2148_v36 = vld [vmem:[#allocation2 + $0x3c9] sm:$0xff] }
  0x40   :  { %4558 = vmatprep.mubr.msk.f32.mxu0 %vm304_vm1, %v40_v23  ;;  %4586 = vmatprep.mubr.msk.f32.mxu1 %vm304_vm1, %v40_v23  ;;  %106 = vst.msk [vmem:[#allocation2 + $0x190] sm:$0x1] %vm57_vm2, %v4717_v3  ;;  %109 = vst.msk [vmem:[#allocation2 + $0x1a8] sm:$0x1] %vm57_vm2, %v4717_v3  ;;  %v2164_v43 = vmul.f32 %v4217_v35, %v2148_v36 }
  0x41   :  { %112 = vst.msk [vmem:[#allocation2 + $0x1c0] sm:$0x1] %vm57_vm2, %v4717_v3  ;;  %115 = vst.msk [vmem:[#allocation2 + $0x1d8] sm:$0x1] %vm57_vm2, %v4717_v3 }
  0x42   :  { %184 = vst.msk [vmem:[#allocation2 + $0x400] sm:$0x1] %vm57_vm2, %v4717_v3  ;;  %187 = vst.msk [vmem:[#allocation2 + $0x418] sm:$0x1] %vm57_vm2, %v4717_v3  ;;  %v5235_v57 = vadd.f32 %v2164_v43, %v2132_v42  ;;  %v551_v42 = vld [vmem:[%s7080_s1 + $0x28] sm:$0xff] }
  0x43   :  { %4559 = vmatmul.mubr.msk.f32.gmra.mxu0 %vm304_vm1, %v41_v24  ;;  %4587 = vmatmul.mubr.msk.f32.gmra.mxu1 %vm304_vm1, %v41_v24  ;;  %190 = vst.msk [vmem:[#allocation2 + $0x430] sm:$0x1] %vm57_vm2, %v4717_v3  ;;  %193 = vst.msk [vmem:[#allocation2 + $0x448] sm:$0x1] %vm57_vm2, %v4717_v3  ;;  %v4136_v43 = vld [vmem:[%s7080_s1 + $0xa8] sm:$0xff] }
  0x44   :  { %196 = vst.msk [vmem:[#allocation2 + $0x460] sm:$0x1] %vm57_vm2, %v4717_v3  ;;  %199 = vst.msk [vmem:[#allocation2 + $0x478] sm:$0x1] %vm57_vm2, %v4717_v3 }
  0x45   :  { %202 = vst.msk [vmem:[#allocation2 + $0x490] sm:$0x1] %vm57_vm2, %v4717_v3  ;;  %208 = vst.msk [vmem:[#allocation2 + $0x4c0] sm:$0x1] %vm57_vm2, %v4717_v3 }
  0x46   :  { %211 = vst.msk [vmem:[#allocation2 + $0x4d8] sm:$0x1] %vm57_vm2, %v4717_v3  ;;  %214 = vst.msk [vmem:[#allocation2 + $0x4f0] sm:$0x1] %vm57_vm2, %v4717_v3 }
  0x47   :  { %217 = vst.msk [vmem:[#allocation2 + $0x508] sm:$0x1] %vm57_vm2, %v4717_v3  ;;  %220 = vst.msk [vmem:[#allocation2 + $0x520] sm:$0x1] %vm57_vm2, %v4717_v3 }
  0x48   :  { %223 = vst.msk [vmem:[#allocation2 + $0x538] sm:$0x1] %vm57_vm2, %v4717_v3  ;;  %226 = vst.msk [vmem:[#allocation2 + $0x550] sm:$0x1] %vm57_vm2, %v4717_v3 }
  0x49   :  { %229 = vst.msk [vmem:[#allocation2 + $0x568] sm:$0x1] %vm57_vm2, %v4717_v3  ;;  %232 = vst.msk [vmem:[#allocation2 + $0x580] sm:$0x1] %vm57_vm2, %v4717_v3  ;;  %v549_v3 = vld [vmem:[%s7080_s1 + $0x18] sm:$0xff] }
  0xc7   :  { %v4483_v38 = vpop.f32.mrf.mxu0  ;;  %v4511_v39 = vpop.f32.mrf.mxu1 }
  0xc8   :  { %v425_v44 = vadd.f32 %v4483_v38, %v5221_v37  ;;  %v670_v45 = vadd.f32 %v4511_v39, %v5221_v37 }
  0xc9   :  { %v419_v48 = vpop.f32.mrf.mxu0  ;;  %v664_v49 = vpop.f32.mrf.mxu1 }
  0xca   :  { %vm499_vm3 = vcmp.gt.f32.partialorder %v425_v44, 0.0  ;;  %v515_v50 = vmul.f32 0.01, %v425_v44  ;;  %vm744_vm4 = vcmp.gt.f32.partialorder %v670_v45, 0.0  ;;  %v760_v51 = vmul.f32 0.01, %v670_v45 }
  0xcb   :  { %v420_v52 = vadd.f32 %v5221_v37, %v419_v48  ;;  %v665_v53 = vadd.f32 %v5221_v37, %v664_v49  ;;  %v4486_v54 = vpop.f32.mrf.mxu0  ;;  %v4514_v55 = vpop.f32.mrf.mxu1 }
  0xcc   :  { %v531_v58 = vsel %vm499_vm3, %v425_v44, %v515_v50  ;;  %v776_v59 = vsel %vm744_vm4, %v670_v45, %v760_v51  ;;  %v435_v60 = vadd.f32 %v4486_v54, %v5221_v37  ;;  %v680_v61 = vadd.f32 %v4514_v55, %v5221_v37  ;;  %v550_v44 = vld [vmem:[%s7080_s1 + $0x20] sm:$0xff] }
  0xcd   :  { %v563_v62 = vadd.f32 %v547_v46, %v531_v58  ;;  %v809_v63 = vadd.f32 %v4132_v47, %v776_v59  ;;  %vm498_vm5 = vcmp.gt.f32.partialorder %v420_v52, 0.0  ;;  %v514_v0 = vmul.f32 0.01, %v420_v52  ;;  %v429_v4 = vpop.f32.mrf.mxu0  ;;  %v674_v5 = vpop.f32.mrf.mxu1  ;;  %v4135_v51 = vld [vmem:[%s7080_s1 + $0xa0] sm:$0xff] }
  0xce   :  { %vm743_vm6 = vcmp.gt.f32.partialorder %v665_v53, 0.0  ;;  %v759_v6 = vmul.f32 0.01, %v665_v53  ;;  %vm501_vm7 = vcmp.gt.f32.partialorder %v435_v60, 0.0  ;;  %v517_v7 = vmul.f32 0.01, %v435_v60 }
  0xcf   :  { %580 = vst.msk [vmem:[#allocation2 + $0x38] sm:$0xff] %vm54_vm0, %v563_v62  ;;  %826 = vst.msk [vmem:[#allocation2 + $0x218] sm:$0xff] %vm54_vm0, %v809_v63  ;;  %v530_v8 = vsel %vm498_vm5, %v420_v52, %v514_v0  ;;  %vm746_vm8 = vcmp.gt.f32.partialorder %v680_v61, 0.0  ;;  %v762_v9 = vmul.f32 0.01, %v680_v61  ;;  %v430_v11 = vadd.f32 %v5221_v37, %v429_v4  ;;  %v4489_v12 = vpop.f32.mrf.mxu0  ;;  %v4517_v13 = vpop.f32.mrf.mxu1 }
  0xd0   :  { %v562_v14 = vadd.f32 %v546_v1, %v530_v8  ;;  %v775_v15 = vsel %vm743_vm6, %v665_v53, %v759_v6  ;;  %v533_v16 = vsel %vm501_vm7, %v435_v60, %v517_v7  ;;  %v675_v17 = vadd.f32 %v5221_v37, %v674_v5  ;;  %v553_v60 = vld [vmem:[%s7080_s1 + $0x38] sm:$0xff] }
  0xd1   :  { %v808_v18 = vadd.f32 %v4131_v2, %v775_v15  ;;  %v565_v19 = vadd.f32 %v549_v3, %v533_v16  ;;  %v778_v20 = vsel %vm746_vm8, %v680_v61, %v762_v9  ;;  %vm500_vm9 = vcmp.gt.f32.partialorder %v430_v11, 0.0  ;;  %v439_v22 = vpop.f32.mrf.mxu0  ;;  %v684_v23 = vpop.f32.mrf.mxu1  ;;  %v4138_v5 = vld [vmem:[%s7080_s1 + $0xb8] sm:$0xff]  ;;  %v552_v15 = vld [vmem:[%s7080_s1 + $0x30] sm:$0xff] }
  0xd2   :  { %579 = vst.msk [vmem:[#allocation2 + $0x20] sm:$0xff] %vm54_vm0, %v562_v14  ;;  %v811_v24 = vadd.f32 %v4134_v10, %v778_v20  ;;  %v516_v25 = vmul.f32 0.01, %v430_v11  ;;  %vm745_vm10 = vcmp.gt.f32.partialorder %v675_v17, 0.0  ;;  %v761_v26 = vmul.f32 0.01, %v675_v17 }
  0xd3   :  { %825 = vst.msk [vmem:[#allocation2 + $0x200] sm:$0xff] %vm54_vm0, %v808_v18  ;;  %582 = vst.msk [vmem:[#allocation2 + $0x68] sm:$0xff] %vm54_vm0, %v565_v19  ;;  %v445_v28 = vadd.f32 %v4489_v12, %v5221_v37  ;;  %v690_v29 = vadd.f32 %v4517_v13, %v5221_v37  ;;  %v440_v30 = vadd.f32 %v5221_v37, %v439_v22  ;;  %v4492_v32 = vpop.f32.mrf.mxu0  ;;  %v4520_v33 = vpop.f32.mrf.mxu1  ;;  %v4137_v19 = vld [vmem:[%s7080_s1 + $0xb0] sm:$0xff]  ;;  %v555_v20 = vld [vmem:[%s7080_s1 + $0x48] sm:$0xff] }
  0xd4   :  { %v685_v31 = vadd.f32 %v5221_v37, %v684_v23  ;;  %828 = vst.msk [vmem:[#allocation2 + $0x248] sm:$0xff] %vm54_vm0, %v811_v24  ;;  %v532_v34 = vsel %vm500_vm9, %v430_v11, %v516_v25  ;;  %v777_v35 = vsel %vm745_vm10, %v675_v17, %v761_v26  ;;  %v455_v36 = vadd.f32 %v4492_v32, %v5221_v37  ;;  %v4140_v26 = vld [vmem:[%s7080_s1 + $0xc8] sm:$0xff] }
  0xd5   :  { %v700_v38 = vadd.f32 %v4520_v33, %v5221_v37  ;;  %v564_v39 = vadd.f32 %v548_v21, %v532_v34  ;;  %v810_v40 = vadd.f32 %v4133_v27, %v777_v35  ;;  %vm503_vm11 = vcmp.gt.f32.partialorder %v445_v28, 0.0  ;;  %v449_v45 = vpop.f32.mrf.mxu0  ;;  %v694_v46 = vpop.f32.mrf.mxu1 }
  0xd6   :  { %v519_v41 = vmul.f32 0.01, %v445_v28  ;;  %vm748_vm12 = vcmp.gt.f32.partialorder %v690_v29, 0.0  ;;  %v764_v47 = vmul.f32 0.01, %v690_v29  ;;  %vm502_vm13 = vcmp.gt.f32.partialorder %v440_v30, 0.0 }
  0xd7   :  { %v518_v48 = vmul.f32 0.01, %v440_v30  ;;  %581 = vst.msk [vmem:[#allocation2 + $0x50] sm:$0xff] %vm54_vm0, %v564_v39  ;;  %827 = vst.msk [vmem:[#allocation2 + $0x230] sm:$0xff] %vm54_vm0, %v810_v40  ;;  %vm747_vm14 = vcmp.gt.f32.partialorder %v685_v31, 0.0  ;;  %vm505_vm15 = vcmp.gt.f32.partialorder %v455_v36, 0.0  ;;  %v4495_v52 = vpop.f32.mrf.mxu0  ;;  %v4523_v53 = vpop.f32.mrf.mxu1  ;;  %v450_v6 = vadd.f32 %v5221_v37, %v449_v45 }
  0xd8   :  { %v535_v49 = vsel %vm503_vm11, %v445_v28, %v519_v41  ;;  %v763_v50 = vmul.f32 0.01, %v685_v31  ;;  %v780_v55 = vsel %vm748_vm12, %v690_v29, %v764_v47  ;;  %v521_v59 = vmul.f32 0.01, %v455_v36 }
  0xd9   :  { %v567_v54 = vadd.f32 %v551_v42, %v535_v49  ;;  %v534_v58 = vsel %vm502_vm13, %v440_v30, %v518_v48  ;;  %v813_v61 = vadd.f32 %v4136_v43, %v780_v55  ;;  %vm750_vm1 = vcmp.gt.f32.partialorder %v700_v38, 0.0  ;;  %v459_v0 = vpop.f32.mrf.mxu0  ;;  %v704_v1 = vpop.f32.mrf.mxu1  ;;  %v554_v30 = vld [vmem:[%s7080_s1 + $0x40] sm:$0xff]  ;;  %v557_v49 = vld [vmem:[%s7080_s1 + $0x58] sm:$0xff] }
  0xda   :  { %v566_v62 = vadd.f32 %v550_v44, %v534_v58  ;;  %v779_v63 = vsel %vm747_vm14, %v685_v31, %v763_v50  ;;  %v537_v3 = vsel %vm505_vm15, %v455_v36, %v521_v59  ;;  %v766_v4 = vmul.f32 0.01, %v700_v38  ;;  %v4142_v58 = vld [vmem:[%s7080_s1 + $0xd8] sm:$0xff] }
  0xdb   :  { %584 = vst.msk [vmem:[#allocation2 + $0x98] sm:$0xff] %vm54_vm0, %v567_v54  ;;  %v812_v2 = vadd.f32 %v4135_v51, %v779_v63  ;;  %830 = vst.msk [vmem:[#allocation2 + $0x278] sm:$0xff] %vm54_vm0, %v813_v61  ;;  %v569_v7 = vadd.f32 %v553_v60, %v537_v3  ;;  %v695_v8 = vadd.f32 %v5221_v37, %v694_v46  ;;  %v4498_v11 = vpop.f32.mrf.mxu0  ;;  %v4526_v12 = vpop.f32.mrf.mxu1  ;;  %vm504_vm2 = vcmp.gt.f32.partialorder %v450_v6, 0.0  ;;  %v4139_v46 = vld [vmem:[%s7080_s1 + $0xc0] sm:$0xff]  ;;  %v556_v63 = vld [vmem:[%s7080_s1 + $0x50] sm:$0xff] }
  0xdc   :  { %583 = vst.msk [vmem:[#allocation2 + $0x80] sm:$0xff] %vm54_vm0, %v566_v62  ;;  %v465_v9 = vadd.f32 %v4495_v52, %v5221_v37  ;;  %v710_v10 = vadd.f32 %v4523_v53, %v5221_v37  ;;  %v782_v13 = vsel %vm750_vm1, %v700_v38, %v766_v4  ;;  %v520_v14 = vmul.f32 0.01, %v450_v6 }
  0xdd   :  { %829 = vst.msk [vmem:[#allocation2 + $0x260] sm:$0xff] %vm54_vm0, %v812_v2  ;;  %v460_v16 = vadd.f32 %v5221_v37, %v459_v0  ;;  %586 = vst.msk [vmem:[#allocation2 + $0xc8] sm:$0xff] %vm54_vm0, %v569_v7  ;;  %v815_v17 = vadd.f32 %v4138_v5, %v782_v13  ;;  %vm749_vm3 = vcmp.gt.f32.partialorder %v695_v8, 0.0  ;;  %v765_v18 = vmul.f32 0.01, %v695_v8  ;;  %v469_v21 = vpop.f32.mrf.mxu0  ;;  %v714_v22 = vpop.f32.mrf.mxu1  ;;  %v4141_v5 = vld [vmem:[%s7080_s1 + $0xd0] sm:$0xff] }
  0xde   :  { %vm507_vm4 = vcmp.gt.f32.partialorder %v465_v9, 0.0  ;;  %v536_v23 = vsel %vm504_vm2, %v450_v6, %v520_v14  ;;  %v523_v24 = vmul.f32 0.01, %v465_v9  ;;  %vm752_vm5 = vcmp.gt.f32.partialorder %v710_v10, 0.0 }
  0xdf   :  { %v768_v25 = vmul.f32 0.01, %v710_v10  ;;  %832 = vst.msk [vmem:[#allocation2 + $0x2a8] sm:$0xff] %vm54_vm0, %v815_v17  ;;  %v568_v27 = vadd.f32 %v552_v15, %v536_v23  ;;  %v781_v28 = vsel %vm749_vm3, %v695_v8, %v765_v18  ;;  %vm506_vm6 = vcmp.gt.f32.partialorder %v460_v16, 0.0  ;;  %v4501_v31 = vpop.f32.mrf.mxu0  ;;  %v4529_v32 = vpop.f32.mrf.mxu1  ;;  %v4144_v18 = vld [vmem:[%s7080_s1 + $0xe8] sm:$0xff] }
  0xe0   :  { %v522_v29 = vmul.f32 0.01, %v460_v16  ;;  %v814_v33 = vadd.f32 %v4137_v19, %v781_v28  ;;  %v539_v34 = vsel %vm507_vm4, %v465_v9, %v523_v24  ;;  %v705_v36 = vadd.f32 %v5221_v37, %v704_v1  ;;  %v559_v9 = vld [vmem:[%s7080_s1 + $0x68] sm:$0xff] }
  0xe1   :  { %v784_v35 = vsel %vm752_vm5, %v710_v10, %v768_v25  ;;  %585 = vst.msk [vmem:[#allocation2 + $0xb0] sm:$0xff] %vm54_vm0, %v568_v27  ;;  %v571_v38 = vadd.f32 %v555_v20, %v539_v34  ;;  %v475_v41 = vadd.f32 %v4498_v11, %v5221_v37  ;;  %v479_v42 = vpop.f32.mrf.mxu0  ;;  %v724_v43 = vpop.f32.mrf.mxu1  ;;  %v720_v47 = vadd.f32 %v4526_v12, %v5221_v37  ;;  %v558_v25 = vld [vmem:[%s7080_s1 + $0x60] sm:$0xff] }
  0xe2   :  { %v817_v39 = vadd.f32 %v4140_v26, %v784_v35  ;;  %v538_v40 = vsel %vm506_vm6, %v460_v16, %v522_v29  ;;  %831 = vst.msk [vmem:[#allocation2 + $0x290] sm:$0xff] %vm54_vm0, %v814_v33  ;;  %vm751_vm7 = vcmp.gt.f32.partialorder %v705_v36, 0.0  ;;  %v767_v45 = vmul.f32 0.01, %v705_v36  ;;  %v4143_v26 = vld [vmem:[%s7080_s1 + $0xe0] sm:$0xff]  ;;  %v561_v33 = vld [vmem:[%s7080_s1 + $0x78] sm:$0xff] }
  0xe3   :  { %v570_v44 = vadd.f32 %v554_v30, %v538_v40  ;;  %588 = vst.msk [vmem:[#allocation2 + $0x128] sm:$0xff] %vm54_vm0, %v571_v38  ;;  %vm509_vm8 = vcmp.gt.f32.partialorder %v475_v41, 0.0  ;;  %v525_v48 = vmul.f32 0.01, %v475_v41  ;;  %v470_v50 = vadd.f32 %v5221_v37, %v469_v21  ;;  %v4504_v52 = vpop.f32.mrf.mxu0  ;;  %v4532_v53 = vpop.f32.mrf.mxu1 }
  0xe4   :  { %834 = vst.msk [vmem:[#allocation2 + $0x308] sm:$0xff] %vm54_vm0, %v817_v39  ;;  %v715_v51 = vadd.f32 %v5221_v37, %v714_v22  ;;  %v783_v54 = vsel %vm751_vm7, %v705_v36, %v767_v45  ;;  %vm754_vm9 = vcmp.gt.f32.partialorder %v720_v47, 0.0  ;;  %v770_v55 = vmul.f32 0.01, %v720_v47 }
  0xe5   :  { %587 = vst.msk [vmem:[#allocation2 + $0x110] sm:$0xff] %vm54_vm0, %v570_v44  ;;  %v485_v59 = vadd.f32 %v4501_v31, %v5221_v37  ;;  %v816_v60 = vadd.f32 %v4139_v46, %v783_v54  ;;  %v541_v61 = vsel %vm509_vm8, %v475_v41, %v525_v48  ;;  %vm508_vm10 = vcmp.gt.f32.partialorder %v470_v50, 0.0  ;;  %v489_v0 = vpop.f32.mrf.mxu0  ;;  %v734_v1 = vpop.f32.mrf.mxu1  ;;  %v4146_v46 = vld [vmem:[%s7080_s1 + $0xf8] sm:$0xff]  ;;  %v4145_v54 = vld [vmem:[%s7080_s1 + $0xf0] sm:$0xff] }
  0xe6   :  { %v524_v62 = vmul.f32 0.01, %v470_v50  ;;  %v573_v2 = vadd.f32 %v557_v49, %v541_v61  ;;  %v786_v3 = vsel %vm754_vm9, %v720_v47, %v770_v55  ;;  %vm753_vm11 = vcmp.gt.f32.partialorder %v715_v51, 0.0 }
  0xe7   :  { %v769_v4 = vmul.f32 0.01, %v715_v51  ;;  %833 = vst.msk [vmem:[#allocation2 + $0x2f0] sm:$0xff] %vm54_vm0, %v816_v60  ;;  %v819_v6 = vadd.f32 %v4142_v58, %v786_v3  ;;  %vm511_vm12 = vcmp.gt.f32.partialorder %v485_v59, 0.0  ;;  %v527_v8 = vmul.f32 0.01, %v485_v59  ;;  %v4539_v10 = vpop.f32.mrf.mxu0  ;;  %v4567_v11 = vpop.f32.mrf.mxu1 }
  0xe8   :  { %v540_v7 = vsel %vm508_vm10, %v470_v50, %v524_v62  ;;  %590 = vst.msk [vmem:[#allocation2 + $0x158] sm:$0xff] %vm54_vm0, %v573_v2  ;;  %v730_v14 = vadd.f32 %v4529_v32, %v5221_v37  ;;  %v480_v15 = vadd.f32 %v5221_v37, %v479_v42  ;;  %v725_v19 = vadd.f32 %v5221_v37, %v724_v43  ;;  %v560_v50 = vld [vmem:[%s7080_s1 + $0x70] sm:$0xff] }
  0xe9   :  { %v572_v12 = vadd.f32 %v556_v63, %v540_v7  ;;  %v785_v13 = vsel %vm753_vm11, %v715_v51, %v769_v4  ;;  %836 = vst.msk [vmem:[#allocation2 + $0x338] sm:$0xff] %vm54_vm0, %v819_v6  ;;  %v543_v17 = vsel %vm511_vm12, %v485_v59, %v527_v8  ;;  %v495_v20 = vadd.f32 %v4504_v52, %v5221_v37  ;;  %v910_v21 = vpop.f32.mrf.mxu0  ;;  %v1156_v22 = vpop.f32.mrf.mxu1  ;;  %v4166_v4 = vld [vmem:[%s7080_s1 + $0x108] sm:$0xff]  ;;  %v4165_v6 = vld [vmem:[%s7080_s1 + $0x100] sm:$0xff] }
  0xea   :  { %v818_v16 = vadd.f32 %v4141_v5, %v785_v13  ;;  %v575_v23 = vadd.f32 %v559_v9, %v543_v17  ;;  %vm756_vm13 = vcmp.gt.f32.partialorder %v730_v14, 0.0  ;;  %v772_v24 = vmul.f32 0.01, %v730_v14  ;;  %v4200_v5 = vld [vmem:[%s7080_s1 + $0x188] sm:$0xff] }
  0xeb   :  { %589 = vst.msk [vmem:[#allocation2 + $0x140] sm:$0xff] %vm54_vm0, %v572_v12  ;;  %vm510_vm14 = vcmp.gt.f32.partialorder %v480_v15, 0.0  ;;  %v526_v27 = vmul.f32 0.01, %v480_v15  ;;  %vm755_vm15 = vcmp.gt.f32.partialorder %v725_v19, 0.0  ;;  %vm513_vm1 = vcmp.gt.f32.partialorder %v495_v20, 0.0  ;;  %v5368_v29 = vpop.f32.mrf.mxu0  ;;  %v5370_v30 = vpop.f32.mrf.mxu1 }
  0xec   :  { %835 = vst.msk [vmem:[#allocation2 + $0x320] sm:$0xff] %vm54_vm0, %v818_v16  ;;  %v771_v28 = vmul.f32 0.01, %v725_v19  ;;  %592 = vst.msk [vmem:[#allocation2 + $0x188] sm:$0xff] %vm54_vm0, %v575_v23  ;;  %v788_v31 = vsel %vm756_vm13, %v730_v14, %v772_v24  ;;  %v529_v32 = vmul.f32 0.01, %v495_v20  ;;  %v740_v34 = vadd.f32 %v4532_v53, %v5221_v37 }
  0xed   :  { %v490_v35 = vadd.f32 %v5221_v37, %v489_v0  ;;  %v821_v36 = vadd.f32 %v4144_v18, %v788_v31  ;;  %v542_v38 = vsel %vm510_vm14, %v480_v15, %v526_v27  ;;  %v735_v40 = vadd.f32 %v5221_v37, %v734_v1  ;;  %v5380_v41 = vpop.f32.mrf.mxu0  ;;  %v5382_v42 = vpop.f32.mrf.mxu1 }
  0xee   :  { %v787_v39 = vsel %vm755_vm15, %v725_v19, %v771_v28  ;;  %v574_v43 = vadd.f32 %v558_v25, %v542_v38  ;;  %v545_v45 = vsel %vm513_vm1, %v495_v20, %v529_v32  ;;  %vm758_vm2 = vcmp.gt.f32.partialorder %v740_v34, 0.0  ;;  %v4168_v28 = vld [vmem:[%s7080_s1 + $0x118] sm:$0xff] }
  0xef   :  { %v820_v44 = vadd.f32 %v4143_v26, %v787_v39  ;;  %838 = vst.msk [vmem:[#allocation2 + $0x368] sm:$0xff] %vm54_vm0, %v821_v36  ;;  %v577_v47 = vadd.f32 %v561_v33, %v545_v45  ;;  %v774_v48 = vmul.f32 0.01, %v740_v34  ;;  %vm512_vm3 = vcmp.gt.f32.partialorder %v490_v35, 0.0  ;;  %v5392_v51 = vpop.f32.mrf.mxu0  ;;  %v5394_v52 = vpop.f32.mrf.mxu1 }
  0xf0   :  { %v528_v49 = vmul.f32 0.01, %v490_v35  ;;  %591 = vst.msk [vmem:[#allocation2 + $0x170] sm:$0xff] %vm54_vm0, %v574_v43  ;;  %vm757_vm4 = vcmp.gt.f32.partialorder %v735_v40, 0.0  ;;  %v773_v53 = vmul.f32 0.01, %v735_v40  ;;  %v916_v55 = vadd.f32 %v4539_v10, %v5221_v37 }
  0xf1   :  { %837 = vst.msk [vmem:[#allocation2 + $0x350] sm:$0xff] %vm54_vm0, %v820_v44  ;;  %v1162_v58 = vadd.f32 %v4567_v11, %v5221_v37  ;;  %594 = vst.msk [vmem:[#allocation2 + $0x1b8] sm:$0xff] %vm54_vm0, %v577_v47  ;;  %v790_v59 = vsel %vm758_vm2, %v740_v34, %v774_v48  ;;  %v911_v61 = vadd.f32 %v5221_v37, %v910_v21  ;;  %v930_v63 = vpop.f32.mrf.mxu0  ;;  %v5407_v0 = vpop.f32.mrf.mxu1  ;;  %v4199_v10 = vld [vmem:[%s7080_s1 + $0x180] sm:$0xff]  ;;  %v4167_v43 = vld [vmem:[%s7080_s1 + $0x110] sm:$0xff] }
  0xf2   :  { %v544_v60 = vsel %vm512_vm3, %v490_v35, %v528_v49  ;;  %v1157_v62 = vadd.f32 %v5221_v37, %v1156_v22  ;;  %v823_v1 = vadd.f32 %v4146_v46, %v790_v59  ;;  %v789_v3 = vsel %vm757_vm4, %v735_v40, %v773_v53  ;;  %v4201_v46 = vld [vmem:[%s7080_s1 + $0x190] sm:$0xff]  ;;  %v4170_v47 = vld [vmem:[%s7080_s1 + $0x128] sm:$0xff]  ;;  %v4169_v59 = vld [vmem:[%s7080_s1 + $0x120] sm:$0xff] }
  0xf3   :  { %v576_v2 = vadd.f32 %v560_v50, %v544_v60  ;;  %vm990_vm5 = vcmp.gt.f32.partialorder %v916_v55, 0.0  ;;  %v822_v7 = vadd.f32 %v4145_v54, %v789_v3  ;;  %v1006_v8 = vmul.f32 0.01, %v916_v55  ;;  %v5421_v11 = vpop.f32.mrf.mxu0  ;;  %v5423_v12 = vpop.f32.mrf.mxu1 }
  0xf4   :  { %vm1236_vm6 = vcmp.gt.f32.partialorder %v1162_v58, 0.0  ;;  %v1252_v9 = vmul.f32 0.01, %v1162_v58  ;;  %840 = vst.msk [vmem:[#allocation2 + $0x398] sm:$0xff] %vm54_vm0, %v823_v1  ;;  %vm989_vm7 = vcmp.gt.f32.partialorder %v911_v61, 0.0  ;;  %vm1235_vm8 = vcmp.gt.f32.partialorder %v1157_v62, 0.0 }
  0xf5   :  { %593 = vst.msk [vmem:[#allocation2 + $0x1a0] sm:$0xff] %vm54_vm0, %v576_v2  ;;  %v1005_v13 = vmul.f32 0.01, %v911_v61  ;;  %v1251_v14 = vmul.f32 0.01, %v1157_v62  ;;  %839 = vst.msk [vmem:[#allocation2 + $0x380] sm:$0xff] %vm54_vm0, %v822_v7  ;;  %v1022_v15 = vsel %vm990_vm5, %v916_v55, %v1006_v8  ;;  %v926_v17 = vadd.f32 %v5368_v29, %v5221_v37  ;;  %v5433_v19 = vpop.f32.mrf.mxu0  ;;  %v5435_v20 = vpop.f32.mrf.mxu1 }
  0xf6   :  { %v1268_v16 = vsel %vm1236_vm6, %v1162_v58, %v1252_v9  ;;  %v1172_v18 = vadd.f32 %v5370_v30, %v5221_v37  ;;  %v1055_v21 = vadd.f32 %v4166_v4, %v1022_v15  ;;  %v4202_v30 = vld [vmem:[%s7080_s1 + $0x198] sm:$0xff]  ;;  %v921_v31 = vadd.f32 %v5221_v37, %v5380_v41  ;;  %v4203_v7 = vld [vmem:[%s7080_s1 + $0x1a0] sm:$0xff] }
  0xf7   :  { %v1301_v22 = vadd.f32 %v4200_v5, %v1268_v16  ;;  %v1021_v23 = vsel %vm989_vm7, %v911_v61, %v1005_v13  ;;  %v1267_v24 = vsel %vm1235_vm8, %v1157_v62, %v1251_v14  ;;  %vm992_vm9 = vcmp.gt.f32.partialorder %v926_v17, 0.0  ;;  %v4551_v33 = vpop.f32.mrf.mxu0  ;;  %v5449_v34 = vpop.f32.mrf.mxu1  ;;  %v4206_v16 = vld [vmem:[%s7080_s1 + $0x1b8] sm:$0xff] }
  0xf8   :  { %v1054_v25 = vadd.f32 %v4165_v6, %v1021_v23  ;;  %v1300_v26 = vadd.f32 %v4199_v10, %v1267_v24  ;;  %v1008_v27 = vmul.f32 0.01, %v926_v17  ;;  %1072 = vst.msk [vmem:[#allocation2 + $0x3f8] sm:$0xff] %vm54_vm0, %v1055_v21  ;;  %vm1238_vm10 = vcmp.gt.f32.partialorder %v1172_v18, 0.0 }
  0xf9   :  { %1318 = vst.msk [vmem:[#allocation2 + $0x5d8] sm:$0xff] %vm54_vm0, %v1301_v22  ;;  %v1254_v29 = vmul.f32 0.01, %v1172_v18  ;;  %v1167_v32 = vadd.f32 %v5221_v37, %v5382_v42  ;;  %v936_v36 = vadd.f32 %v5392_v51, %v5221_v37  ;;  %v1182_v38 = vadd.f32 %v5394_v52, %v5221_v37  ;;  %v4204_v51 = vld [vmem:[%s7080_s1 + $0x1a8] sm:$0xff]  ;;  %v950_v52 = vpop.f32.mrf.mxu0  ;;  %v5471_v53 = vpop.f32.mrf.mxu1 }
  0xfa   :  { %1071 = vst.msk [vmem:[#allocation2 + $0x3e0] sm:$0xff] %vm54_vm0, %v1054_v25  ;;  %1317 = vst.msk [vmem:[#allocation2 + $0x5c0] sm:$0xff] %vm54_vm0, %v1300_v26  ;;  %v1024_v35 = vsel %vm992_vm9, %v926_v17, %v1008_v27  ;;  %v931_v39 = vadd.f32 %v5221_v37, %v930_v63  ;;  %vm991_vm11 = vcmp.gt.f32.partialorder %v921_v31, 0.0  ;;  %v1007_v42 = vmul.f32 0.01, %v921_v31  ;;  %v4205_v25 = vld [vmem:[%s7080_s1 + $0x1b0] sm:$0xff] }
  0xfb   :  { %v1057_v40 = vadd.f32 %v4168_v28, %v1024_v35  ;;  %v1270_v41 = vsel %vm1238_vm10, %v1172_v18, %v1254_v29  ;;  %vm1237_vm12 = vcmp.gt.f32.partialorder %v1167_v32, 0.0  ;;  %v1253_v45 = vmul.f32 0.01, %v1167_v32  ;;  %v4554_v8 = vpop.f32.mrf.mxu0  ;;  %v4582_v9 = vpop.f32.mrf.mxu1 }
  0xfc   :  { %v1303_v44 = vadd.f32 %v4202_v30, %v1270_v41  ;;  %vm994_vm13 = vcmp.gt.f32.partialorder %v936_v36, 0.0  ;;  %v1023_v48 = vsel %vm991_vm11, %v921_v31, %v1007_v42  ;;  %v1010_v49 = vmul.f32 0.01, %v936_v36  ;;  %v4174_v31 = vld [vmem:[%s7080_s1 + $0x148] sm:$0xff] }
  0xfd   :  { %1074 = vst.msk [vmem:[#allocation2 + $0x428] sm:$0xff] %vm54_vm0, %v1057_v40  ;;  %vm1240_vm14 = vcmp.gt.f32.partialorder %v1182_v38, 0.0  ;;  %v1256_v50 = vmul.f32 0.01, %v1182_v38  ;;  %v1056_v54 = vadd.f32 %v4167_v43, %v1023_v48  ;;  %v1269_v55 = vsel %vm1237_vm12, %v1167_v32, %v1253_v45  ;;  %v960_v26 = vpop.f32.mrf.mxu0  ;;  %v1206_v27 = vpop.f32.mrf.mxu1  ;;  %v4208_v40 = vld [vmem:[%s7080_s1 + $0x1c8] sm:$0xff]  ;;  %v4207_v45 = vld [vmem:[%s7080_s1 + $0x1c0] sm:$0xff] }
  0xfe   :  { %1320 = vst.msk [vmem:[#allocation2 + $0x608] sm:$0xff] %vm54_vm0, %v1303_v44  ;;  %vm993_vm15 = vcmp.gt.f32.partialorder %v931_v39, 0.0  ;;  %v1009_v58 = vmul.f32 0.01, %v931_v39  ;;  %v1302_v60 = vadd.f32 %v4201_v46, %v1269_v55  ;;  %v1026_v61 = vsel %vm994_vm13, %v936_v36, %v1010_v49  ;;  %v4173_v44 = vld [vmem:[%s7080_s1 + $0x140] sm:$0xff] }
  0xff   :  { %v1272_v62 = vsel %vm1240_vm14, %v1182_v38, %v1256_v50  ;;  %v1177_v63 = vadd.f32 %v5221_v37, %v5407_v0  ;;  %1073 = vst.msk [vmem:[#allocation2 + $0x410] sm:$0xff] %vm54_vm0, %v1056_v54  ;;  %v1059_v1 = vadd.f32 %v4170_v47, %v1026_v61  ;;  %v946_v4 = vadd.f32 %v5421_v11, %v5221_v37  ;;  %v4172_v11 = vld [vmem:[%s7080_s1 + $0x138] sm:$0xff]  ;;  %v4557_v46 = vpop.f32.mrf.mxu0  ;;  %v4585_v47 = vpop.f32.mrf.mxu1 }
 0x100   :  { %v1305_v2 = vadd.f32 %v4204_v51, %v1272_v62  ;;  %v1025_v3 = vsel %vm993_vm15, %v931_v39, %v1009_v58  ;;  %1319 = vst.msk [vmem:[#allocation2 + $0x5f0] sm:$0xff] %vm54_vm0, %v1302_v60  ;;  %v1192_v0 = vadd.f32 %v5423_v12, %v5221_v37  ;;  %v941_v13 = vadd.f32 %v5221_v37, %v5433_v19  ;;  %v4171_v19 = vld [vmem:[%s7080_s1 + $0x130] sm:$0xff] }
 0x101   :  { %v1058_v5 = vadd.f32 %v4169_v59, %v1025_v3  ;;  %vm1239_vm1 = vcmp.gt.f32.partialorder %v1177_v63, 0.0  ;;  %v1255_v6 = vmul.f32 0.01, %v1177_v63  ;;  %1076 = vst.msk [vmem:[#allocation2 + $0x458] sm:$0xff] %vm54_vm0, %v1059_v1  ;;  %vm996_vm2 = vcmp.gt.f32.partialorder %v946_v4, 0.0  ;;  %v4210_v1 = vld [vmem:[%s7080_s1 + $0x1d8] sm:$0xff]  ;;  %v1216_v3 = vpop.f32.mrf.mxu1 }
 0x102   :  { %1322 = vst.msk [vmem:[#allocation2 + $0x638] sm:$0xff] %vm54_vm0, %v1305_v2  ;;  %v1012_v10 = vmul.f32 0.01, %v946_v4  ;;  %v1187_v14 = vadd.f32 %v5221_v37, %v5435_v20  ;;  %vm1242_vm3 = vcmp.gt.f32.partialorder %v1192_v0, 0.0  ;;  %v1258_v15 = vmul.f32 0.01, %v1192_v0  ;;  %v970_v2 = vpop.f32.mrf.mxu0 }
 0x103   :  { %1075 = vst.msk [vmem:[#allocation2 + $0x440] sm:$0xff] %vm54_vm0, %v1058_v5  ;;  %v1271_v12 = vsel %vm1239_vm1, %v1177_v63, %v1255_v6  ;;  %v956_v17 = vadd.f32 %v4551_v33, %v5221_v37  ;;  %vm995_vm4 = vcmp.gt.f32.partialorder %v941_v13, 0.0  ;;  %v1011_v22 = vmul.f32 0.01, %v941_v13 }
 0x104   :  { %v1304_v18 = vadd.f32 %v4203_v7, %v1271_v12  ;;  %v1028_v21 = vsel %vm996_vm2, %v946_v4, %v1012_v10  ;;  %v1274_v23 = vsel %vm1242_vm3, %v1192_v0, %v1258_v15  ;;  %vm1241_vm5 = vcmp.gt.f32.partialorder %v1187_v14, 0.0  ;;  %v4175_v7 = vld [vmem:[%s7080_s1 + $0x150] sm:$0xff]  ;;  %v4212_v12 = vld [vmem:[%s7080_s1 + $0x1e8] sm:$0xff] }
 0x105   :  { %v1061_v20 = vadd.f32 %v4172_v11, %v1028_v21  ;;  %v1257_v24 = vmul.f32 0.01, %v1187_v14  ;;  %v1307_v28 = vadd.f32 %v4206_v16, %v1274_v23  ;;  %v1027_v29 = vsel %vm995_vm4, %v941_v13, %v1011_v22  ;;  %v4177_v22 = vld [vmem:[%s7080_s1 + $0x160] sm:$0xff] }
 0x106   :  { %1321 = vst.msk [vmem:[#allocation2 + $0x620] sm:$0xff] %vm54_vm0, %v1304_v18  ;;  %vm998_vm6 = vcmp.gt.f32.partialorder %v956_v17, 0.0  ;;  %v1014_v30 = vmul.f32 0.01, %v956_v17  ;;  %v1060_v32 = vadd.f32 %v4171_v19, %v1027_v29  ;;  %v1202_v35 = vadd.f32 %v5449_v34, %v5221_v37  ;;  %v4211_v19 = vld [vmem:[%s7080_s1 + $0x1e0] sm:$0xff] }
 0x107   :  { %1078 = vst.msk [vmem:[#allocation2 + $0x488] sm:$0xff] %vm54_vm0, %v1061_v20  ;;  %v1273_v33 = vsel %vm1241_vm5, %v1187_v14, %v1257_v24  ;;  %v951_v36 = vadd.f32 %v5221_v37, %v950_v52  ;;  %1324 = vst.msk [vmem:[#allocation2 + $0x668] sm:$0xff] %vm54_vm0, %v1307_v28  ;;  %v1197_v41 = vadd.f32 %v5221_v37, %v5471_v53  ;;  %v4176_v52 = vld [vmem:[%s7080_s1 + $0x158] sm:$0xff]  ;;  %v4178_v14 = vld [vmem:[%s7080_s1 + $0x168] sm:$0xff] }
 0x108   :  { %v1306_v38 = vadd.f32 %v4205_v25, %v1273_v33  ;;  %v1030_v39 = vsel %vm998_vm6, %v956_v17, %v1014_v30  ;;  %v966_v42 = vadd.f32 %v4554_v8, %v5221_v37  ;;  %1077 = vst.msk [vmem:[#allocation2 + $0x470] sm:$0xff] %vm54_vm0, %v1060_v32  ;;  %vm1244_vm7 = vcmp.gt.f32.partialorder %v1202_v35, 0.0  ;;  %v4209_v8 = vld [vmem:[%s7080_s1 + $0x1d0] sm:$0xff]  ;;  %v5573_v20 = vld [vmem:[%s7078_s4 + $0x3] ss:$0 sm:$0xff]  ;;  %v4588_v32 = vpop.f32.mrf.mxu1 }
 0x109   :  { %v1063_v43 = vadd.f32 %v4174_v31, %v1030_v39  ;;  %v1260_v34 = vmul.f32 0.01, %v1202_v35  ;;  %vm997_vm8 = vcmp.gt.f32.partialorder %v951_v36, 0.0  ;;  %v1013_v48 = vmul.f32 0.01, %v951_v36  ;;  %v1481_v23 = vld [vmem:[#allocation2 + $0x1ff] sm:$0xff]  ;;  %v4560_v31 = vpop.f32.mrf.mxu0 }
 0x10a   :  { %1323 = vst.msk [vmem:[#allocation2 + $0x650] sm:$0xff] %vm54_vm0, %v1306_v38  ;;  %vm1243_vm9 = vcmp.gt.f32.partialorder %v1197_v41, 0.0  ;;  %v1259_v49 = vmul.f32 0.01, %v1197_v41  ;;  %vm1000_vm10 = vcmp.gt.f32.partialorder %v966_v42, 0.0  ;;  %v1212_v53 = vadd.f32 %v4582_v9, %v5221_v37  ;;  %v1535_v24 = vld [vmem:[#allocation2 + $0x20] sm:$0xff] }
 0x10b   :  { %1080 = vst.msk [vmem:[#allocation2 + $0x4e8] sm:$0xff] %vm54_vm0, %v1063_v43  ;;  %v1276_v50 = vsel %vm1244_vm7, %v1202_v35, %v1260_v34  ;;  %v1016_v51 = vmul.f32 0.01, %v966_v42  ;;  %v961_v54 = vadd.f32 %v5221_v37, %v960_v26  ;;  %v1029_v58 = vsel %vm997_vm8, %v951_v36, %v1013_v48  ;;  %v1589_v28 = vld [vmem:[#allocation2 + $0x200] sm:$0xff] }
 0x10c   :  { %v1309_v55 = vadd.f32 %v4208_v40, %v1276_v50  ;;  %v1275_v59 = vsel %vm1243_vm9, %v1197_v41, %v1259_v49  ;;  %v1207_v60 = vadd.f32 %v5221_v37, %v1206_v27  ;;  %v1062_v61 = vadd.f32 %v4173_v44, %v1029_v58  ;;  %v1643_v39 = vld [vmem:[#allocation2 + $0x5bf] sm:$0xff]  ;;  %v5604_v50 = vld [vmem:[%s7078_s4 + $0x7] ss:$0 sm:$0xff] }
 0x10d   :  { %v1308_v62 = vadd.f32 %v4207_v45, %v1275_v59  ;;  %v1032_v63 = vsel %vm1000_vm10, %v966_v42, %v1016_v51  ;;  %vm1246_vm11 = vcmp.gt.f32.partialorder %v1212_v53, 0.0  ;;  %v1262_v5 = vmul.f32 0.01, %v1212_v53  ;;  %v5586_v40 = vld [vmem:[#allocation2 + $0x3e0] sm:$0xff]  ;;  %v5609_v51 = vld [vmem:[%s7078_s4 + $0x8] ss:$0 sm:$0xff] }
 0x10e   :  { %1326 = vst.msk [vmem:[#allocation2 + $0x6c8] sm:$0xff] %vm54_vm0, %v1309_v55  ;;  %v1065_v4 = vadd.f32 %v4176_v52, %v1032_v63  ;;  %vm999_vm12 = vcmp.gt.f32.partialorder %v961_v54, 0.0  ;;  %v1015_v6 = vmul.f32 0.01, %v961_v54  ;;  %1079 = vst.msk [vmem:[#allocation2 + $0x4d0] sm:$0xff] %vm54_vm0, %v1062_v61  ;;  %vm1245_vm13 = vcmp.gt.f32.partialorder %v1207_v60, 0.0  ;;  %v980_v61 = vpop.f32.mrf.mxu0 }
 0x10f   :  { %1325 = vst.msk [vmem:[#allocation2 + $0x6b0] sm:$0xff] %vm54_vm0, %v1308_v62  ;;  %v1261_v0 = vmul.f32 0.01, %v1207_v60  ;;  %v976_v9 = vadd.f32 %v4557_v46, %v5221_v37  ;;  %v1222_v10 = vadd.f32 %v4585_v47, %v5221_v37  ;;  %v1278_v11 = vsel %vm1246_vm11, %v1212_v53, %v1262_v5  ;;  %v5588_v41 = vld [vmem:[#allocation2 + $0x5c0] sm:$0xff] }
 0x110   :  { %1082 = vst.msk [vmem:[#allocation2 + $0x518] sm:$0xff] %vm54_vm0, %v1065_v4  ;;  %v1031_v13 = vsel %vm999_vm12, %v961_v54, %v1015_v6  ;;  %v971_v15 = vadd.f32 %v5221_v37, %v970_v2  ;;  %v1217_v16 = vadd.f32 %v5221_v37, %v1216_v3  ;;  %v1311_v17 = vadd.f32 %v4210_v1, %v1278_v11  ;;  %v5578_v37 = vld [vmem:[%s7078_s4 + $0x4] ss:$0 sm:$0xff]  ;;  %v5594_v45 = vld [vmem:[%s7078_s4 + $0x5] ss:$0 sm:$0xff] }
 0x111   :  { %v1064_v18 = vadd.f32 %v4175_v7, %v1031_v13  ;;  %v1277_v21 = vsel %vm1245_vm13, %v1207_v60, %v1261_v0  ;;  %vm1002_vm14 = vcmp.gt.f32.partialorder %v976_v9, 0.0  ;;  %v1018_v26 = vmul.f32 0.01, %v976_v9  ;;  %v5599_v46 = vld [vmem:[%s7078_s4 + $0x6] ss:$0 sm:$0xff] }
 0x112   :  { %v1310_v25 = vadd.f32 %v4209_v8, %v1277_v21  ;;  %vm1248_vm15 = vcmp.gt.f32.partialorder %v1222_v10, 0.0  ;;  %v1264_v27 = vmul.f32 0.01, %v1222_v10  ;;  %1328 = vst.msk [vmem:[#allocation2 + $0x6f8] sm:$0xff] %vm54_vm0, %v1311_v17  ;;  %vm1001_vm1 = vcmp.gt.f32.partialorder %v971_v15, 0.0  ;;  %v2292_v47 = vld [vmem:[#allocation2 + $0x21] sm:$0xff] }
 0x113   :  { %1081 = vst.msk [vmem:[#allocation2 + $0x500] sm:$0xff] %vm54_vm0, %v1064_v18  ;;  %v1017_v29 = vmul.f32 0.01, %v971_v15  ;;  %vm1247_vm2 = vcmp.gt.f32.partialorder %v1217_v16, 0.0  ;;  %v1263_v30 = vmul.f32 0.01, %v1217_v16  ;;  %v1034_v33 = vsel %vm1002_vm14, %v976_v9, %v1018_v26 }
 0x114   :  { %1327 = vst.msk [vmem:[#allocation2 + $0x6e0] sm:$0xff] %vm54_vm0, %v1310_v25  ;;  %v1280_v35 = vsel %vm1248_vm15, %v1222_v10, %v1264_v27  ;;  %v1503_v36 = vmul.f32 %v5573_v20, %v1481_v23  ;;  %v1557_v38 = vmul.f32 %v5578_v37, %v1535_v24  ;;  %v1067_v42 = vadd.f32 %v4178_v14, %v1034_v33  ;;  %v5613_v54 = vld [vmem:[#allocation2 + $0x3e1] sm:$0xff]  ;;  %v4694_v6 = vld [vmem:[%s7079_s3] ss:$0 sm:$0xff]  ;;  %v4214_v17 = vld [vmem:[%s7080_s1 + $0x1f8] sm:$0xff] }
 0x115   :  { %v1313_v43 = vadd.f32 %v4212_v12, %v1280_v35  ;;  %v1033_v34 = vsel %vm1001_vm1, %v971_v15, %v1017_v29  ;;  %v1279_v44 = vsel %vm1247_vm2, %v1217_v16, %v1263_v30  ;;  %v1611_v53 = vmul.f32 %v5594_v45, %v1589_v28  ;;  %v5643_v14 = vld [vmem:[%s7078_s4] ss:$0 sm:$0xff]  ;;  %v4213_v27 = vld [vmem:[%s7080_s1 + $0x1f0] sm:$0xff]  ;;  %v1536_v29 = vld [vmem:[#allocation2 + $0x38] sm:$0xff] }
 0x116   :  { %v1066_v48 = vadd.f32 %v4177_v22, %v1033_v34  ;;  %v1312_v49 = vadd.f32 %v4211_v19, %v1279_v44  ;;  %v1519_v52 = vadd.f32 %v1503_v36, %v5233_v56  ;;  %1084 = vst.msk [vmem:[#allocation2 + $0x548] sm:$0xff] %vm54_vm0, %v1067_v42  ;;  %v1665_v55 = vmul.f32 %v5599_v46, %v1643_v39  ;;  %v1226_v56 = vpop.f32.mrf.mxu1  ;;  %v4179_v19 = vld [vmem:[%s7080_s1 + $0x170] sm:$0xff]  ;;  %v5658_v33 = vld [vmem:[%s7078_s4 + $0x1] ss:$0 sm:$0xff]  ;;  %v1590_v36 = vld [vmem:[#allocation2 + $0x218] sm:$0xff] }
 0x117   :  { %1330 = vst.msk [vmem:[#allocation2 + $0x728] sm:$0xff] %vm54_vm0, %v1313_v43  ;;  %v1719_v58 = vmul.f32 %v5604_v50, %v5586_v40  ;;  %v1773_v59 = vmul.f32 %v5609_v51, %v5588_v41  ;;  %v2212_v60 = vmul.f32 %v5573_v20, %v1535_v24  ;;  %v2260_v63 = vmul.f32 %v5578_v37, %v1589_v28  ;;  %v1482_v28 = vld [vmem:[#allocation2 + $0x217] sm:$0xff]  ;;  %v5667_v44 = vld [vmem:[%s7078_s4 + $0x2] ss:$0 sm:$0xff] }
 0x118   :  { %1083 = vst.msk [vmem:[#allocation2 + $0x530] sm:$0xff] %vm54_vm0, %v1066_v48  ;;  %1329 = vst.msk [vmem:[#allocation2 + $0x710] sm:$0xff] %vm54_vm0, %v1312_v49  ;;  %v1573_v62 = vadd.f32 %v1557_v38, %v1519_v52  ;;  %v2308_v1 = vmul.f32 %v5594_v45, %v2292_v47  ;;  %v2356_v2 = vmul.f32 %v5599_v46, %v5586_v40  ;;  %v1644_v38 = vld [vmem:[#allocation2 + $0x5d7] sm:$0xff] }
 0x119   :  { %v2228_v3 = vadd.f32 %v2212_v60, %v5235_v57  ;;  %v2404_v4 = vmul.f32 %v5604_v50, %v5588_v41  ;;  %v2452_v5 = vmul.f32 %v5609_v51, %v5613_v54  ;;  %v986_v7 = vadd.f32 %v4694_v6, %v4560_v31  ;;  %v4180_v57 = vld [vmem:[%s7080_s1 + $0x178] sm:$0xff] }
 0x11a   :  { %v1627_v0 = vadd.f32 %v1611_v53, %v1573_v62  ;;  %v1232_v8 = vadd.f32 %v4694_v6, %v4588_v32  ;;  %v981_v9 = vadd.f32 %v4694_v6, %v980_v61  ;;  %v1227_v10 = vadd.f32 %v4694_v6, %v1226_v56  ;;  %v1752_v48 = vld [vmem:[#allocation2 + $0x5d8] sm:$0xff] }
 0x11b   :  { %v2276_v11 = vadd.f32 %v2260_v63, %v2228_v3  ;;  %vm1004_vm3 = vcmp.gt.f32.partialorder %v986_v7, 0.0  ;;  %v1020_v13 = vmul.f32 0.01, %v986_v7  ;;  %v1357_v12 = vmul.f32 %v5643_v14, %v1643_v39  ;;  %v1698_v39 = vld [vmem:[#allocation2 + $0x3f8] sm:$0xff] }
 0x11c   :  { %v1681_v15 = vadd.f32 %v1665_v55, %v1627_v0  ;;  %vm1250_vm4 = vcmp.gt.f32.partialorder %v1232_v8, 0.0  ;;  %v1266_v16 = vmul.f32 0.01, %v1232_v8  ;;  %vm1003_vm5 = vcmp.gt.f32.partialorder %v981_v9, 0.0  ;;  %v2293_v56 = vld [vmem:[#allocation2 + $0x39] sm:$0xff] }
 0x11d   :  { %v2324_v18 = vadd.f32 %v2308_v1, %v2276_v11  ;;  %v1036_v21 = vsel %vm1004_vm3, %v986_v7, %v1020_v13  ;;  %v1019_v22 = vmul.f32 0.01, %v981_v9  ;;  %vm1249_vm6 = vcmp.gt.f32.partialorder %v1227_v10, 0.0  ;;  %v2437_v3 = vld [vmem:[#allocation2 + $0x3f9] sm:$0xff]  ;;  %v1591_v13 = vld [vmem:[#allocation2 + $0x230] sm:$0xff] }
 0x11e   :  { %v1735_v23 = vadd.f32 %v1719_v58, %v1681_v15  ;;  %v1069_v24 = vadd.f32 %v4180_v57, %v1036_v21  ;;  %v1282_v25 = vsel %vm1250_vm4, %v1232_v8, %v1266_v16  ;;  %v1265_v26 = vmul.f32 0.01, %v1227_v10  ;;  %v1537_v8 = vld [vmem:[#allocation2 + $0x50] sm:$0xff] }
 0x11f   :  { %v2372_v30 = vadd.f32 %v2356_v2, %v2324_v18  ;;  %v1315_v31 = vadd.f32 %v4214_v17, %v1282_v25  ;;  %v1035_v32 = vsel %vm1003_vm5, %v981_v9, %v1019_v22  ;;  %v1396_v35 = vmul.f32 %v5658_v33, %v5586_v40  ;;  %v1699_v16 = vld [vmem:[#allocation2 + $0x410] sm:$0xff] }
 0x120   :  { %v1789_v42 = vadd.f32 %v1773_v59, %v1735_v23  ;;  %1086 = vst.msk [vmem:[#allocation2 + $0x578] sm:$0xff] %vm54_vm0, %v1069_v24  ;;  %v1068_v43 = vadd.f32 %v4179_v19, %v1035_v32  ;;  %v1281_v34 = vsel %vm1249_vm6, %v1227_v10, %v1265_v26  ;;  %v1450_v47 = vmul.f32 %v5667_v44, %v5588_v41  ;;  %v1753_v17 = vld [vmem:[#allocation2 + $0x5f0] sm:$0xff] }
 0x121   :  { %v2420_v49 = vadd.f32 %v2404_v4, %v2372_v30  ;;  %1332 = vst.msk [vmem:[#allocation2 + $0x758] sm:$0xff] %vm54_vm0, %v1315_v31  ;;  %v1314_v52 = vadd.f32 %v4213_v27, %v1281_v34  ;;  %v1412_v53 = vadd.f32 %v1396_v35, %v1357_v12  ;;  %v1504_v55 = vmul.f32 %v5573_v20, %v1482_v28  ;;  %v2294_v27 = vld [vmem:[#allocation2 + $0x51] sm:$0xff] }
 0x122   :  { %4591 = vmatprep.mubr.msk.f32.mxu0 %vm54_vm0, %v1789_v42  ;;  %1085 = vst.msk [vmem:[#allocation2 + $0x560] sm:$0xff] %vm54_vm0, %v1068_v43  ;;  %v1558_v58 = vmul.f32 %v5578_v37, %v1536_v29  ;;  %v1612_v59 = vmul.f32 %v5594_v45, %v1590_v36  ;;  %v1666_v60 = vmul.f32 %v5599_v46, %v1644_v38  ;;  %v2438_v42 = vld [vmem:[#allocation2 + $0x411] sm:$0xff] }
 0x123   :  { %v1720_v61 = vmul.f32 %v5604_v50, %v1698_v39  ;;  %v2468_v62 = vadd.f32 %v2452_v5, %v2420_v49  ;;  %1331 = vst.msk [vmem:[#allocation2 + $0x740] sm:$0xff] %vm54_vm0, %v1314_v52  ;;  %v1466_v63 = vadd.f32 %v1450_v47, %v1412_v53  ;;  %v1774_v1 = vmul.f32 %v5609_v51, %v1752_v48  ;;  %v1483_v5 = vld [vmem:[#allocation2 + $0x22f] sm:$0xff] }
 0x124   :  { %v2085_v2 = vmul.f32 %v5643_v14, %v5586_v40  ;;  %v2117_v4 = vmul.f32 %v5658_v33, %v5588_v41  ;;  %v2165_v6 = vmul.f32 %v5667_v44, %v5613_v54  ;;  %v2213_v7 = vmul.f32 %v5573_v20, %v1536_v29  ;;  %v1645_v41 = vld [vmem:[#allocation2 + $0x5ef] sm:$0xff] }
 0x125   :  { %v2261_v0 = vmul.f32 %v5578_v37, %v1590_v36  ;;  %4617 = vmatprep.mubr.msk.f32.mxu1 %vm54_vm0, %v2468_v62  ;;  %v1520_v9 = vadd.f32 %v1504_v55, %v1466_v63  ;;  %v2309_v10 = vmul.f32 %v5594_v45, %v2293_v56  ;;  %v2357_v40 = vmul.f32 %v5599_v46, %v1698_v39  ;;  %v1592_v63 = vld [vmem:[#allocation2 + $0x248] sm:$0xff] }
 0x126   :  { %v2405_v11 = vmul.f32 %v5604_v50, %v1752_v48  ;;  %v2133_v57 = vadd.f32 %v2117_v4, %v2085_v2  ;;  %v5694_v54 = vmul.f32 %v5609_v51, %v2437_v3  ;;  %v1358_v12 = vmul.f32 %v5643_v14, %v1644_v38 }
 0x127   :  { %v1397_v15 = vmul.f32 %v5658_v33, %v1698_v39  ;;  %v1574_v18 = vadd.f32 %v1558_v58, %v1520_v9  ;;  %v1451_v21 = vmul.f32 %v5667_v44, %v1752_v48  ;;  %v1505_v22 = vmul.f32 %v5573_v20, %v1483_v5  ;;  %v5722_v5 = vld [vmem:[#allocation2 + $0x608] sm:$0xff] }
 0x128   :  { %v1559_v19 = vmul.f32 %v5578_v37, %v1537_v8  ;;  %v2181_v23 = vadd.f32 %v2165_v6, %v2133_v57  ;;  %v1613_v25 = vmul.f32 %v5594_v45, %v1591_v13  ;;  %v1667_v26 = vmul.f32 %v5599_v46, %v1645_v41 }
 0x129   :  { %v1413_v24 = vadd.f32 %v1397_v15, %v1358_v12  ;;  %v1628_v28 = vadd.f32 %v1612_v59, %v1574_v18  ;;  %v1721_v29 = vmul.f32 %v5604_v50, %v1699_v16  ;;  %v5705_v30 = vmul.f32 %v5609_v51, %v1753_v17  ;;  %v1538_v59 = vld [vmem:[#allocation2 + $0x68] sm:$0xff] }
 0x12a   :  { %v2086_v31 = vmul.f32 %v5643_v14, %v1698_v39  ;;  %v2229_v32 = vadd.f32 %v2213_v7, %v2181_v23  ;;  %v2118_v36 = vmul.f32 %v5658_v33, %v1752_v48  ;;  %v2166_v38 = vmul.f32 %v5667_v44, %v2437_v3  ;;  %v1484_v39 = vld [vmem:[#allocation2 + $0x247] sm:$0xff] }
 0x12b   :  { %v1467_v35 = vadd.f32 %v1451_v21, %v1413_v24  ;;  %v1682_v43 = vadd.f32 %v1666_v60, %v1628_v28  ;;  %v2214_v34 = vmul.f32 %v5573_v20, %v1537_v8  ;;  %v2262_v47 = vmul.f32 %v5578_v37, %v1591_v13  ;;  %v1646_v7 = vld [vmem:[#allocation2 + $0x607] sm:$0xff] }
 0x12c   :  { %v2310_v49 = vmul.f32 %v5594_v45, %v2294_v27  ;;  %v2277_v52 = vadd.f32 %v2261_v0, %v2229_v32  ;;  %v2134_v55 = vadd.f32 %v2118_v36, %v2086_v31  ;;  %v2358_v58 = vmul.f32 %v5599_v46, %v1699_v16  ;;  %v5720_v0 = vld [vmem:[#allocation2 + $0x428] sm:$0xff] }
 0x12d   :  { %v1521_v53 = vadd.f32 %v1505_v22, %v1467_v35  ;;  %v1736_v56 = vadd.f32 %v1720_v61, %v1682_v43  ;;  %v2406_v48 = vmul.f32 %v5604_v50, %v1753_v17  ;;  %v5716_v62 = vmul.f32 %v5609_v51, %v2438_v42 }
 0x12e   :  { %v1359_v60 = vmul.f32 %v5643_v14, %v1645_v41  ;;  %v2325_v2 = vadd.f32 %v2309_v10, %v2277_v52  ;;  %v2182_v4 = vadd.f32 %v2166_v38, %v2134_v55  ;;  %v1398_v6 = vmul.f32 %v5658_v33, %v1699_v16  ;;  %v2439_v38 = vld [vmem:[#allocation2 + $0x429] sm:$0xff]  ;;  %v1485_v52 = vld [vmem:[#allocation2 + $0x25f] sm:$0xff] }
 0x12f   :  { %v1575_v3 = vadd.f32 %v1559_v19, %v1521_v53  ;;  %v1790_v8 = vadd.f32 %v1774_v1, %v1736_v56  ;;  %v1452_v61 = vmul.f32 %v5667_v44, %v1753_v17  ;;  %v1506_v9 = vmul.f32 %v5573_v20, %v1484_v39 }
 0x130   :  { %v1560_v13 = vmul.f32 %v5578_v37, %v1538_v59  ;;  %v2373_v57 = vadd.f32 %v2357_v40, %v2325_v2  ;;  %v2230_v12 = vadd.f32 %v2214_v34, %v2182_v4  ;;  %v1414_v10 = vadd.f32 %v1398_v6, %v1359_v60  ;;  %v4698_v40 = vld [vmem:[%s7077_s5] sm:$0xff] }
 0x131   :  { %v1629_v41 = vadd.f32 %v1613_v25, %v1575_v3  ;;  %4592 = vmatmul.mubr.msk.f32.vlgmr.msra.gmra.mxu0 %vm54_vm0, %v1790_v8  ;;  %v1614_v15 = vmul.f32 %v5594_v45, %v1592_v63  ;;  %v1668_v18 = vmul.f32 %v5599_v46, %v1646_v7  ;;  %v1722_v21 = vmul.f32 %v5604_v50, %v5720_v0  ;;  %v2295_v25 = vld [vmem:[#allocation2 + $0x69] sm:$0xff]  ;;  %v1647_v60 = vld [vmem:[#allocation2 + $0x61f] sm:$0xff] }
 0x132   :  { %v5734_v1 = vmul.f32 %v5609_v51, %v5722_v5  ;;  %v2421_v22 = vadd.f32 %v2405_v11, %v2373_v57  ;;  %v2278_v23 = vadd.f32 %v2262_v47, %v2230_v12  ;;  %4642 = vmatpush3.msra.mxu0 %v4698_v40  ;;  %v1468_v24 = vadd.f32 %v1452_v61, %v1414_v10  ;;  %v1755_v4 = vld [vmem:[#allocation2 + $0x620] sm:$0xff] }
 0x133   :  { %v1683_v19 = vadd.f32 %v1667_v26, %v1629_v41  ;;  %v2087_v27 = vmul.f32 %v5643_v14, %v1699_v16  ;;  %v2119_v28 = vmul.f32 %v5658_v33, %v1753_v17  ;;  %v2167_v31 = vmul.f32 %v5667_v44, %v2438_v42  ;;  %v2296_v41 = vld [vmem:[#allocation2 + $0x81] sm:$0xff] }
 0x134   :  { %v2215_v32 = vmul.f32 %v5573_v20, %v1538_v59  ;;  %v2469_v35 = vadd.f32 %v5694_v54, %v2421_v22  ;;  %v2326_v26 = vadd.f32 %v2310_v49, %v2278_v23  ;;  %v1522_v36 = vadd.f32 %v1506_v9, %v1468_v24  ;;  %v1593_v49 = vld [vmem:[#allocation2 + $0x260] sm:$0xff] }
 0x135   :  { %v1737_v11 = vadd.f32 %v1721_v29, %v1683_v19  ;;  %v2135_v43 = vadd.f32 %v2119_v28, %v2087_v27  ;;  %v2263_v34 = vmul.f32 %v5578_v37, %v1592_v63  ;;  %v2311_v47 = vmul.f32 %v5594_v45, %v2295_v25  ;;  %v1539_v29 = vld [vmem:[#allocation2 + $0x80] sm:$0xff] }
 0x136   :  { %v2359_v16 = vmul.f32 %v5599_v46, %v5720_v0  ;;  %4618 = vmatmul.mubr.msk.f32.vlgmr.msra.gmra.mxu1 %vm54_vm0, %v2469_v35  ;;  %v2374_v42 = vadd.f32 %v2358_v58, %v2326_v26  ;;  %v1576_v53 = vadd.f32 %v1560_v13, %v1522_v36  ;;  %v2407_v54 = vmul.f32 %v5604_v50, %v5722_v5  ;;  %v1701_v63 = vld [vmem:[#allocation2 + $0x440] sm:$0xff] }
 0x137   :  { %v1791_v17 = vadd.f32 %v5705_v30, %v1737_v11  ;;  %4668 = vmatpush3.msra.mxu1 %v4698_v40  ;;  %v2183_v55 = vadd.f32 %v2167_v31, %v2135_v43  ;;  %v2455_v39 = vmul.f32 %v5609_v51, %v2439_v38  ;;  %v1360_v59 = vmul.f32 %v5643_v14, %v1646_v7  ;;  %v2440_v40 = vld [vmem:[#allocation2 + $0x441] sm:$0xff]  ;;  %v1486_v31 = vld [vmem:[#allocation2 + $0x277] sm:$0xff] }
 0x138   :  { %v1399_v56 = vmul.f32 %v5658_v33, %v5720_v0  ;;  %v2422_v30 = vadd.f32 %v2406_v48, %v2374_v42  ;;  %v1630_v58 = vadd.f32 %v1614_v15, %v1576_v53  ;;  %v1453_v2 = vmul.f32 %v5667_v44, %v5722_v5  ;;  %v1594_v11 = vld [vmem:[#allocation2 + $0x278] sm:$0xff] }
 0x139   :  { %4594 = vmatprep.mubr.msk.f32.mxu0 %vm54_vm0, %v1791_v17  ;;  %v1507_v3 = vmul.f32 %v5573_v20, %v1485_v52  ;;  %v2231_v6 = vadd.f32 %v2215_v32, %v2183_v55  ;;  %v1561_v61 = vmul.f32 %v5578_v37, %v1539_v29  ;;  %v1615_v7 = vmul.f32 %v5594_v45, %v1593_v49  ;;  %v1756_v53 = vld [vmem:[#allocation2 + $0x638] sm:$0xff] }
 0x13a   :  { %v1415_v8 = vadd.f32 %v1399_v56, %v1360_v59  ;;  %v2470_v9 = vadd.f32 %v5716_v62, %v2422_v30  ;;  %v1684_v13 = vadd.f32 %v1668_v18, %v1630_v58  ;;  %v1669_v57 = vmul.f32 %v5599_v46, %v1647_v60  ;;  %v2297_v58 = vld [vmem:[#allocation2 + $0x99] sm:$0xff] }
 0x13b   :  { %v1723_v48 = vmul.f32 %v5604_v50, %v1701_v63  ;;  %v2279_v12 = vadd.f32 %v2263_v34, %v2231_v6  ;;  %v1777_v15 = vmul.f32 %v5609_v51, %v1755_v4  ;;  %v2088_v22 = vmul.f32 %v5643_v14, %v5720_v0  ;;  %v1648_v34 = vld [vmem:[#allocation2 + $0x637] sm:$0xff] }
 0x13c   :  { %v1469_v10 = vadd.f32 %v1453_v2, %v1415_v8  ;;  %4620 = vmatprep.mubr.msk.f32.mxu1 %vm54_vm0, %v2470_v9  ;;  %v1738_v19 = vadd.f32 %v1722_v21, %v1684_v13  ;;  %v2120_v23 = vmul.f32 %v5658_v33, %v5722_v5  ;;  %v2168_v62 = vmul.f32 %v5667_v44, %v2439_v38  ;;  %v1540_v5 = vld [vmem:[#allocation2 + $0x98] sm:$0xff] }
 0x13d   :  { %v2216_v18 = vmul.f32 %v5573_v20, %v1539_v29  ;;  %v2327_v24 = vadd.f32 %v2311_v47, %v2279_v12  ;;  %v2264_v27 = vmul.f32 %v5578_v37, %v1593_v49  ;;  %v2312_v28 = vmul.f32 %v5594_v45, %v2296_v41  ;;  %v1702_v47 = vld [vmem:[#allocation2 + $0x458] sm:$0xff] }
 0x13e   :  { %v1523_v25 = vadd.f32 %v1507_v3, %v1469_v10  ;;  %v1792_v0 = vadd.f32 %v5734_v1, %v1738_v19  ;;  %v2136_v32 = vadd.f32 %v2120_v23, %v2088_v22  ;;  %v2360_v21 = vmul.f32 %v5599_v46, %v1701_v63  ;;  %v2441_v13 = vld [vmem:[#allocation2 + $0x459] sm:$0xff]  ;;  %v1487_v23 = vld [vmem:[#allocation2 + $0x28f] sm:$0xff] }
 0x13f   :  { %v2408_v35 = vmul.f32 %v5604_v50, %v1755_v4  ;;  %v2375_v26 = vadd.f32 %v2359_v16, %v2327_v24  ;;  %v5779_v38 = vmul.f32 %v5609_v51, %v2440_v40  ;;  %v1361_v43 = vmul.f32 %v5643_v14, %v1647_v60 }
 0x140   :  { %v1577_v36 = vadd.f32 %v1561_v61, %v1523_v25  ;;  %4595 = vmatmul.mubr.msk.f32.gmra.mxu0 %vm54_vm0, %v1792_v0  ;;  %v2184_v52 = vadd.f32 %v2168_v62, %v2136_v32  ;;  %v1400_v1 = vmul.f32 %v5658_v33, %v1701_v63  ;;  %v1454_v17 = vmul.f32 %v5667_v44, %v1755_v4  ;;  %v1541_v62 = vld [vmem:[#allocation2 + $0xb0] sm:$0xff] }
 0x141   :  { %v1508_v42 = vmul.f32 %v5573_v20, %v1486_v31  ;;  %v2423_v29 = vadd.f32 %v2407_v54, %v2375_v26  ;;  %v1562_v49 = vmul.f32 %v5578_v37, %v1540_v5  ;;  %v1616_v55 = vmul.f32 %v5594_v45, %v1594_v11  ;;  %v1649_v0 = vld [vmem:[#allocation2 + $0x64f] sm:$0xff] }
 0x142   :  { %v1631_v16 = vadd.f32 %v1615_v7, %v1577_v36  ;;  %v2232_v59 = vadd.f32 %v2216_v18, %v2184_v52  ;;  %v1416_v56 = vadd.f32 %v1400_v1, %v1361_v43  ;;  %v1670_v60 = vmul.f32 %v5599_v46, %v1648_v34  ;;  %v1703_v32 = vld [vmem:[#allocation2 + $0x470] sm:$0xff] }
 0x143   :  { %v1724_v30 = vmul.f32 %v5604_v50, %v1702_v47  ;;  %v2471_v2 = vadd.f32 %v2455_v39, %v2423_v29  ;;  %v5791_v6 = vmul.f32 %v5609_v51, %v1756_v53  ;;  %v2089_v8 = vmul.f32 %v5643_v14, %v1701_v63 }
 0x144   :  { %v1685_v3 = vadd.f32 %v1669_v57, %v1631_v16  ;;  %v2280_v54 = vadd.f32 %v2264_v27, %v2232_v59  ;;  %v1470_v61 = vadd.f32 %v1454_v17, %v1416_v56  ;;  %v2121_v7 = vmul.f32 %v5658_v33, %v1755_v4  ;;  %v1595_v4 = vld [vmem:[#allocation2 + $0x290] sm:$0xff] }
 0x145   :  { %v2169_v9 = vmul.f32 %v5667_v44, %v2440_v40  ;;  %4621 = vmatmul.mubr.msk.f32.gmra.mxu1 %vm54_vm0, %v2471_v2  ;;  %v2217_v12 = vmul.f32 %v5573_v20, %v1540_v5  ;;  %v2265_v39 = vmul.f32 %v5578_v37, %v1594_v11  ;;  %v2313_v57 = vmul.f32 %v5594_v45, %v2297_v58  ;;  %v5807_v5 = vld [vmem:[#allocation2 + $0x650] sm:$0xff] }
 0x146   :  { %v1739_v41 = vadd.f32 %v1723_v48, %v1685_v3  ;;  %v2328_v10 = vadd.f32 %v2312_v28, %v2280_v54  ;;  %v1524_v22 = vadd.f32 %v1508_v42, %v1470_v61  ;;  %v2137_v19 = vadd.f32 %v2121_v7, %v2089_v8  ;;  %v2298_v16 = vld [vmem:[#allocation2 + $0xb1] sm:$0xff] }
 0x147   :  { %v2361_v63 = vmul.f32 %v5599_v46, %v1702_v47  ;;  %v2409_v40 = vmul.f32 %v5604_v50, %v1756_v53  ;;  %v5803_v24 = vmul.f32 %v5609_v51, %v2441_v13  ;;  %v1362_v48 = vmul.f32 %v5643_v14, %v1648_v34 }
 0x148   :  { %v1793_v18 = vadd.f32 %v1777_v15, %v1739_v41  ;;  %v2376_v25 = vadd.f32 %v2360_v21, %v2328_v10  ;;  %v1578_v27 = vadd.f32 %v1562_v49, %v1524_v22  ;;  %v2185_v31 = vadd.f32 %v2169_v9, %v2137_v19  ;;  %v1542_v41 = vld [vmem:[#allocation2 + $0xc8] sm:$0xff] }
 0x149   :  { %v1401_v28 = vmul.f32 %v5658_v33, %v1702_v47  ;;  %v1455_v15 = vmul.f32 %v5667_v44, %v1756_v53  ;;  %v1509_v11 = vmul.f32 %v5573_v20, %v1487_v23  ;;  %v1563_v26 = vmul.f32 %v5578_v37, %v1541_v62  ;;  %v1650_v22 = vld [vmem:[#allocation2 + $0x667] sm:$0xff] }
 0x14a   :  { %4597 = vmatprep.mubr.msk.f32.mxu0 %vm54_vm0, %v1793_v18  ;;  %v1617_v36 = vmul.f32 %v5594_v45, %v1595_v4  ;;  %v2424_v43 = vadd.f32 %v2408_v35, %v2376_v25  ;;  %v1632_v21 = vadd.f32 %v1616_v55, %v1578_v27  ;;  %v2233_v34 = vadd.f32 %v2217_v12, %v2185_v31  ;;  %v2442_v35 = vld [vmem:[#allocation2 + $0x471] sm:$0xff]  ;;  %v1596_v12 = vld [vmem:[#allocation2 + $0x2a8] sm:$0xff] }
 0x14b   :  { %v1417_v52 = vadd.f32 %v1401_v28, %v1362_v48  ;;  %v1671_v1 = vmul.f32 %v5599_v46, %v1649_v0  ;;  %v1725_v17 = vmul.f32 %v5604_v50, %v1703_v32  ;;  %v5818_v42 = vmul.f32 %v5609_v51, %v5807_v5  ;;  %v1704_v19 = vld [vmem:[#allocation2 + $0x488] sm:$0xff] }
 0x14c   :  { %v2090_v29 = vmul.f32 %v5643_v14, %v1702_v47  ;;  %v2472_v49 = vadd.f32 %v5779_v38, %v2424_v43  ;;  %v1686_v59 = vadd.f32 %v1670_v60, %v1632_v21  ;;  %v2281_v56 = vadd.f32 %v2265_v39, %v2233_v34  ;;  %v1488_v38 = vld [vmem:[#allocation2 + $0x2a7] sm:$0xff] }
 0x14d   :  { %v1471_v58 = vadd.f32 %v1455_v15, %v1417_v52  ;;  %v2122_v55 = vmul.f32 %v5658_v33, %v1756_v53  ;;  %v2170_v2 = vmul.f32 %v5667_v44, %v2441_v13  ;;  %v2218_v3 = vmul.f32 %v5573_v20, %v1541_v62  ;;  %v1758_v48 = vld [vmem:[#allocation2 + $0x668] sm:$0xff] }
 0x14e   :  { %v2266_v8 = vmul.f32 %v5578_v37, %v1595_v4  ;;  %4623 = vmatprep.mubr.msk.f32.mxu1 %vm54_vm0, %v2472_v49  ;;  %v1740_v54 = vadd.f32 %v1724_v30, %v1686_v59  ;;  %v2329_v61 = vadd.f32 %v2313_v57, %v2281_v56  ;;  %v2314_v7 = vmul.f32 %v5594_v45, %v2298_v16  ;;  %v2443_v16 = vld [vmem:[#allocation2 + $0x489] sm:$0xff]  ;;  %v1342_v49 = vld [vmem:[#allocation2 + $0x697] sm:$0xff] }
 0x14f   :  { %v1525_v47 = vadd.f32 %v1509_v11, %v1471_v58  ;;  %v2138_v60 = vadd.f32 %v2122_v55, %v2090_v29  ;;  %v2362_v9 = vmul.f32 %v5599_v46, %v1703_v32  ;;  %v5831_v53 = vmul.f32 %v5604_v50, %v5807_v5  ;;  %v2299_v11 = vld [vmem:[#allocation2 + $0xc9] sm:$0xff]  ;;  %v1381_v58 = vld [vmem:[#allocation2 + $0x4b8] sm:$0xff] }
 0x150   :  { %v5834_v13 = vmul.f32 %v5609_v51, %v2442_v35  ;;  %v1794_v39 = vadd.f32 %v5791_v6, %v1740_v54  ;;  %v2377_v30 = vadd.f32 %v2361_v63, %v2329_v61  ;;  %v1363_v10 = vmul.f32 %v5643_v14, %v1649_v0 }
 0x151   :  { %v1579_v57 = vadd.f32 %v1563_v26, %v1525_v47  ;;  %v2186_v23 = vadd.f32 %v2170_v2, %v2138_v60  ;;  %v1402_v62 = vmul.f32 %v5658_v33, %v1703_v32  ;;  %v1456_v4 = vmul.f32 %v5667_v44, %v5807_v5 }
 0x152   :  { %v1510_v18 = vmul.f32 %v5573_v20, %v1488_v38  ;;  %4598 = vmatmul.mubr.msk.f32.gmra.mxu0 %vm54_vm0, %v1794_v39  ;;  %v2425_v25 = vadd.f32 %v2409_v40, %v2377_v30  ;;  %v1564_v6 = vmul.f32 %v5578_v37, %v1542_v41  ;;  %v1618_v63 = vmul.f32 %v5594_v45, %v1596_v12  ;;  %v1435_v38 = vld [vmem:[#allocation2 + $0x698] sm:$0xff]  ;;  %v1651_v39 = vld [vmem:[#allocation2 + $0x6af] sm:$0xff] }
 0x153   :  { %v1633_v27 = vadd.f32 %v1617_v36, %v1579_v57  ;;  %v2234_v31 = vadd.f32 %v2218_v3, %v2186_v23  ;;  %v1418_v28 = vadd.f32 %v1402_v62, %v1363_v10  ;;  %v1672_v0 = vmul.f32 %v5599_v46, %v1650_v22  ;;  %v1705_v30 = vld [vmem:[#allocation2 + $0x4d0] sm:$0xff] }
 0x154   :  { %v1726_v15 = vmul.f32 %v5604_v50, %v1704_v19  ;;  %v2473_v26 = vadd.f32 %v5803_v24, %v2425_v25  ;;  %v5849_v21 = vmul.f32 %v5609_v51, %v1758_v48  ;;  %v2091_v40 = vmul.f32 %v5643_v14, %v1703_v32  ;;  %v5867_v57 = vld [vmem:[#allocation2 + $0x6b0] sm:$0xff] }
 0x155   :  { %v1687_v43 = vadd.f32 %v1671_v1, %v1633_v27  ;;  %v2282_v36 = vadd.f32 %v2266_v8, %v2234_v31  ;;  %v1472_v34 = vadd.f32 %v1456_v4, %v1418_v28  ;;  %v2123_v52 = vmul.f32 %v5658_v33, %v5807_v5  ;;  %v1489_v5 = vld [vmem:[#allocation2 + $0x2ef] sm:$0xff] }
 0x156   :  { %v2171_v29 = vmul.f32 %v5667_v44, %v2442_v35  ;;  %4624 = vmatmul.mubr.msk.f32.gmra.mxu1 %vm54_vm0, %v2473_v26  ;;  %v2219_v24 = vmul.f32 %v5573_v20, %v1542_v41  ;;  %v2267_v1 = vmul.f32 %v5578_v37, %v1596_v12  ;;  %v2315_v56 = vmul.f32 %v5594_v45, %v2299_v11  ;;  %v1543_v8 = vld [vmem:[#allocation2 + $0x110] sm:$0xff] }
 0x157   :  { %v1741_v59 = vadd.f32 %v1725_v17, %v1687_v43  ;;  %v2330_v32 = vadd.f32 %v2314_v7, %v2282_v36  ;;  %v1526_v55 = vadd.f32 %v1510_v18, %v1472_v34  ;;  %v2139_v2 = vadd.f32 %v2123_v52, %v2091_v40  ;;  %v1597_v35 = vld [vmem:[#allocation2 + $0x2f0] sm:$0xff]  ;;  %v2156_v18 = vld [vmem:[#allocation2 + $0x4b9] sm:$0xff] }
 0x158   :  { %v2363_v3 = vmul.f32 %v5599_v46, %v1704_v19  ;;  %v2411_v61 = vmul.f32 %v5604_v50, %v1758_v48  ;;  %v5863_v17 = vmul.f32 %v5609_v51, %v2443_v16  ;;  %v1364_v47 = vmul.f32 %v5643_v14, %v1342_v49  ;;  %v2300_v31 = vld [vmem:[#allocation2 + $0x111] sm:$0xff] }
 0x159   :  { %v1795_v54 = vadd.f32 %v5818_v42, %v1741_v59  ;;  %v2378_v60 = vadd.f32 %v2362_v9, %v2330_v32  ;;  %v1580_v41 = vadd.f32 %v1564_v6, %v1526_v55  ;;  %v2187_v7 = vadd.f32 %v2171_v29, %v2139_v2  ;;  %v1598_v32 = vld [vmem:[#allocation2 + $0x308] sm:$0xff] }
 0x15a   :  { %v1403_v12 = vmul.f32 %v5658_v33, %v1381_v58  ;;  %v1457_v42 = vmul.f32 %v5667_v44, %v1435_v38  ;;  %v1511_v10 = vmul.f32 %v5573_v20, %v1489_v5  ;;  %v1565_v22 = vmul.f32 %v5578_v37, %v1543_v8  ;;  %v1652_v5 = vld [vmem:[#allocation2 + $0x6c7] sm:$0xff] }
 0x15b   :  { %4600 = vmatprep.mubr.msk.f32.mxu0 %vm54_vm0, %v1795_v54  ;;  %v1619_v19 = vmul.f32 %v5594_v45, %v1597_v35  ;;  %v2426_v9 = vadd.f32 %v5831_v53, %v2378_v60  ;;  %v1634_v23 = vadd.f32 %v1618_v63, %v1580_v41  ;;  %v2235_v62 = vadd.f32 %v2219_v24, %v2187_v7  ;;  %v2444_v63 = vld [vmem:[#allocation2 + $0x4d1] sm:$0xff]  ;;  %v1760_v60 = vld [vmem:[#allocation2 + $0x6c8] sm:$0xff] }
 0x15c   :  { %v1419_v4 = vadd.f32 %v1403_v12, %v1364_v47  ;;  %v1673_v48 = vmul.f32 %v5599_v46, %v1651_v39  ;;  %v1727_v25 = vmul.f32 %v5604_v50, %v1705_v30  ;;  %v5879_v27 = vmul.f32 %v5609_v51, %v5867_v57 }
 0x15d   :  { %v2092_v6 = vmul.f32 %v5643_v14, %v1381_v58  ;;  %v2474_v28 = vadd.f32 %v5834_v13, %v2426_v9  ;;  %v1688_v11 = vadd.f32 %v1672_v0, %v1634_v23  ;;  %v2283_v26 = vadd.f32 %v2267_v1, %v2235_v62  ;;  %v1490_v13 = vld [vmem:[#allocation2 + $0x307] sm:$0xff] }
 0x15e   :  { %v1473_v53 = vadd.f32 %v1457_v42, %v1419_v4  ;;  %v2124_v43 = vmul.f32 %v5658_v33, %v1435_v38  ;;  %v2172_v40 = vmul.f32 %v5667_v44, %v2156_v18  ;;  %v2220_v36 = vmul.f32 %v5573_v20, %v1543_v8  ;;  %v1544_v58 = vld [vmem:[#allocation2 + $0x128] sm:$0xff] }
 0x15f   :  { %v2268_v34 = vmul.f32 %v5578_v37, %v1597_v35  ;;  %4626 = vmatprep.mubr.msk.f32.mxu1 %vm54_vm0, %v2474_v28  ;;  %v1742_v52 = vadd.f32 %v1726_v15, %v1688_v11  ;;  %v2331_v29 = vadd.f32 %v2315_v56, %v2283_v26  ;;  %v2316_v49 = vmul.f32 %v5594_v45, %v2300_v31  ;;  %v1706_v8 = vld [vmem:[#allocation2 + $0x4e8] sm:$0xff] }
 0x160   :  { %v1527_v16 = vadd.f32 %v1511_v10, %v1473_v53  ;;  %v2140_v0 = vadd.f32 %v2124_v43, %v2092_v6  ;;  %v2364_v59 = vmul.f32 %v5599_v46, %v1705_v30  ;;  %v2412_v24 = vmul.f32 %v5604_v50, %v5867_v57  ;;  %v2445_v31 = vld [vmem:[#allocation2 + $0x4e9] sm:$0xff] }
 0x161   :  { %v5893_v1 = vmul.f32 %v5609_v51, %v2444_v63  ;;  %v1796_v55 = vadd.f32 %v5849_v21, %v1742_v52  ;;  %v2379_v2 = vadd.f32 %v2363_v3, %v2331_v29  ;;  %v1365_v56 = vmul.f32 %v5643_v14, %v1651_v39 }
 0x162   :  { %v1581_v15 = vadd.f32 %v1565_v22, %v1527_v16  ;;  %v2188_v35 = vadd.f32 %v2172_v40, %v2140_v0  ;;  %v1404_v54 = vmul.f32 %v5658_v33, %v1705_v30  ;;  %v1458_v47 = vmul.f32 %v5667_v44, %v5867_v57  ;;  %v2301_v22 = vld [vmem:[#allocation2 + $0x129] sm:$0xff]  ;;  %v1491_v40 = vld [vmem:[#allocation2 + $0x31f] sm:$0xff] }
 0x163   :  { %v1512_v38 = vmul.f32 %v5573_v20, %v1490_v13  ;;  %4601 = vmatmul.mubr.msk.f32.gmra.mxu0 %vm54_vm0, %v1796_v55  ;;  %v2427_v41 = vadd.f32 %v2411_v61, %v2379_v2  ;;  %v1566_v21 = vmul.f32 %v5578_v37, %v1544_v58  ;;  %v1620_v3 = vmul.f32 %v5594_v45, %v1598_v32  ;;  %v1653_v0 = vld [vmem:[#allocation2 + $0x6df] sm:$0xff] }
 0x164   :  { %v1635_v7 = vadd.f32 %v1619_v19, %v1581_v15  ;;  %v2236_v12 = vadd.f32 %v2220_v36, %v2188_v35  ;;  %v1420_v39 = vadd.f32 %v1404_v54, %v1365_v56  ;;  %v1674_v42 = vmul.f32 %v5599_v46, %v1652_v5  ;;  %v1545_v36 = vld [vmem:[#allocation2 + $0x140] sm:$0xff] }
 0x165   :  { %v1728_v10 = vmul.f32 %v5604_v50, %v1706_v8  ;;  %v2475_v9 = vadd.f32 %v5863_v17, %v2427_v41  ;;  %v5908_v62 = vmul.f32 %v5609_v51, %v1760_v60  ;;  %v2093_v61 = vmul.f32 %v5643_v14, %v1705_v30 }
 0x166   :  { %v1689_v23 = vadd.f32 %v1673_v48, %v1635_v7  ;;  %v2284_v19 = vadd.f32 %v2268_v34, %v2236_v12  ;;  %v1474_v4 = vadd.f32 %v1458_v47, %v1420_v39  ;;  %v2125_v18 = vmul.f32 %v5658_v33, %v5867_v57  ;;  %v1599_v57 = vld [vmem:[#allocation2 + $0x320] sm:$0xff] }
 0x167   :  { %v2173_v6 = vmul.f32 %v5667_v44, %v2444_v63  ;;  %4627 = vmatmul.mubr.msk.f32.gmra.mxu1 %vm54_vm0, %v2475_v9  ;;  %v2221_v11 = vmul.f32 %v5573_v20, %v1544_v58  ;;  %v2269_v17 = vmul.f32 %v5578_v37, %v1598_v32  ;;  %v2317_v48 = vmul.f32 %v5594_v45, %v2301_v22  ;;  %v5926_v58 = vld [vmem:[#allocation2 + $0x500] sm:$0xff] }
 0x168   :  { %v1743_v28 = vadd.f32 %v1727_v25, %v1689_v23  ;;  %v2332_v26 = vadd.f32 %v2316_v49, %v2284_v19  ;;  %v1528_v53 = vadd.f32 %v1512_v38, %v1474_v4  ;;  %v2141_v30 = vadd.f32 %v2125_v18, %v2093_v61  ;;  %v5928_v32 = vld [vmem:[#allocation2 + $0x6e0] sm:$0xff] }
 0x169   :  { %v2365_v43 = vmul.f32 %v5599_v46, %v1706_v8  ;;  %v2413_v34 = vmul.f32 %v5604_v50, %v1760_v60  ;;  %v5922_v25 = vmul.f32 %v5609_v51, %v2445_v31  ;;  %v1366_v52 = vmul.f32 %v5643_v14, %v1652_v5  ;;  %v2302_v7 = vld [vmem:[#allocation2 + $0x141] sm:$0xff] }
 0x16a   :  { %v1797_v63 = vadd.f32 %v5879_v27, %v1743_v28  ;;  %v2380_v29 = vadd.f32 %v2364_v59, %v2332_v26  ;;  %v1582_v16 = vadd.f32 %v1566_v21, %v1528_v53  ;;  %v2189_v13 = vadd.f32 %v2173_v6, %v2141_v30  ;;  %v5961_v26 = vld [vmem:[#allocation2 + $0x518] sm:$0xff] }
 0x16b   :  { %v1405_v49 = vmul.f32 %v5658_v33, %v1706_v8  ;;  %v1459_v27 = vmul.f32 %v5667_v44, %v1760_v60  ;;  %v1513_v55 = vmul.f32 %v5573_v20, %v1491_v40  ;;  %v1567_v2 = vmul.f32 %v5578_v37, %v1545_v36 }
 0x16c   :  { %4603 = vmatprep.mubr.msk.f32.mxu0 %vm54_vm0, %v1797_v63  ;;  %v1621_v15 = vmul.f32 %v5594_v45, %v1599_v57  ;;  %v2428_v59 = vadd.f32 %v2412_v24, %v2380_v29  ;;  %v1636_v56 = vadd.f32 %v1620_v3, %v1582_v16  ;;  %v2237_v5 = vadd.f32 %v2221_v11, %v2189_v13  ;;  %v2446_v3 = vld [vmem:[#allocation2 + $0x501] sm:$0xff] }
 0x16d   :  { %v1421_v35 = vadd.f32 %v1405_v49, %v1366_v52  ;;  %v1675_v54 = vmul.f32 %v5599_v46, %v1653_v0  ;;  %v1729_v47 = vmul.f32 %v5604_v50, %v5926_v58  ;;  %v5940_v38 = vmul.f32 %v5609_v51, %v5928_v32  ;;  %v5986_v13 = vld [vmem:[%s7078_s4 + $0x6] ss:$0 sm:$0xff] }
 0x16e   :  { %v2094_v41 = vmul.f32 %v5643_v14, %v1706_v8  ;;  %v2476_v21 = vadd.f32 %v5893_v1, %v2428_v59  ;;  %v1690_v12 = vadd.f32 %v1674_v42, %v1636_v56  ;;  %v2285_v39 = vadd.f32 %v2269_v17, %v2237_v5  ;;  %v1492_v1 = vld [vmem:[#allocation2 + $0x337] sm:$0xff] }
 0x16f   :  { %v1475_v24 = vadd.f32 %v1459_v27, %v1421_v35  ;;  %v2126_v22 = vmul.f32 %v5658_v33, %v1760_v60  ;;  %v2174_v9 = vmul.f32 %v5667_v44, %v2445_v31  ;;  %v2222_v23 = vmul.f32 %v5573_v20, %v1545_v36  ;;  %v1600_v31 = vld [vmem:[#allocation2 + $0x338] sm:$0xff] }
 0x170   :  { %v2270_v61 = vmul.f32 %v5578_v37, %v1599_v57  ;;  %4629 = vmatprep.mubr.msk.f32.mxu1 %vm54_vm0, %v2476_v21  ;;  %v1744_v19 = vadd.f32 %v1728_v10, %v1690_v12  ;;  %v2333_v4 = vadd.f32 %v2317_v48, %v2285_v39  ;;  %v2318_v18 = vmul.f32 %v5594_v45, %v2302_v7  ;;  %v1546_v37 = vld [vmem:[#allocation2 + $0x158] sm:$0xff]  ;;  %v5979_v57 = vld [vmem:[%s7078_s4 + $0x4] ss:$0 sm:$0xff]  ;;  %v6012_v7 = vld [vmem:[%s7078_s4 + $0x5] ss:$0 sm:$0xff] }
 0x171   :  { %v1529_v8 = vadd.f32 %v1513_v55, %v1475_v24  ;;  %v2142_v42 = vadd.f32 %v2126_v22, %v2094_v41  ;;  %v2366_v6 = vmul.f32 %v5599_v46, %v5926_v58  ;;  %v5954_v60 = vmul.f32 %v5604_v50, %v5928_v32  ;;  %v1654_v48 = vld [vmem:[#allocation2 + $0x6f7] sm:$0xff]  ;;  %v1493_v24 = vld [vmem:[#allocation2 + $0x34f] sm:$0xff] }
 0x172   :  { %v5957_v20 = vmul.f32 %v5609_v51, %v2446_v3  ;;  %v1798_v10 = vadd.f32 %v5908_v62, %v1744_v19  ;;  %v2381_v28 = vadd.f32 %v2365_v43, %v2333_v4  ;;  %v1367_v17 = vmul.f32 %v5643_v14, %v1653_v0  ;;  %v5970_v51 = vld [vmem:[%s7078_s4 + $0x3] ss:$0 sm:$0xff]  ;;  %v5973_v43 = vld [vmem:[#allocation2 + $0x6f8] sm:$0xff] }
 0x173   :  { %v1583_v11 = vadd.f32 %v1567_v2, %v1529_v8  ;;  %v2190_v53 = vadd.f32 %v2174_v9, %v2142_v42  ;;  %v1406_v46 = vmul.f32 %v5658_v33, %v5926_v58  ;;  %v1460_v30 = vmul.f32 %v5667_v44, %v5928_v32  ;;  %v2303_v0 = vld [vmem:[#allocation2 + $0x159] sm:$0xff]  ;;  %v6021_v9 = vld [vmem:[%s7078_s4 + $0x7] ss:$0 sm:$0xff]  ;;  %v6031_v42 = vld [vmem:[#allocation2 + $0x530] sm:$0xff] }
 0x174   :  { %v1514_v62 = vmul.f32 %v5970_v51, %v1492_v1  ;;  %4604 = vmatmul.mubr.msk.f32.gmra.mxu0 %vm54_vm0, %v1798_v10  ;;  %v2429_v40 = vadd.f32 %v2413_v34, %v2381_v28  ;;  %v1568_v63 = vmul.f32 %v5979_v57, %v1546_v37  ;;  %v1622_v52 = vmul.f32 %v5594_v45, %v1600_v31  ;;  %v5995_v45 = vld [vmem:[%s7078_s4 + $0x8] ss:$0 sm:$0xff]  ;;  %v2447_v5 = vld [vmem:[#allocation2 + $0x519] sm:$0xff] }
 0x175   :  { %v1637_v36 = vadd.f32 %v1621_v15, %v1583_v11  ;;  %v2238_v29 = vadd.f32 %v2222_v23, %v2190_v53  ;;  %v1422_v16 = vadd.f32 %v1406_v46, %v1367_v17  ;;  %v1676_v49 = vmul.f32 %v5986_v13, %v1654_v48 }
 0x176   :  { %v1730_v34 = vmul.f32 %v5604_v50, %v5961_v26  ;;  %v2477_v27 = vadd.f32 %v5922_v25, %v2429_v40  ;;  %v5999_v2 = vmul.f32 %v5995_v45, %v5973_v43  ;;  %v2095_v15 = vmul.f32 %v5643_v14, %v5926_v58  ;;  %v2304_v40 = vld [vmem:[#allocation2 + $0x171] sm:$0xff] }
 0x177   :  { %v1691_v55 = vadd.f32 %v1675_v54, %v1637_v36  ;;  %v2286_v59 = vadd.f32 %v2270_v61, %v2238_v29  ;;  %v1476_v56 = vadd.f32 %v1460_v30, %v1422_v16  ;;  %v2127_v50 = vmul.f32 %v5658_v33, %v5928_v32  ;;  %v2448_v16 = vld [vmem:[#allocation2 + $0x531] sm:$0xff] }
 0x178   :  { %v2175_v25 = vmul.f32 %v5667_v44, %v2446_v3  ;;  %4630 = vmatmul.mubr.msk.f32.gmra.mxu1 %vm54_vm0, %v2477_v27  ;;  %v2223_v54 = vmul.f32 %v5970_v51, %v1546_v37  ;;  %v2271_v41 = vmul.f32 %v5979_v57, %v1600_v31  ;;  %v2319_v58 = vmul.f32 %v6012_v7, %v2303_v0  ;;  %v1547_v3 = vld [vmem:[#allocation2 + $0x170] sm:$0xff] }
 0x179   :  { %v1745_v35 = vadd.f32 %v1729_v47, %v1691_v55  ;;  %v2334_v21 = vadd.f32 %v2318_v18, %v2286_v59  ;;  %v1530_v12 = vadd.f32 %v1514_v62, %v1476_v56  ;;  %v2143_v32 = vadd.f32 %v2127_v50, %v2095_v15  ;;  %v1601_v47 = vld [vmem:[#allocation2 + $0x350] sm:$0xff]  ;;  %v6052_v62 = vld [vmem:[%s7078_s4] ss:$0 sm:$0xff] }
 0x17a   :  { %v2367_v39 = vmul.f32 %v5986_v13, %v5961_v26  ;;  %v2415_v23 = vmul.f32 %v6021_v9, %v5973_v43  ;;  %v6026_v61 = vmul.f32 %v5995_v45, %v2447_v5  ;;  %v1368_v19 = vmul.f32 %v5643_v14, %v1654_v48  ;;  %v6033_v37 = vld [vmem:[#allocation2 + $0x710] sm:$0xff] }
 0x17b   :  { %v1799_v22 = vadd.f32 %v5940_v38, %v1745_v35  ;;  %v2382_v4 = vadd.f32 %v2366_v6, %v2334_v21  ;;  %v1584_v8 = vadd.f32 %v1568_v63, %v1530_v12  ;;  %v2191_v18 = vadd.f32 %v2175_v25, %v2143_v32  ;;  %v1655_v38 = vld [vmem:[#allocation2 + $0x70f] sm:$0xff]  ;;  %v6078_v32 = vld [vmem:[%s7078_s4 + $0x1] ss:$0 sm:$0xff] }
 0x17c   :  { %v1407_v1 = vmul.f32 %v5658_v33, %v5961_v26  ;;  %v1461_v31 = vmul.f32 %v5667_v44, %v5973_v43  ;;  %v1515_v10 = vmul.f32 %v5970_v51, %v1493_v24  ;;  %v1569_v14 = vmul.f32 %v5979_v57, %v1547_v3  ;;  %v1710_v21 = vld [vmem:[#allocation2 + $0x548] sm:$0xff] }
 0x17d   :  { %4606 = vmatprep.mubr.msk.f32.mxu0 %vm54_vm0, %v1799_v22  ;;  %v1623_v6 = vmul.f32 %v6012_v7, %v1601_v47  ;;  %v2430_v28 = vadd.f32 %v5954_v60, %v2382_v4  ;;  %v1638_v11 = vadd.f32 %v1622_v52, %v1584_v8  ;;  %v2239_v17 = vadd.f32 %v2223_v54, %v2191_v18 }
 0x17e   :  { %v1423_v48 = vadd.f32 %v1407_v1, %v1368_v19  ;;  %v1677_v53 = vmul.f32 %v5986_v13, %v1655_v38  ;;  %v1731_v46 = vmul.f32 %v6021_v9, %v6031_v42  ;;  %v6047_v30 = vmul.f32 %v5995_v45, %v6033_v37 }
 0x17f   :  { %v2096_v60 = vmul.f32 %v6052_v62, %v5961_v26  ;;  %v2478_v36 = vadd.f32 %v5957_v20, %v2430_v28  ;;  %v1692_v63 = vadd.f32 %v1676_v49, %v1638_v11  ;;  %v2287_v52 = vadd.f32 %v2271_v41, %v2239_v17  ;;  %v1494_v49 = vld [vmem:[#allocation2 + $0x367] sm:$0xff] }
 0x180   :  { %v1477_v29 = vadd.f32 %v1461_v31, %v1423_v48  ;;  %v2128_v0 = vmul.f32 %v5658_v33, %v5973_v43  ;;  %v2176_v27 = vmul.f32 %v5667_v44, %v2447_v5  ;;  %v2224_v55 = vmul.f32 %v5970_v51, %v1547_v3  ;;  %v1548_v43 = vld [vmem:[#allocation2 + $0x188] sm:$0xff]  ;;  %v6085_v3 = vld [vmem:[%s7078_s4 + $0x2] ss:$0 sm:$0xff] }
 0x181   :  { %v2272_v15 = vmul.f32 %v5979_v57, %v1601_v47  ;;  %4632 = vmatprep.mubr.msk.f32.mxu1 %vm54_vm0, %v2478_v36  ;;  %v1746_v59 = vadd.f32 %v1730_v34, %v1692_v63  ;;  %v2335_v26 = vadd.f32 %v2319_v58, %v2287_v52  ;;  %v2320_v20 = vmul.f32 %v6012_v7, %v2304_v40  ;;  %v1602_v5 = vld [vmem:[#allocation2 + $0x368] sm:$0xff] }
 0x182   :  { %v1531_v56 = vadd.f32 %v1515_v10, %v1477_v29  ;;  %v2144_v50 = vadd.f32 %v2128_v0, %v2096_v60  ;;  %v2368_v25 = vmul.f32 %v5986_v13, %v6031_v42  ;;  %v6068_v33 = vmul.f32 %v6021_v9, %v6033_v37  ;;  %v1656_v58 = vld [vmem:[#allocation2 + $0x727] sm:$0xff] }
 0x183   :  { %v6071_v44 = vmul.f32 %v5995_v45, %v2448_v16  ;;  %v1800_v34 = vadd.f32 %v5999_v2, %v1746_v59  ;;  %v2383_v35 = vadd.f32 %v2367_v39, %v2335_v26  ;;  %v1369_v41 = vmul.f32 %v6052_v62, %v1655_v38  ;;  %v1764_v47 = vld [vmem:[#allocation2 + $0x728] sm:$0xff] }
 0x184   :  { %v1585_v54 = vadd.f32 %v1569_v14, %v1531_v56  ;;  %v2192_v12 = vadd.f32 %v2176_v27, %v2144_v50  ;;  %v1408_v24 = vmul.f32 %v6078_v32, %v6031_v42  ;;  %v1462_v2 = vmul.f32 %v6085_v3, %v6033_v37  ;;  %v2305_v10 = vld [vmem:[#allocation2 + $0x189] sm:$0xff]  ;;  %v1495_v27 = vld [vmem:[#allocation2 + $0x37f] sm:$0xff] }
 0x185   :  { %v1516_v39 = vmul.f32 %v5970_v51, %v1494_v49  ;;  %4607 = vmatmul.mubr.msk.f32.gmra.mxu0 %vm54_vm0, %v1800_v34  ;;  %v2431_v22 = vadd.f32 %v2415_v23, %v2383_v35  ;;  %v1570_v4 = vmul.f32 %v5979_v57, %v1548_v43  ;;  %v1624_v8 = vmul.f32 %v6012_v7, %v1602_v5  ;;  %v2449_v40 = vld [vmem:[#allocation2 + $0x549] sm:$0xff]  ;;  %v1657_v50 = vld [vmem:[#allocation2 + $0x73f] sm:$0xff] }
 0x186   :  { %v1639_v19 = vadd.f32 %v1623_v6, %v1585_v54  ;;  %v2240_v18 = vadd.f32 %v2224_v55, %v2192_v12  ;;  %v1424_v1 = vadd.f32 %v1408_v24, %v1369_v41  ;;  %v1678_v38 = vmul.f32 %v5986_v13, %v1656_v58  ;;  %v1549_v55 = vld [vmem:[#allocation2 + $0x1a0] sm:$0xff] }
 0x187   :  { %v1732_v31 = vmul.f32 %v6021_v9, %v1710_v21  ;;  %v2479_v14 = vadd.f32 %v6026_v61, %v2431_v22  ;;  %v6097_v11 = vmul.f32 %v5995_v45, %v1764_v47  ;;  %v2097_v23 = vmul.f32 %v6052_v62, %v6031_v42 }
 0x188   :  { %v1693_v28 = vadd.f32 %v1677_v53, %v1639_v19  ;;  %v2288_v6 = vadd.f32 %v2272_v15, %v2240_v18  ;;  %v1478_v17 = vadd.f32 %v1462_v2, %v1424_v1  ;;  %v2129_v48 = vmul.f32 %v6078_v32, %v6033_v37  ;;  %v1603_v37 = vld [vmem:[#allocation2 + $0x380] sm:$0xff] }
 0x189   :  { %v2177_v60 = vmul.f32 %v6085_v3, %v2448_v16  ;;  %4633 = vmatmul.mubr.msk.f32.gmra.mxu1 %vm54_vm0, %v2479_v14  ;;  %v2225_v61 = vmul.f32 %v5970_v51, %v1548_v43  ;;  %v2273_v53 = vmul.f32 %v5979_v57, %v1602_v5  ;;  %v2321_v63 = vmul.f32 %v6012_v7, %v2305_v10  ;;  %v1711_v43 = vld [vmem:[#allocation2 + $0x560] sm:$0xff] }
 0x18a   :  { %v1747_v36 = vadd.f32 %v1731_v46, %v1693_v28  ;;  %v2336_v52 = vadd.f32 %v2320_v20, %v2288_v6  ;;  %v1532_v29 = vadd.f32 %v1516_v39, %v1478_v17  ;;  %v2145_v42 = vadd.f32 %v2129_v48, %v2097_v23  ;;  %v6116_v5 = vld [vmem:[#allocation2 + $0x740] sm:$0xff] }
 0x18b   :  { %v2369_v0 = vmul.f32 %v5986_v13, %v1710_v21  ;;  %v2417_v15 = vmul.f32 %v6021_v9, %v1764_v47  ;;  %v6112_v46 = vmul.f32 %v5995_v45, %v2449_v40  ;;  %v1370_v59 = vmul.f32 %v6052_v62, %v1656_v58  ;;  %v2306_v19 = vld [vmem:[#allocation2 + $0x1a1] sm:$0xff] }
 0x18c   :  { %v1801_v16 = vadd.f32 %v6047_v30, %v1747_v36  ;;  %v2384_v26 = vadd.f32 %v2368_v25, %v2336_v52  ;;  %v1586_v56 = vadd.f32 %v1570_v4, %v1532_v29  ;;  %v2193_v49 = vadd.f32 %v2177_v60, %v2145_v42  ;;  %v1550_v36 = vld [vmem:[#allocation2 + $0x1b8] sm:$0xff] }
 0x18d   :  { %v1409_v20 = vmul.f32 %v6078_v32, %v1710_v21  ;;  %v1463_v30 = vmul.f32 %v6085_v3, %v1764_v47  ;;  %v1517_v34 = vmul.f32 %v5970_v51, %v1495_v27  ;;  %v1571_v35 = vmul.f32 %v5979_v57, %v1549_v55  ;;  %v1658_v29 = vld [vmem:[#allocation2 + $0x757] sm:$0xff] }
 0x18e   :  { %4609 = vmatprep.mubr.msk.f32.mxu0 %vm54_vm0, %v1801_v16  ;;  %v1625_v54 = vmul.f32 %v6012_v7, %v1603_v37  ;;  %v2432_v25 = vadd.f32 %v6068_v33, %v2384_v26  ;;  %v1640_v41 = vadd.f32 %v1624_v8, %v1586_v56  ;;  %v2241_v58 = vadd.f32 %v2225_v61, %v2193_v49  ;;  %v2450_v33 = vld [vmem:[#allocation2 + $0x561] sm:$0xff]  ;;  %v1604_v61 = vld [vmem:[#allocation2 + $0x398] sm:$0xff] }
 0x18f   :  { %v1425_v12 = vadd.f32 %v1409_v20, %v1370_v59  ;;  %v1679_v24 = vmul.f32 %v5986_v13, %v1657_v50  ;;  %v1733_v2 = vmul.f32 %v6021_v9, %v1711_v43  ;;  %v6128_v39 = vmul.f32 %v5995_v45, %v6116_v5  ;;  %v1712_v42 = vld [vmem:[#allocation2 + $0x578] sm:$0xff] }
 0x190   :  { %v2098_v22 = vmul.f32 %v6052_v62, %v1710_v21  ;;  %v2480_v4 = vadd.f32 %v6071_v44, %v2432_v25  ;;  %v1694_v18 = vadd.f32 %v1678_v38, %v1640_v41  ;;  %v2289_v1 = vadd.f32 %v2273_v53, %v2241_v58  ;;  %v1496_v44 = vld [vmem:[#allocation2 + $0x397] sm:$0xff] }
 0x191   :  { %v1479_v10 = vadd.f32 %v1463_v30, %v1425_v12  ;;  %v2130_v8 = vmul.f32 %v6078_v32, %v1764_v47  ;;  %v2178_v14 = vmul.f32 %v6085_v3, %v2449_v40  ;;  %v2226_v28 = vmul.f32 %v5970_v51, %v1549_v55  ;;  %v1766_v59 = vld [vmem:[#allocation2 + $0x758] sm:$0xff] }
 0x192   :  { %v2274_v23 = vmul.f32 %v5979_v57, %v1603_v37  ;;  %4635 = vmatprep.mubr.msk.f32.mxu1 %vm54_vm0, %v2480_v4  ;;  %v1748_v6 = vadd.f32 %v1732_v31, %v1694_v18  ;;  %v2337_v17 = vadd.f32 %v2321_v63, %v2289_v1  ;;  %v2322_v48 = vmul.f32 %v6012_v7, %v2306_v19  ;;  %v2451_v19 = vld [vmem:[#allocation2 + $0x579] sm:$0xff] }
 0x193   :  { %v1533_v21 = vadd.f32 %v1517_v34, %v1479_v10  ;;  %v2146_v38 = vadd.f32 %v2130_v8, %v2098_v22  ;;  %v2370_v60 = vmul.f32 %v5986_v13, %v1711_v43  ;;  %v6141_v47 = vmul.f32 %v6021_v9, %v6116_v5  ;;  %v2307_v34 = vld [vmem:[#allocation2 + $0x1b9] sm:$0xff] }
 0x194   :  { %v6144_v40 = vmul.f32 %v5995_v45, %v2450_v33  ;;  %v1802_v53 = vadd.f32 %v6097_v11, %v1748_v6  ;;  %v2385_v31 = vadd.f32 %v2369_v0, %v2337_v17  ;;  %v1371_v52 = vmul.f32 %v6052_v62, %v1657_v50  ;;  %v2742_v4 = vld [vmem:[#allocation2 + $0x1ff] sm:$0xff] }
 0x195   :  { %v1587_v63 = vadd.f32 %v1571_v35, %v1533_v21  ;;  %v2194_v27 = vadd.f32 %v2178_v14, %v2146_v38  ;;  %v1410_v55 = vmul.f32 %v6078_v32, %v1711_v43  ;;  %v1464_v37 = vmul.f32 %v6085_v3, %v6116_v5  ;;  %v2774_v10 = vld [vmem:[#allocation2 + $0x20] sm:$0xff] }
 0x196   :  { %v1518_v16 = vmul.f32 %v5970_v51, %v1496_v44  ;;  %4610 = vmatmul.mubr.msk.f32.gmra.mxu0 %vm54_vm0, %v1802_v53  ;;  %v2433_v26 = vadd.f32 %v2417_v15, %v2385_v31  ;;  %v1572_v11 = vmul.f32 %v5979_v57, %v1550_v36  ;;  %v1626_v0 = vmul.f32 %v6012_v7, %v1604_v61  ;;  %v2966_v6 = vld [vmem:[#allocation2 + $0x5c0] sm:$0xff]  ;;  %v3015_v53 = vld [vmem:[#allocation2 + $0x217] sm:$0xff] }
 0x197   :  { %v1641_v56 = vadd.f32 %v1625_v54, %v1587_v63  ;;  %v2242_v49 = vadd.f32 %v2226_v28, %v2194_v27  ;;  %v1426_v20 = vadd.f32 %v1410_v55, %v1371_v52  ;;  %v1680_v50 = vmul.f32 %v5986_v13, %v1658_v29  ;;  %v3064_v31 = vld [vmem:[#allocation2 + $0x38] sm:$0xff] }
 0x198   :  { %v1734_v30 = vmul.f32 %v6021_v9, %v1712_v42  ;;  %v2481_v35 = vadd.f32 %v6112_v46, %v2433_v26  ;;  %v6159_v41 = vmul.f32 %v5995_v45, %v1766_v59  ;;  %v2099_v15 = vmul.f32 %v6052_v62, %v1711_v43  ;;  %v2822_v43 = vld [vmem:[#allocation2 + $0x200] sm:$0xff]  ;;  %v6177_v63 = vld [vmem:[#allocation2 + $0x218] sm:$0xff] }
 0x199   :  { %v1695_v25 = vadd.f32 %v1679_v24, %v1641_v56  ;;  %v2290_v54 = vadd.f32 %v2274_v23, %v2242_v49  ;;  %v1480_v58 = vadd.f32 %v1464_v37, %v1426_v20  ;;  %v2131_v12 = vmul.f32 %v6078_v32, %v6116_v5  ;;  %v2870_v23 = vld [vmem:[#allocation2 + $0x5bf] sm:$0xff] }
 0x19a   :  { %v2179_v22 = vmul.f32 %v6085_v3, %v2450_v33  ;;  %4636 = vmatmul.mubr.msk.f32.gmra.mxu1 %vm54_vm0, %v2481_v35  ;;  %v2227_v46 = vmul.f32 %v5970_v51, %v1550_v36  ;;  %v2275_v24 = vmul.f32 %v5979_v57, %v1604_v61  ;;  %v2323_v1 = vmul.f32 %v6012_v7, %v2307_v34  ;;  %v2918_v33 = vld [vmem:[#allocation2 + $0x3e0] sm:$0xff] }
 0x19b   :  { %v1749_v18 = vadd.f32 %v1733_v2, %v1695_v25  ;;  %v2338_v8 = vadd.f32 %v2322_v48, %v2290_v54  ;;  %v1534_v14 = vadd.f32 %v1518_v16, %v1480_v58  ;;  %v2147_v28 = vadd.f32 %v2131_v12, %v2099_v15  ;;  %v3498_v16 = vld [vmem:[#allocation2 + $0x21] sm:$0xff] }
 0x19c   :  { %v2371_v5 = vmul.f32 %v5986_v13, %v1712_v42  ;;  %v2419_v2 = vmul.f32 %v6021_v9, %v1766_v59  ;;  %v6173_v21 = vmul.f32 %v5995_v45, %v2451_v19  ;;  %v2758_v44 = vmul.f32 %v6052_v62, %v2742_v4  ;;  %v3642_v49 = vld [vmem:[#allocation2 + $0x3e1] sm:$0xff] }
 0x19d   :  { %v1803_v17 = vadd.f32 %v6128_v39, %v1749_v18  ;;  %v2386_v38 = vadd.f32 %v2370_v60, %v2338_v8  ;;  %v1588_v36 = vadd.f32 %v1572_v11, %v1534_v14  ;;  %v2195_v61 = vadd.f32 %v2179_v22, %v2147_v28  ;;  %v3016_v28 = vld [vmem:[#allocation2 + $0x22f] sm:$0xff] }
 0x19e   :  { %v2790_v48 = vmul.f32 %v6078_v32, %v2774_v10  ;;  %v2838_v39 = vmul.f32 %v6085_v3, %v2822_v43  ;;  %v2886_v52 = vmul.f32 %v5970_v51, %v2870_v23  ;;  %v2934_v29 = vmul.f32 %v5979_v57, %v2918_v33  ;;  %v3065_v23 = vld [vmem:[#allocation2 + $0x50] sm:$0xff] }
 0x19f   :  { %4612 = vmatprep.mubr.msk.f32.mxu0 %vm54_vm0, %v1803_v17  ;;  %v2982_v42 = vmul.f32 %v6012_v7, %v2966_v6  ;;  %v2434_v60 = vadd.f32 %v6141_v47, %v2386_v38  ;;  %v1642_v27 = vadd.f32 %v1626_v0, %v1588_v36  ;;  %v2243_v55 = vadd.f32 %v2227_v46, %v2195_v61  ;;  %v3786_v0 = vld [vmem:[#allocation2 + $0x39] sm:$0xff]  ;;  %v3113_v38 = vld [vmem:[#allocation2 + $0x230] sm:$0xff] }
 0x1a0   :  { %v2806_v37 = vadd.f32 %v2790_v48, %v2758_v44  ;;  %v3031_v59 = vmul.f32 %v5986_v13, %v3015_v53  ;;  %v3080_v26 = vmul.f32 %v6021_v9, %v3064_v31  ;;  %v6189_v56 = vmul.f32 %v5995_v45, %v6177_v63 }
 0x1a1   :  { %v3434_v11 = vmul.f32 %v6052_v62, %v2774_v10  ;;  %v2482_v20 = vadd.f32 %v6144_v40, %v2434_v60  ;;  %v1696_v34 = vadd.f32 %v1680_v50, %v1642_v27  ;;  %v2291_v35 = vadd.f32 %v2275_v24, %v2243_v55  ;;  %v2871_v40 = vld [vmem:[#allocation2 + $0x5d7] sm:$0xff] }
 0x1a2   :  { %v2854_v47 = vadd.f32 %v2838_v39, %v2806_v37  ;;  %v3466_v25 = vmul.f32 %v6078_v32, %v2822_v43  ;;  %v3514_v15 = vmul.f32 %v6085_v3, %v3498_v16  ;;  %v3562_v54 = vmul.f32 %v5970_v51, %v2918_v33  ;;  %v2919_v10 = vld [vmem:[#allocation2 + $0x3f8] sm:$0xff] }
 0x1a3   :  { %v3610_v58 = vmul.f32 %v5979_v57, %v2966_v6  ;;  %4638 = vmatprep.mubr.msk.f32.mxu1 %vm54_vm0, %v2482_v20  ;;  %v1750_v12 = vadd.f32 %v1734_v30, %v1696_v34  ;;  %v2339_v22 = vadd.f32 %v2323_v1, %v2291_v35  ;;  %v3658_v4 = vmul.f32 %v6012_v7, %v3642_v49  ;;  %v2967_v43 = vld [vmem:[#allocation2 + $0x5d8] sm:$0xff] }
 0x1a4   :  { %v2902_v19 = vadd.f32 %v2886_v52, %v2854_v47  ;;  %v3482_v50 = vadd.f32 %v3466_v25, %v3434_v11  ;;  %v3706_v18 = vmul.f32 %v5986_v13, %v3064_v31  ;;  %v3754_v46 = vmul.f32 %v6021_v9, %v6177_v63  ;;  %v3787_v49 = vld [vmem:[#allocation2 + $0x51] sm:$0xff] }
 0x1a5   :  { %v6203_v24 = vmul.f32 %v5995_v45, %v3786_v0  ;;  %v1804_v8 = vadd.f32 %v6159_v41, %v1750_v12  ;;  %v2387_v14 = vadd.f32 %v2371_v5, %v2339_v22  ;;  %v2759_v1 = vmul.f32 %v6052_v62, %v3015_v53 }
 0x1a6   :  { %v2950_v30 = vadd.f32 %v2934_v29, %v2902_v19  ;;  %v3530_v33 = vadd.f32 %v3514_v15, %v3482_v50  ;;  %v2791_v6 = vmul.f32 %v6078_v32, %v3064_v31  ;;  %v2839_v17 = vmul.f32 %v6085_v3, %v6177_v63  ;;  %v3643_v29 = vld [vmem:[#allocation2 + $0x3f9] sm:$0xff]  ;;  %v2872_v15 = vld [vmem:[#allocation2 + $0x5ef] sm:$0xff]  ;;  %v3017_v50 = vld [vmem:[#allocation2 + $0x247] sm:$0xff] }
 0x1a7   :  { %v2887_v44 = vmul.f32 %v5970_v51, %v2871_v40  ;;  %4613 = vmatmul.mubr.msk.f32.gmra.mxu0 %vm54_vm0, %v1804_v8  ;;  %v2435_v36 = vadd.f32 %v2419_v2, %v2387_v14  ;;  %v2935_v41 = vmul.f32 %v5979_v57, %v2919_v10  ;;  %v2983_v5 = vmul.f32 %v6012_v7, %v2967_v43 }
 0x1a8   :  { %v2998_v61 = vadd.f32 %v2982_v42, %v2950_v30  ;;  %v3578_v48 = vadd.f32 %v3562_v54, %v3530_v33  ;;  %v2807_v53 = vadd.f32 %v2791_v6, %v2759_v1  ;;  %v3032_v39 = vmul.f32 %v5986_v13, %v3016_v28  ;;  %v2920_v54 = vld [vmem:[#allocation2 + $0x410] sm:$0xff] }
 0x1a9   :  { %v3081_v52 = vmul.f32 %v6021_v9, %v3065_v23  ;;  %v2483_v60 = vadd.f32 %v6173_v21, %v2435_v36  ;;  %v6218_v55 = vmul.f32 %v5995_v45, %v3113_v38  ;;  %v3435_v2 = vmul.f32 %v6052_v62, %v3064_v31 }
 0x1aa   :  { %v3047_v27 = vadd.f32 %v3031_v59, %v2998_v61  ;;  %v3626_v42 = vadd.f32 %v3610_v58, %v3578_v48  ;;  %v2855_v37 = vadd.f32 %v2839_v17, %v2807_v53  ;;  %v3467_v16 = vmul.f32 %v6078_v32, %v6177_v63  ;;  %v2968_v63 = vld [vmem:[#allocation2 + $0x5f0] sm:$0xff] }
 0x1ab   :  { %v3515_v11 = vmul.f32 %v6085_v3, %v3786_v0  ;;  %4639 = vmatmul.mubr.msk.f32.gmra.mxu1 %vm54_vm0, %v2483_v60  ;;  %v3563_v34 = vmul.f32 %v5970_v51, %v2919_v10  ;;  %v3611_v21 = vmul.f32 %v5979_v57, %v2967_v43  ;;  %v3659_v59 = vmul.f32 %v6012_v7, %v3643_v29  ;;  %v3066_v10 = vld [vmem:[#allocation2 + $0x68] sm:$0xff]  ;;  %v3644_v61 = vld [vmem:[#allocation2 + $0x411] sm:$0xff] }
 0x1ac   :  { %v3096_v20 = vadd.f32 %v3080_v26, %v3047_v27  ;;  %v3674_v35 = vadd.f32 %v3658_v4, %v3626_v42  ;;  %v2903_v47 = vadd.f32 %v2887_v44, %v2855_v37  ;;  %v3483_v31 = vadd.f32 %v3467_v16, %v3435_v2  ;;  %v6236_v43 = vld [vmem:[#allocation2 + $0x248] sm:$0xff] }
 0x1ad   :  { %v3707_v25 = vmul.f32 %v5986_v13, %v3065_v23  ;;  %v3755_v58 = vmul.f32 %v6021_v9, %v3113_v38  ;;  %v6232_v26 = vmul.f32 %v5995_v45, %v3787_v49  ;;  %v2760_v12 = vmul.f32 %v6052_v62, %v3016_v28 }
 0x1ae   :  { %v3144_v0 = vadd.f32 %v6189_v56, %v3096_v20  ;;  %v3722_v22 = vadd.f32 %v3706_v18, %v3674_v35  ;;  %v2951_v19 = vadd.f32 %v2935_v41, %v2903_v47  ;;  %v3531_v40 = vadd.f32 %v3515_v11, %v3483_v31  ;;  %v2921_v20 = vld [vmem:[#allocation2 + $0x428] sm:$0xff]  ;;  %v3018_v47 = vld [vmem:[#allocation2 + $0x25f] sm:$0xff] }
 0x1af   :  { %v2792_v4 = vmul.f32 %v6078_v32, %v3065_v23  ;;  %v2840_v56 = vmul.f32 %v6085_v3, %v3113_v38  ;;  %v2888_v8 = vmul.f32 %v5970_v51, %v2872_v15  ;;  %v2936_v14 = vmul.f32 %v5979_v57, %v2920_v54  ;;  %v3067_v31 = vld [vmem:[#allocation2 + $0x80] sm:$0xff] }
 0x1b0   :  { %4643 = vmatprep.mubr.msk.f32.mxu0 %vm54_vm0, %v3144_v0  ;;  %v2984_v30 = vmul.f32 %v6012_v7, %v2968_v63  ;;  %v3770_v1 = vadd.f32 %v3754_v46, %v3722_v22  ;;  %v2999_v18 = vadd.f32 %v2983_v5, %v2951_v19  ;;  %v3579_v28 = vadd.f32 %v3563_v34, %v3531_v40  ;;  %v3788_v46 = vld [vmem:[#allocation2 + $0x69] sm:$0xff] }
 0x1b1   :  { %v2808_v33 = vadd.f32 %v2792_v4, %v2760_v12  ;;  %v3033_v6 = vmul.f32 %v5986_v13, %v3017_v50  ;;  %v3082_v17 = vmul.f32 %v6021_v9, %v3066_v10  ;;  %v6247_v44 = vmul.f32 %v5995_v45, %v6236_v43  ;;  %v2969_v34 = vld [vmem:[#allocation2 + $0x608] sm:$0xff]  ;;  %v3115_v12 = vld [vmem:[#allocation2 + $0x260] sm:$0xff] }
 0x1b2   :  { %v3436_v36 = vmul.f32 %v6052_v62, %v3065_v23  ;;  %v3818_v41 = vadd.f32 %v6203_v24, %v3770_v1  ;;  %v3048_v48 = vadd.f32 %v3032_v39, %v2999_v18  ;;  %v3627_v53 = vadd.f32 %v3611_v21, %v3579_v28  ;;  %v2873_v24 = vld [vmem:[#allocation2 + $0x607] sm:$0xff] }
 0x1b3   :  { %v2856_v29 = vadd.f32 %v2840_v56, %v2808_v33  ;;  %v3468_v5 = vmul.f32 %v6078_v32, %v3113_v38  ;;  %v3516_v60 = vmul.f32 %v6085_v3, %v3787_v49  ;;  %v3564_v27 = vmul.f32 %v5970_v51, %v2920_v54 }
 0x1b4   :  { %v3612_v2 = vmul.f32 %v5979_v57, %v2968_v63  ;;  %4669 = vmatprep.mubr.msk.f32.mxu1 %vm54_vm0, %v3818_v41  ;;  %v3097_v42 = vadd.f32 %v3081_v52, %v3048_v48  ;;  %v3675_v37 = vadd.f32 %v3659_v59, %v3627_v53  ;;  %v3660_v16 = vmul.f32 %v6012_v7, %v3644_v61  ;;  %v3789_v61 = vld [vmem:[#allocation2 + $0x81] sm:$0xff] }
 0x1b5   :  { %v2904_v23 = vadd.f32 %v2888_v8, %v2856_v29  ;;  %v3484_v39 = vadd.f32 %v3468_v5, %v3436_v36  ;;  %v3708_v11 = vmul.f32 %v5986_v13, %v3066_v10  ;;  %v3756_v38 = vmul.f32 %v6021_v9, %v6236_v43  ;;  %v3645_v8 = vld [vmem:[#allocation2 + $0x429] sm:$0xff] }
 0x1b6   :  { %v6261_v49 = vmul.f32 %v5995_v45, %v3788_v46  ;;  %v3145_v21 = vadd.f32 %v6218_v55, %v3097_v42  ;;  %v3723_v35 = vadd.f32 %v3707_v25, %v3675_v37  ;;  %v2761_v59 = vmul.f32 %v6052_v62, %v3017_v50 }
 0x1b7   :  { %v2952_v52 = vadd.f32 %v2936_v14, %v2904_v23  ;;  %v3532_v15 = vadd.f32 %v3516_v60, %v3484_v39  ;;  %v2793_v54 = vmul.f32 %v6078_v32, %v3066_v10  ;;  %v2841_v63 = vmul.f32 %v6085_v3, %v6236_v43  ;;  %v2874_v60 = vld [vmem:[#allocation2 + $0x61f] sm:$0xff]  ;;  %v3019_v39 = vld [vmem:[#allocation2 + $0x277] sm:$0xff] }
 0x1b8   :  { %v2889_v0 = vmul.f32 %v5970_v51, %v2873_v24  ;;  %4644 = vmatmul.mubr.msk.f32.vlgmr.msra.gmra.mxu0 %vm54_vm0, %v3145_v21  ;;  %v3771_v22 = vadd.f32 %v3755_v58, %v3723_v35  ;;  %v2937_v55 = vmul.f32 %v5979_v57, %v2921_v20  ;;  %v2985_v25 = vmul.f32 %v6012_v7, %v2969_v34 }
 0x1b9   :  { %v3000_v19 = vadd.f32 %v2984_v30, %v2952_v52  ;;  %v3580_v40 = vadd.f32 %v3564_v27, %v3532_v15  ;;  %v2809_v4 = vadd.f32 %v2793_v54, %v2761_v59  ;;  %v3034_v50 = vmul.f32 %v5986_v13, %v3018_v47  ;;  %v2922_v27 = vld [vmem:[#allocation2 + $0x440] sm:$0xff] }
 0x1ba   :  { %v3083_v56 = vmul.f32 %v6021_v9, %v3067_v31  ;;  %v3819_v14 = vadd.f32 %v6232_v26, %v3771_v22  ;;  %v6276_v18 = vmul.f32 %v5995_v45, %v3115_v12  ;;  %v3437_v58 = vmul.f32 %v6052_v62, %v3066_v10 }
 0x1bb   :  { %v3049_v1 = vadd.f32 %v3033_v6, %v3000_v19  ;;  %v3628_v30 = vadd.f32 %v3612_v2, %v3580_v40  ;;  %v2857_v28 = vadd.f32 %v2841_v63, %v2809_v4  ;;  %v3469_v33 = vmul.f32 %v6078_v32, %v6236_v43  ;;  %v2970_v43 = vld [vmem:[#allocation2 + $0x620] sm:$0xff] }
 0x1bc   :  { %v3517_v36 = vmul.f32 %v6085_v3, %v3788_v46  ;;  %4670 = vmatmul.mubr.msk.f32.vlgmr.msra.gmra.mxu1 %vm54_vm0, %v3819_v14  ;;  %v3565_v48 = vmul.f32 %v5970_v51, %v2921_v20  ;;  %v3613_v26 = vmul.f32 %v5979_v57, %v2969_v34  ;;  %v3661_v6 = vmul.f32 %v6012_v7, %v3645_v8  ;;  %v3068_v20 = vld [vmem:[#allocation2 + $0x98] sm:$0xff]  ;;  %v3646_v19 = vld [vmem:[#allocation2 + $0x441] sm:$0xff] }
 0x1bd   :  { %v3098_v41 = vadd.f32 %v3082_v17, %v3049_v1  ;;  %v3676_v53 = vadd.f32 %v3660_v16, %v3628_v30  ;;  %v2905_v29 = vadd.f32 %v2889_v0, %v2857_v28  ;;  %v3485_v10 = vadd.f32 %v3469_v33, %v3437_v58  ;;  %v6294_v34 = vld [vmem:[#allocation2 + $0x278] sm:$0xff] }
 0x1be   :  { %v3709_v5 = vmul.f32 %v5986_v13, %v3067_v31  ;;  %v3757_v2 = vmul.f32 %v6021_v9, %v3115_v12  ;;  %v6290_v17 = vmul.f32 %v5995_v45, %v3789_v61  ;;  %v2762_v42 = vmul.f32 %v6052_v62, %v3018_v47 }
 0x1bf   :  { %v3146_v46 = vadd.f32 %v6247_v44, %v3098_v41  ;;  %v3724_v37 = vadd.f32 %v3708_v11, %v3676_v53  ;;  %v2953_v23 = vadd.f32 %v2937_v55, %v2905_v29  ;;  %v3533_v24 = vadd.f32 %v3517_v36, %v3485_v10  ;;  %v2923_v41 = vld [vmem:[#allocation2 + $0x458] sm:$0xff]  ;;  %v3020_v29 = vld [vmem:[#allocation2 + $0x28f] sm:$0xff] }
 0x1c0   :  { %v2794_v16 = vmul.f32 %v6078_v32, %v3067_v31  ;;  %v2842_v44 = vmul.f32 %v6085_v3, %v3115_v12  ;;  %v2890_v21 = vmul.f32 %v5970_v51, %v2874_v60  ;;  %v2938_v35 = vmul.f32 %v5979_v57, %v2922_v27  ;;  %v3069_v10 = vld [vmem:[#allocation2 + $0xb0] sm:$0xff] }
 0x1c1   :  { %4646 = vmatprep.mubr.msk.f32.mxu0 %vm54_vm0, %v3146_v46  ;;  %v2986_v52 = vmul.f32 %v6012_v7, %v2970_v43  ;;  %v3772_v59 = vadd.f32 %v3756_v38, %v3724_v37  ;;  %v3001_v11 = vadd.f32 %v2985_v25, %v2953_v23  ;;  %v3581_v47 = vadd.f32 %v3565_v48, %v3533_v24  ;;  %v3790_v38 = vld [vmem:[#allocation2 + $0x99] sm:$0xff] }
 0x1c2   :  { %v2810_v15 = vadd.f32 %v2794_v16, %v2762_v42  ;;  %v3035_v54 = vmul.f32 %v5986_v13, %v3019_v39  ;;  %v3084_v63 = vmul.f32 %v6021_v9, %v3068_v20  ;;  %v6305_v0 = vmul.f32 %v5995_v45, %v6294_v34  ;;  %v2971_v48 = vld [vmem:[#allocation2 + $0x638] sm:$0xff]  ;;  %v3117_v42 = vld [vmem:[#allocation2 + $0x290] sm:$0xff] }
 0x1c3   :  { %v3438_v22 = vmul.f32 %v6052_v62, %v3067_v31  ;;  %v3820_v55 = vadd.f32 %v6261_v49, %v3772_v59  ;;  %v3050_v40 = vadd.f32 %v3034_v50, %v3001_v11  ;;  %v3629_v4 = vadd.f32 %v3613_v26, %v3581_v47  ;;  %v2875_v49 = vld [vmem:[#allocation2 + $0x637] sm:$0xff] }
 0x1c4   :  { %v2858_v8 = vadd.f32 %v2842_v44, %v2810_v15  ;;  %v3470_v25 = vmul.f32 %v6078_v32, %v3115_v12  ;;  %v3518_v14 = vmul.f32 %v6085_v3, %v3789_v61  ;;  %v3566_v1 = vmul.f32 %v5970_v51, %v2922_v27 }
 0x1c5   :  { %v3614_v58 = vmul.f32 %v5979_v57, %v2970_v43  ;;  %4672 = vmatprep.mubr.msk.f32.mxu1 %vm54_vm0, %v3820_v55  ;;  %v3099_v30 = vadd.f32 %v3083_v56, %v3050_v40  ;;  %v3677_v28 = vadd.f32 %v3661_v6, %v3629_v4  ;;  %v3662_v33 = vmul.f32 %v6012_v7, %v3646_v19  ;;  %v3791_v19 = vld [vmem:[#allocation2 + $0xb1] sm:$0xff] }
 0x1c6   :  { %v2906_v31 = vadd.f32 %v2890_v21, %v2858_v8  ;;  %v3486_v50 = vadd.f32 %v3470_v25, %v3438_v22  ;;  %v3710_v36 = vmul.f32 %v5986_v13, %v3068_v20  ;;  %v3758_v12 = vmul.f32 %v6021_v9, %v6294_v34  ;;  %v3647_v21 = vld [vmem:[#allocation2 + $0x459] sm:$0xff] }
 0x1c7   :  { %v6319_v61 = vmul.f32 %v5995_v45, %v3790_v38  ;;  %v3147_v26 = vadd.f32 %v6276_v18, %v3099_v30  ;;  %v3725_v53 = vadd.f32 %v3709_v5, %v3677_v28  ;;  %v2763_v6 = vmul.f32 %v6052_v62, %v3019_v39 }
 0x1c8   :  { %v2954_v56 = vadd.f32 %v2938_v35, %v2906_v31  ;;  %v3534_v60 = vadd.f32 %v3518_v14, %v3486_v50  ;;  %v2795_v27 = vmul.f32 %v6078_v32, %v3068_v20  ;;  %v2843_v43 = vmul.f32 %v6085_v3, %v6294_v34  ;;  %v2876_v14 = vld [vmem:[#allocation2 + $0x64f] sm:$0xff]  ;;  %v3021_v50 = vld [vmem:[#allocation2 + $0x2a7] sm:$0xff] }
 0x1c9   :  { %v2891_v46 = vmul.f32 %v5970_v51, %v2875_v49  ;;  %4647 = vmatmul.mubr.msk.f32.gmra.mxu0 %vm54_vm0, %v3147_v26  ;;  %v3773_v37 = vadd.f32 %v3757_v2, %v3725_v53  ;;  %v2939_v18 = vmul.f32 %v5979_v57, %v2923_v41  ;;  %v2987_v5 = vmul.f32 %v6012_v7, %v2971_v48 }
 0x1ca   :  { %v3002_v23 = vadd.f32 %v2986_v52, %v2954_v56  ;;  %v3582_v24 = vadd.f32 %v3566_v1, %v3534_v60  ;;  %v2811_v16 = vadd.f32 %v2795_v27, %v2763_v6  ;;  %v3036_v39 = vmul.f32 %v5986_v13, %v3020_v29  ;;  %v2924_v1 = vld [vmem:[#allocation2 + $0x470] sm:$0xff] }
 0x1cb   :  { %v3085_v44 = vmul.f32 %v6021_v9, %v3069_v10  ;;  %v3821_v35 = vadd.f32 %v6290_v17, %v3773_v37  ;;  %v6334_v11 = vmul.f32 %v5995_v45, %v3117_v42  ;;  %v3439_v2 = vmul.f32 %v6052_v62, %v3068_v20 }
 0x1cc   :  { %v3051_v59 = vadd.f32 %v3035_v54, %v3002_v23  ;;  %v3630_v52 = vadd.f32 %v3614_v58, %v3582_v24  ;;  %v2859_v47 = vadd.f32 %v2843_v43, %v2811_v16  ;;  %v3471_v15 = vmul.f32 %v6078_v32, %v6294_v34  ;;  %v2972_v34 = vld [vmem:[#allocation2 + $0x650] sm:$0xff] }
 0x1cd   :  { %v3519_v22 = vmul.f32 %v6085_v3, %v3790_v38  ;;  %4673 = vmatmul.mubr.msk.f32.gmra.mxu1 %vm54_vm0, %v3821_v35  ;;  %v3567_v40 = vmul.f32 %v5970_v51, %v2923_v41  ;;  %v3615_v17 = vmul.f32 %v5979_v57, %v2971_v48  ;;  %v3663_v54 = vmul.f32 %v6012_v7, %v3647_v21  ;;  %v6352_v41 = vld [vmem:[#allocation2 + $0xc8] sm:$0xff]  ;;  %v3648_v23 = vld [vmem:[#allocation2 + $0x471] sm:$0xff] }
 0x1ce   :  { %v3100_v55 = vadd.f32 %v3084_v63, %v3051_v59  ;;  %v3678_v4 = vadd.f32 %v3662_v33, %v3630_v52  ;;  %v2907_v8 = vadd.f32 %v2891_v46, %v2859_v47  ;;  %v3487_v20 = vadd.f32 %v3471_v15, %v3439_v2  ;;  %v6354_v48 = vld [vmem:[#allocation2 + $0x2a8] sm:$0xff] }
 0x1cf   :  { %v3711_v25 = vmul.f32 %v5986_v13, %v3069_v10  ;;  %v3759_v58 = vmul.f32 %v6021_v9, %v3117_v42  ;;  %v6348_v63 = vmul.f32 %v5995_v45, %v3791_v19  ;;  %v2764_v30 = vmul.f32 %v6052_v62, %v3020_v29 }
 0x1d0   :  { %v3148_v38 = vadd.f32 %v6305_v0, %v3100_v55  ;;  %v3726_v28 = vadd.f32 %v3710_v36, %v3678_v4  ;;  %v2955_v31 = vadd.f32 %v2939_v18, %v2907_v8  ;;  %v3535_v49 = vadd.f32 %v3519_v22, %v3487_v20 }
 0x1d1   :  { %v2796_v33 = vmul.f32 %v6078_v32, %v3069_v10  ;;  %v2844_v0 = vmul.f32 %v6085_v3, %v3117_v42  ;;  %v2892_v26 = vmul.f32 %v5970_v51, %v2876_v14  ;;  %v2940_v53 = vmul.f32 %v5979_v57, %v2924_v1  ;;  %v6401_v14 = vld [vmem:[%s7078_s4 + $0x4] ss:$0 sm:$0xff] }
 0x1d2   :  { %4649 = vmatprep.mubr.msk.f32.mxu0 %vm54_vm0, %v3148_v38  ;;  %v2988_v56 = vmul.f32 %v6012_v7, %v2972_v34  ;;  %v3774_v36 = vadd.f32 %v3758_v12, %v3726_v28  ;;  %v3003_v6 = vadd.f32 %v2987_v5, %v2955_v31  ;;  %v3583_v29 = vadd.f32 %v3567_v40, %v3535_v49  ;;  %v3792_v5 = vld [vmem:[#allocation2 + $0xc9] sm:$0xff]  ;;  %v3071_v38 = vld [vmem:[#allocation2 + $0xe0] sm:$0xff] }
 0x1d3   :  { %v2812_v60 = vadd.f32 %v2796_v33, %v2764_v30  ;;  %v3037_v27 = vmul.f32 %v5986_v13, %v3021_v50  ;;  %v3086_v43 = vmul.f32 %v6021_v9, %v6352_v41  ;;  %v6366_v46 = vmul.f32 %v5995_v45, %v6354_v48  ;;  %v6408_v31 = vld [vmem:[%s7078_s4 + $0x6] ss:$0 sm:$0xff] }
 0x1d4   :  { %v3440_v37 = vmul.f32 %v6052_v62, %v3069_v10  ;;  %v3822_v18 = vadd.f32 %v6319_v61, %v3774_v36  ;;  %v3052_v24 = vadd.f32 %v3036_v39, %v3003_v6  ;;  %v3631_v16 = vadd.f32 %v3615_v17, %v3583_v29  ;;  %v2877_v61 = vld [vmem:[#allocation2 + $0x667] sm:$0xff] }
 0x1d5   :  { %v2860_v12 = vadd.f32 %v2844_v0, %v2812_v60  ;;  %v3472_v21 = vmul.f32 %v6078_v32, %v3117_v42  ;;  %v3520_v35 = vmul.f32 %v6085_v3, %v3791_v19  ;;  %v3568_v59 = vmul.f32 %v5970_v51, %v2924_v1  ;;  %v2973_v19 = vld [vmem:[#allocation2 + $0x668] sm:$0xff]  ;;  %v3119_v33 = vld [vmem:[#allocation2 + $0x2c0] sm:$0xff] }
 0x1d6   :  { %v3616_v2 = vmul.f32 %v5979_v57, %v2972_v34  ;;  %4675 = vmatprep.mubr.msk.f32.mxu1 %vm54_vm0, %v3822_v18  ;;  %v3101_v52 = vadd.f32 %v3085_v44, %v3052_v24  ;;  %v3679_v47 = vadd.f32 %v3663_v54, %v3631_v16  ;;  %v3664_v15 = vmul.f32 %v6012_v7, %v3648_v23  ;;  %v2925_v57 = vld [vmem:[#allocation2 + $0x488] sm:$0xff]  ;;  %v3022_v54 = vld [vmem:[#allocation2 + $0x2bf] sm:$0xff]  ;;  %v2782_v18 = vld [vmem:[#allocation2 + $0x110] sm:$0xff] }
 0x1d7   :  { %v2908_v10 = vadd.f32 %v2892_v26, %v2860_v12  ;;  %v3488_v39 = vadd.f32 %v3472_v21, %v3440_v37  ;;  %v3712_v22 = vmul.f32 %v5986_v13, %v6352_v41  ;;  %v6380_v42 = vmul.f32 %v6021_v9, %v6354_v48  ;;  %v2750_v60 = vld [vmem:[#allocation2 + $0x2ef] sm:$0xff] }
 0x1d8   :  { %v6383_v51 = vmul.f32 %v5995_v45, %v3792_v5  ;;  %v3149_v44 = vadd.f32 %v6334_v11, %v3101_v52  ;;  %v3727_v55 = vadd.f32 %v3711_v25, %v3679_v47  ;;  %v2765_v17 = vmul.f32 %v6052_v62, %v3021_v50  ;;  %v6394_v45 = vld [vmem:[%s7078_s4 + $0x3] ss:$0 sm:$0xff]  ;;  %v3649_v50 = vld [vmem:[#allocation2 + $0x489] sm:$0xff] }
 0x1d9   :  { %v2956_v40 = vadd.f32 %v2940_v53, %v2908_v10  ;;  %v3536_v4 = vadd.f32 %v3520_v35, %v3488_v39  ;;  %v2797_v13 = vmul.f32 %v6078_v32, %v6352_v41  ;;  %v2845_v8 = vmul.f32 %v6085_v3, %v6354_v48  ;;  %v2878_v21 = vld [vmem:[#allocation2 + $0x6af] sm:$0xff]  ;;  %v6451_v10 = vld [vmem:[%s7078_s4] ss:$0 sm:$0xff] }
 0x1da   :  { %v2893_v20 = vmul.f32 %v6394_v45, %v2877_v61  ;;  %4650 = vmatmul.mubr.msk.f32.gmra.mxu0 %vm54_vm0, %v3149_v44  ;;  %v3775_v11 = vadd.f32 %v3759_v58, %v3727_v55  ;;  %v2941_v1 = vmul.f32 %v6401_v14, %v2925_v57  ;;  %v2989_v34 = vmul.f32 %v6012_v7, %v2973_v19  ;;  %v6418_v7 = vld [vmem:[%s7078_s4 + $0x8] ss:$0 sm:$0xff]  ;;  %v2974_v35 = vld [vmem:[#allocation2 + $0x6b0] sm:$0xff] }
 0x1db   :  { %v3004_v25 = vadd.f32 %v2988_v56, %v2956_v40  ;;  %v3584_v30 = vadd.f32 %v3568_v59, %v3536_v4  ;;  %v2813_v28 = vadd.f32 %v2797_v13, %v2765_v17  ;;  %v3038_v58 = vmul.f32 %v6408_v31, %v3022_v54  ;;  %v6455_v44 = vld [vmem:[#allocation2 + $0x128] sm:$0xff] }
 0x1dc   :  { %v6412_v49 = vmul.f32 %v6021_v9, %v3071_v38  ;;  %v3823_v0 = vadd.f32 %v6348_v63, %v3775_v11  ;;  %v6421_v53 = vmul.f32 %v6418_v7, %v3119_v33  ;;  %v3441_v56 = vmul.f32 %v6052_v62, %v6352_v41  ;;  %v3793_v63 = vld [vmem:[#allocation2 + $0xe1] sm:$0xff] }
 0x1dd   :  { %v3053_v26 = vadd.f32 %v3037_v27, %v3004_v25  ;;  %v3632_v36 = vadd.f32 %v3616_v2, %v3584_v30  ;;  %v2861_v6 = vadd.f32 %v2845_v8, %v2813_v28  ;;  %v3473_v9 = vmul.f32 %v6078_v32, %v6354_v48  ;;  %v6434_v62 = vld [vmem:[%s7078_s4 + $0x5] ss:$0 sm:$0xff]  ;;  %v2830_v48 = vld [vmem:[#allocation2 + $0x2f0] sm:$0xff]  ;;  %v6442_v2 = vld [vmem:[%s7078_s4 + $0x7] ss:$0 sm:$0xff] }
 0x1de   :  { %v3521_v29 = vmul.f32 %v6085_v3, %v3792_v5  ;;  %4676 = vmatmul.mubr.msk.f32.gmra.mxu1 %vm54_vm0, %v3823_v0  ;;  %v3569_v37 = vmul.f32 %v6394_v45, %v2925_v57  ;;  %v3617_v23 = vmul.f32 %v6401_v14, %v2973_v19  ;;  %v3665_v41 = vmul.f32 %v6434_v62, %v3649_v50  ;;  %v3023_v19 = vld [vmem:[#allocation2 + $0x307] sm:$0xff]  ;;  %v6477_v50 = vld [vmem:[%s7078_s4 + $0x1] ss:$0 sm:$0xff] }
 0x1df   :  { %v3102_v27 = vadd.f32 %v3086_v43, %v3053_v26  ;;  %v3680_v24 = vadd.f32 %v3664_v15, %v3632_v36  ;;  %v2909_v16 = vadd.f32 %v2893_v20, %v2861_v6  ;;  %v3489_v12 = vadd.f32 %v3473_v9, %v3441_v56  ;;  %v2926_v43 = vld [vmem:[#allocation2 + $0x4d0] sm:$0xff]  ;;  %v6457_v55 = vld [vmem:[#allocation2 + $0x308] sm:$0xff]  ;;  %v6483_v26 = vld [vmem:[%s7078_s4 + $0x2] ss:$0 sm:$0xff] }
 0x1e0   :  { %v3713_v5 = vmul.f32 %v6408_v31, %v3071_v38  ;;  %v3761_v52 = vmul.f32 %v6442_v2, %v3119_v33  ;;  %v6446_v47 = vmul.f32 %v6418_v7, %v3793_v63  ;;  %v2766_v15 = vmul.f32 %v6451_v10, %v2750_v60  ;;  %v3506_v20 = vld [vmem:[#allocation2 + $0x111] sm:$0xff]  ;;  %v3794_v33 = vld [vmem:[#allocation2 + $0x129] sm:$0xff] }
 0x1e1   :  { %v3150_v59 = vadd.f32 %v6366_v46, %v3102_v27  ;;  %v3728_v61 = vadd.f32 %v3712_v22, %v3680_v24  ;;  %v2957_v39 = vadd.f32 %v2941_v1, %v2909_v16  ;;  %v3537_v46 = vadd.f32 %v3521_v29, %v3489_v12  ;;  %v3650_v38 = vld [vmem:[#allocation2 + $0x4d1] sm:$0xff]  ;;  %v2879_v63 = vld [vmem:[#allocation2 + $0x6c7] sm:$0xff]  ;;  %v3024_v12 = vld [vmem:[#allocation2 + $0x31f] sm:$0xff] }
 0x1e2   :  { %v2798_v57 = vmul.f32 %v6078_v32, %v2782_v18  ;;  %v2846_v40 = vmul.f32 %v6085_v3, %v2830_v48  ;;  %v2894_v17 = vmul.f32 %v6394_v45, %v2878_v21  ;;  %v2942_v54 = vmul.f32 %v6401_v14, %v2926_v43  ;;  %v3073_v21 = vld [vmem:[#allocation2 + $0x140] sm:$0xff] }
 0x1e3   :  { %4652 = vmatprep.mubr.msk.f32.mxu0 %vm54_vm0, %v3150_v59  ;;  %v2990_v4 = vmul.f32 %v6434_v62, %v2974_v35  ;;  %v3776_v22 = vadd.f32 %v6380_v42, %v3728_v61  ;;  %v3005_v13 = vadd.f32 %v2989_v34, %v2957_v39  ;;  %v3585_v8 = vadd.f32 %v3569_v37, %v3537_v46  ;;  %v3121_v61 = vld [vmem:[#allocation2 + $0x320] sm:$0xff] }
 0x1e4   :  { %v2814_v32 = vadd.f32 %v2798_v57, %v2766_v15  ;;  %v3039_v11 = vmul.f32 %v6408_v31, %v3023_v19  ;;  %v3088_v25 = vmul.f32 %v6442_v2, %v6455_v44  ;;  %v6470_v3 = vmul.f32 %v6418_v7, %v6457_v55 }
 0x1e5   :  { %v3442_v1 = vmul.f32 %v6451_v10, %v2782_v18  ;;  %v3824_v30 = vadd.f32 %v6383_v51, %v3776_v22  ;;  %v3054_v28 = vadd.f32 %v3038_v58, %v3005_v13  ;;  %v3633_v42 = vadd.f32 %v3617_v23, %v3585_v8  ;;  %v2927_v18 = vld [vmem:[#allocation2 + $0x4e8] sm:$0xff] }
 0x1e6   :  { %v2862_v34 = vadd.f32 %v2846_v40, %v2814_v32  ;;  %v3474_v0 = vmul.f32 %v6477_v50, %v2830_v48  ;;  %v3522_v56 = vmul.f32 %v6483_v26, %v3506_v20  ;;  %v3570_v51 = vmul.f32 %v6394_v45, %v2926_v43  ;;  %v2975_v48 = vld [vmem:[#allocation2 + $0x6c8] sm:$0xff] }
 0x1e7   :  { %v3618_v58 = vmul.f32 %v6401_v14, %v2974_v35  ;;  %4678 = vmatprep.mubr.msk.f32.mxu1 %vm54_vm0, %v3824_v30  ;;  %v3103_v36 = vadd.f32 %v6412_v49, %v3054_v28  ;;  %v3681_v6 = vadd.f32 %v3665_v41, %v3633_v42  ;;  %v3666_v29 = vmul.f32 %v6434_v62, %v3650_v38  ;;  %v3795_v38 = vld [vmem:[#allocation2 + $0x141] sm:$0xff] }
 0x1e8   :  { %v2910_v9 = vadd.f32 %v2894_v17, %v2862_v34  ;;  %v3490_v60 = vadd.f32 %v3474_v0, %v3442_v1  ;;  %v3714_v27 = vmul.f32 %v6408_v31, %v6455_v44  ;;  %v3762_v37 = vmul.f32 %v6442_v2, %v6457_v55 }
 0x1e9   :  { %v6496_v23 = vmul.f32 %v6418_v7, %v3794_v33  ;;  %v3151_v24 = vadd.f32 %v6421_v53, %v3103_v36  ;;  %v3729_v49 = vadd.f32 %v3713_v5, %v3681_v6  ;;  %v2767_v16 = vmul.f32 %v6451_v10, %v3023_v19 }
 0x1ea   :  { %v2958_v41 = vadd.f32 %v2942_v54, %v2910_v9  ;;  %v3538_v43 = vadd.f32 %v3522_v56, %v3490_v60  ;;  %v2799_v35 = vmul.f32 %v6477_v50, %v6455_v44  ;;  %v2847_v59 = vmul.f32 %v6483_v26, %v6457_v55  ;;  %v3651_v54 = vld [vmem:[#allocation2 + $0x4e9] sm:$0xff]  ;;  %v2880_v56 = vld [vmem:[#allocation2 + $0x6df] sm:$0xff]  ;;  %v3025_v60 = vld [vmem:[#allocation2 + $0x337] sm:$0xff] }
 0x1eb   :  { %v2895_v15 = vmul.f32 %v6394_v45, %v2879_v63  ;;  %4653 = vmatmul.mubr.msk.f32.gmra.mxu0 %vm54_vm0, %v3151_v24  ;;  %v3777_v39 = vadd.f32 %v3761_v52, %v3729_v49  ;;  %v2943_v5 = vmul.f32 %v6401_v14, %v2927_v18  ;;  %v2991_v46 = vmul.f32 %v6434_v62, %v2975_v48 }
 0x1ec   :  { %v3006_v53 = vadd.f32 %v2990_v4, %v2958_v41  ;;  %v3586_v57 = vadd.f32 %v3570_v51, %v3538_v43  ;;  %v2815_v19 = vadd.f32 %v2799_v35, %v2767_v16  ;;  %v3040_v40 = vmul.f32 %v6408_v31, %v3024_v12  ;;  %v2928_v51 = vld [vmem:[#allocation2 + $0x500] sm:$0xff] }
 0x1ed   :  { %v3089_v17 = vmul.f32 %v6442_v2, %v3073_v21  ;;  %v3825_v22 = vadd.f32 %v6446_v47, %v3777_v39  ;;  %v6512_v8 = vmul.f32 %v6418_v7, %v3121_v61  ;;  %v3443_v52 = vmul.f32 %v6451_v10, %v6455_v44 }
 0x1ee   :  { %v3055_v13 = vadd.f32 %v3039_v11, %v3006_v53  ;;  %v3634_v4 = vadd.f32 %v3618_v58, %v3586_v57  ;;  %v2863_v32 = vadd.f32 %v2847_v59, %v2815_v19  ;;  %v3475_v20 = vmul.f32 %v6477_v50, %v6457_v55  ;;  %v2976_v55 = vld [vmem:[#allocation2 + $0x6e0] sm:$0xff] }
 0x1ef   :  { %v3523_v1 = vmul.f32 %v6483_v26, %v3794_v33  ;;  %4679 = vmatmul.mubr.msk.f32.gmra.mxu1 %vm54_vm0, %v3825_v22  ;;  %v3571_v47 = vmul.f32 %v6394_v45, %v2927_v18  ;;  %v3619_v11 = vmul.f32 %v6401_v14, %v2975_v48  ;;  %v3667_v28 = vmul.f32 %v6434_v62, %v3651_v54  ;;  %v3074_v18 = vld [vmem:[#allocation2 + $0x158] sm:$0xff]  ;;  %v3652_v53 = vld [vmem:[#allocation2 + $0x501] sm:$0xff] }
 0x1f0   :  { %v3104_v30 = vadd.f32 %v3088_v25, %v3055_v13  ;;  %v3682_v42 = vadd.f32 %v3666_v29, %v3634_v4  ;;  %v2911_v34 = vadd.f32 %v2895_v15, %v2863_v32  ;;  %v3491_v44 = vadd.f32 %v3475_v20, %v3443_v52  ;;  %v6531_v48 = vld [vmem:[#allocation2 + $0x338] sm:$0xff] }
 0x1f1   :  { %v3715_v0 = vmul.f32 %v6408_v31, %v3073_v21  ;;  %v3763_v58 = vmul.f32 %v6442_v2, %v3121_v61  ;;  %v6527_v25 = vmul.f32 %v6418_v7, %v3795_v38  ;;  %v2768_v36 = vmul.f32 %v6451_v10, %v3024_v12 }
 0x1f2   :  { %v3152_v33 = vadd.f32 %v6470_v3, %v3104_v30  ;;  %v3730_v6 = vadd.f32 %v3714_v27, %v3682_v42  ;;  %v2959_v9 = vadd.f32 %v2943_v5, %v2911_v34  ;;  %v3539_v63 = vadd.f32 %v3523_v1, %v3491_v44  ;;  %v2929_v30 = vld [vmem:[#allocation2 + $0x518] sm:$0xff]  ;;  %v3026_v34 = vld [vmem:[#allocation2 + $0x34f] sm:$0xff] }
 0x1f3   :  { %v2800_v29 = vmul.f32 %v6477_v50, %v3073_v21  ;;  %v2848_v3 = vmul.f32 %v6483_v26, %v3121_v61  ;;  %v2896_v24 = vmul.f32 %v6394_v45, %v2880_v56  ;;  %v2944_v49 = vmul.f32 %v6401_v14, %v2928_v51  ;;  %v3075_v44 = vld [vmem:[#allocation2 + $0x170] sm:$0xff] }
 0x1f4   :  { %4655 = vmatprep.mubr.msk.f32.mxu0 %vm54_vm0, %v3152_v33  ;;  %v2992_v41 = vmul.f32 %v6434_v62, %v2976_v55  ;;  %v3778_v16 = vadd.f32 %v3762_v37, %v3730_v6  ;;  %v3007_v27 = vadd.f32 %v2991_v46, %v2959_v9  ;;  %v3587_v12 = vadd.f32 %v3571_v47, %v3539_v63  ;;  %v3796_v37 = vld [vmem:[#allocation2 + $0x159] sm:$0xff] }
 0x1f5   :  { %v2816_v43 = vadd.f32 %v2800_v29, %v2768_v36  ;;  %v3041_v35 = vmul.f32 %v6408_v31, %v3025_v60  ;;  %v3090_v59 = vmul.f32 %v6442_v2, %v3074_v18  ;;  %v6542_v15 = vmul.f32 %v6418_v7, %v6531_v48  ;;  %v2977_v47 = vld [vmem:[#allocation2 + $0x6f8] sm:$0xff]  ;;  %v3123_v36 = vld [vmem:[#allocation2 + $0x350] sm:$0xff] }
 0x1f6   :  { %v3444_v39 = vmul.f32 %v6451_v10, %v3073_v21  ;;  %v3826_v5 = vadd.f32 %v6496_v23, %v3778_v16  ;;  %v3056_v57 = vadd.f32 %v3040_v40, %v3007_v27  ;;  %v3635_v19 = vadd.f32 %v3619_v11, %v3587_v12  ;;  %v2881_v23 = vld [vmem:[#allocation2 + $0x6f7] sm:$0xff] }
 0x1f7   :  { %v2864_v54 = vadd.f32 %v2848_v3, %v2816_v43  ;;  %v3476_v46 = vmul.f32 %v6477_v50, %v3121_v61  ;;  %v3524_v22 = vmul.f32 %v6483_v26, %v3795_v38  ;;  %v3572_v13 = vmul.f32 %v6394_v45, %v2928_v51 }
 0x1f8   :  { %v3620_v52 = vmul.f32 %v6401_v14, %v2976_v55  ;;  %4681 = vmatprep.mubr.msk.f32.mxu1 %vm54_vm0, %v3826_v5  ;;  %v3105_v4 = vadd.f32 %v3089_v17, %v3056_v57  ;;  %v3683_v32 = vadd.f32 %v3667_v28, %v3635_v19  ;;  %v3668_v20 = vmul.f32 %v6434_v62, %v3652_v53  ;;  %v3797_v53 = vld [vmem:[#allocation2 + $0x171] sm:$0xff] }
 0x1f9   :  { %v2912_v21 = vadd.f32 %v2896_v24, %v2864_v54  ;;  %v3492_v40 = vadd.f32 %v3476_v46, %v3444_v39  ;;  %v3716_v1 = vmul.f32 %v6408_v31, %v3074_v18  ;;  %v3764_v61 = vmul.f32 %v6442_v2, %v6531_v48  ;;  %v3653_v24 = vld [vmem:[#allocation2 + $0x519] sm:$0xff] }
 0x1fa   :  { %v6556_v38 = vmul.f32 %v6418_v7, %v3796_v37  ;;  %v3153_v11 = vadd.f32 %v6512_v8, %v3105_v4  ;;  %v3731_v42 = vadd.f32 %v3715_v0, %v3683_v32  ;;  %v2769_v28 = vmul.f32 %v6451_v10, %v3025_v60 }
 0x1fb   :  { %v2960_v17 = vadd.f32 %v2944_v49, %v2912_v21  ;;  %v3540_v56 = vadd.f32 %v3524_v22, %v3492_v40  ;;  %v2801_v51 = vmul.f32 %v6477_v50, %v3074_v18  ;;  %v2849_v55 = vmul.f32 %v6483_v26, %v6531_v48  ;;  %v2882_v22 = vld [vmem:[#allocation2 + $0x70f] sm:$0xff]  ;;  %v3027_v40 = vld [vmem:[#allocation2 + $0x367] sm:$0xff] }
 0x1fc   :  { %v2897_v33 = vmul.f32 %v6394_v45, %v2881_v23  ;;  %4656 = vmatmul.mubr.msk.f32.gmra.mxu0 %vm54_vm0, %v3153_v11  ;;  %v3779_v6 = vadd.f32 %v3763_v58, %v3731_v42  ;;  %v2945_v8 = vmul.f32 %v6401_v14, %v2929_v30  ;;  %v2993_v0 = vmul.f32 %v6434_v62, %v2977_v47 }
 0x1fd   :  { %v3008_v9 = vadd.f32 %v2992_v41, %v2960_v17  ;;  %v3588_v63 = vadd.f32 %v3572_v13, %v3540_v56  ;;  %v2817_v29 = vadd.f32 %v2801_v51, %v2769_v28  ;;  %v3042_v60 = vmul.f32 %v6408_v31, %v3026_v34  ;;  %v2930_v13 = vld [vmem:[#allocation2 + $0x530] sm:$0xff] }
 0x1fe   :  { %v3091_v3 = vmul.f32 %v6442_v2, %v3075_v44  ;;  %v3827_v49 = vadd.f32 %v6527_v25, %v3779_v6  ;;  %v6571_v27 = vmul.f32 %v6418_v7, %v3123_v36  ;;  %v3445_v58 = vmul.f32 %v6451_v10, %v3074_v18 }
 0x1ff   :  { %v3057_v16 = vadd.f32 %v3041_v35, %v3008_v9  ;;  %v3636_v41 = vadd.f32 %v3620_v52, %v3588_v63  ;;  %v2865_v12 = vadd.f32 %v2849_v55, %v2817_v29  ;;  %v3477_v43 = vmul.f32 %v6477_v50, %v6531_v48  ;;  %v2978_v48 = vld [vmem:[#allocation2 + $0x710] sm:$0xff] }
 0x200   :  { %v3525_v39 = vmul.f32 %v6483_v26, %v3796_v37  ;;  %4682 = vmatmul.mubr.msk.f32.gmra.mxu1 %vm54_vm0, %v3827_v49  ;;  %v3573_v57 = vmul.f32 %v6394_v45, %v2929_v30  ;;  %v3621_v25 = vmul.f32 %v6401_v14, %v2977_v47  ;;  %v3669_v35 = vmul.f32 %v6434_v62, %v3653_v24  ;;  %v3076_v30 = vld [vmem:[#allocation2 + $0x188] sm:$0xff]  ;;  %v3654_v9 = vld [vmem:[#allocation2 + $0x531] sm:$0xff] }
 0x201   :  { %v3106_v5 = vadd.f32 %v3090_v59, %v3057_v16  ;;  %v3684_v19 = vadd.f32 %v3668_v20, %v3636_v41  ;;  %v2913_v54 = vadd.f32 %v2897_v33, %v2865_v12  ;;  %v3493_v18 = vadd.f32 %v3477_v43, %v3445_v58  ;;  %v6589_v47 = vld [vmem:[#allocation2 + $0x368] sm:$0xff] }
 0x202   :  { %v3717_v46 = vmul.f32 %v6408_v31, %v3075_v44  ;;  %v3765_v52 = vmul.f32 %v6442_v2, %v3123_v36  ;;  %v6585_v59 = vmul.f32 %v6418_v7, %v3797_v53  ;;  %v2770_v4 = vmul.f32 %v6451_v10, %v3026_v34 }
 0x203   :  { %v3154_v37 = vadd.f32 %v6542_v15, %v3106_v5  ;;  %v3732_v32 = vadd.f32 %v3716_v1, %v3684_v19  ;;  %v2961_v21 = vadd.f32 %v2945_v8, %v2913_v54  ;;  %v3541_v23 = vadd.f32 %v3525_v39, %v3493_v18  ;;  %v2931_v5 = vld [vmem:[#allocation2 + $0x548] sm:$0xff]  ;;  %v3028_v54 = vld [vmem:[#allocation2 + $0x37f] sm:$0xff] }
 0x204   :  { %v2802_v20 = vmul.f32 %v6477_v50, %v3075_v44  ;;  %v2850_v15 = vmul.f32 %v6483_v26, %v3123_v36  ;;  %v2898_v11 = vmul.f32 %v6394_v45, %v2882_v22  ;;  %v2946_v42 = vmul.f32 %v6401_v14, %v2930_v13  ;;  %v3077_v18 = vld [vmem:[#allocation2 + $0x1a0] sm:$0xff] }
 0x205   :  { %4658 = vmatprep.mubr.msk.f32.mxu0 %vm54_vm0, %v3154_v37  ;;  %v2994_v17 = vmul.f32 %v6434_v62, %v2978_v48  ;;  %v3780_v28 = vadd.f32 %v3764_v61, %v3732_v32  ;;  %v3009_v1 = vadd.f32 %v2993_v0, %v2961_v21  ;;  %v3589_v34 = vadd.f32 %v3573_v57, %v3541_v23  ;;  %v3798_v61 = vld [vmem:[#allocation2 + $0x189] sm:$0xff] }
 0x206   :  { %v2818_v56 = vadd.f32 %v2802_v20, %v2770_v4  ;;  %v3043_v51 = vmul.f32 %v6408_v31, %v3027_v40  ;;  %v3092_v55 = vmul.f32 %v6442_v2, %v3076_v30  ;;  %v6600_v33 = vmul.f32 %v6418_v7, %v6589_v47  ;;  %v2979_v57 = vld [vmem:[#allocation2 + $0x728] sm:$0xff]  ;;  %v6624_v4 = vld [vmem:[#allocation2 + $0x380] sm:$0xff] }
 0x207   :  { %v3446_v6 = vmul.f32 %v6451_v10, %v3075_v44  ;;  %v3828_v8 = vadd.f32 %v6556_v38, %v3780_v28  ;;  %v3058_v63 = vadd.f32 %v3042_v60, %v3009_v1  ;;  %v3637_v29 = vadd.f32 %v3621_v25, %v3589_v34  ;;  %v2883_v38 = vld [vmem:[#allocation2 + $0x727] sm:$0xff] }
 0x208   :  { %v2866_v24 = vadd.f32 %v2850_v15, %v2818_v56  ;;  %v3478_v0 = vmul.f32 %v6477_v50, %v3123_v36  ;;  %v3526_v49 = vmul.f32 %v6483_v26, %v3797_v53  ;;  %v3574_v16 = vmul.f32 %v6394_v45, %v2930_v13 }
 0x209   :  { %v3622_v58 = vmul.f32 %v6401_v14, %v2978_v48  ;;  %4684 = vmatprep.mubr.msk.f32.mxu1 %vm54_vm0, %v3828_v8  ;;  %v3107_v41 = vadd.f32 %v3091_v3, %v3058_v63  ;;  %v3685_v12 = vadd.f32 %v3669_v35, %v3637_v29  ;;  %v3670_v43 = vmul.f32 %v6434_v62, %v3654_v9  ;;  %v3799_v9 = vld [vmem:[#allocation2 + $0x1a1] sm:$0xff] }
 0x20a   :  { %v2914_v44 = vadd.f32 %v2898_v11, %v2866_v24  ;;  %v3494_v60 = vadd.f32 %v3478_v0, %v3446_v6  ;;  %v3718_v39 = vmul.f32 %v6408_v31, %v3076_v30  ;;  %v6613_v36 = vmul.f32 %v6442_v2, %v6589_v47  ;;  %v3655_v11 = vld [vmem:[#allocation2 + $0x549] sm:$0xff] }
 0x20b   :  { %v6616_v53 = vmul.f32 %v6418_v7, %v3798_v61  ;;  %v3155_v25 = vadd.f32 %v6571_v27, %v3107_v41  ;;  %v3733_v3 = vadd.f32 %v3717_v46, %v3685_v12  ;;  %v2771_v19 = vmul.f32 %v6451_v10, %v3027_v40 }
 0x20c   :  { %v2962_v35 = vadd.f32 %v2946_v42, %v2914_v44  ;;  %v3542_v22 = vadd.f32 %v3526_v49, %v3494_v60  ;;  %v2803_v13 = vmul.f32 %v6477_v50, %v3076_v30  ;;  %v2851_v48 = vmul.f32 %v6483_v26, %v6589_v47  ;;  %v2884_v49 = vld [vmem:[#allocation2 + $0x73f] sm:$0xff]  ;;  %v3029_v60 = vld [vmem:[#allocation2 + $0x397] sm:$0xff] }
 0x20d   :  { %v2899_v37 = vmul.f32 %v6394_v45, %v2883_v38  ;;  %4659 = vmatmul.mubr.msk.f32.gmra.mxu0 %vm54_vm0, %v3155_v25  ;;  %v3781_v32 = vadd.f32 %v3765_v52, %v3733_v3  ;;  %v2947_v46 = vmul.f32 %v6401_v14, %v2931_v5  ;;  %v2995_v21 = vmul.f32 %v6434_v62, %v2979_v57  ;;  %v6657_v25 = vpop.f32.mrf.mxu0 }
 0x20e   :  { %v3010_v27 = vadd.f32 %v2994_v17, %v2962_v35  ;;  %v3590_v23 = vadd.f32 %v3574_v16, %v3542_v22  ;;  %v2819_v20 = vadd.f32 %v2803_v13, %v2771_v19  ;;  %v3044_v40 = vmul.f32 %v6408_v31, %v3028_v54  ;;  %v2932_v16 = vld [vmem:[#allocation2 + $0x560] sm:$0xff] }
 0x20f   :  { %v3093_v15 = vmul.f32 %v6442_v2, %v3077_v18  ;;  %v3829_v42 = vadd.f32 %v6585_v59, %v3781_v32  ;;  %v6634_v1 = vmul.f32 %v6418_v7, %v6624_v4  ;;  %v3447_v52 = vmul.f32 %v6451_v10, %v3076_v30 }
 0x210   :  { %v3059_v28 = vadd.f32 %v3043_v51, %v3010_v27  ;;  %v3638_v17 = vadd.f32 %v3622_v58, %v3590_v23  ;;  %v2867_v34 = vadd.f32 %v2851_v48, %v2819_v20  ;;  %v3479_v56 = vmul.f32 %v6477_v50, %v6589_v47  ;;  %v2980_v47 = vld [vmem:[#allocation2 + $0x740] sm:$0xff]  ;;  %v6666_v48 = vpop.f32.mrf.mxu1 }
 0x211   :  { %v3527_v6 = vmul.f32 %v6483_v26, %v3798_v61  ;;  %4685 = vmatmul.mubr.msk.f32.gmra.mxu1 %vm54_vm0, %v3829_v42  ;;  %v3575_v59 = vmul.f32 %v6394_v45, %v2931_v5  ;;  %v3623_v51 = vmul.f32 %v6401_v14, %v2979_v57  ;;  %v3671_v63 = vmul.f32 %v6434_v62, %v3655_v11  ;;  %v6653_v5 = vld [vmem:[#allocation2 + $0x1b8] sm:$0xff]  ;;  %v3656_v23 = vld [vmem:[#allocation2 + $0x561] sm:$0xff] }
 0x212   :  { %v3108_v8 = vadd.f32 %v3092_v55, %v3059_v28  ;;  %v3686_v29 = vadd.f32 %v3670_v43, %v3638_v17  ;;  %v2915_v24 = vadd.f32 %v2899_v37, %v2867_v34  ;;  %v3495_v30 = vadd.f32 %v3479_v56, %v3447_v52  ;;  %v6655_v57 = vld [vmem:[#allocation2 + $0x398] sm:$0xff]  ;;  %v6679_v28 = vpop.f32.mrf.mxu0 }
 0x213   :  { %v3719_v0 = vmul.f32 %v6408_v31, %v3077_v18  ;;  %v3767_v58 = vmul.f32 %v6442_v2, %v6624_v4  ;;  %v6649_v55 = vmul.f32 %v6418_v7, %v3799_v9  ;;  %v2772_v41 = vmul.f32 %v6451_v10, %v3028_v54  ;;  %v3800_v42 = vld [vmem:[#allocation2 + $0x1b9] sm:$0xff] }
 0x214   :  { %v3156_v61 = vadd.f32 %v6600_v33, %v3108_v8  ;;  %v3734_v12 = vadd.f32 %v3718_v39, %v3686_v29  ;;  %v2963_v44 = vadd.f32 %v2947_v46, %v2915_v24  ;;  %v3543_v43 = vadd.f32 %v3527_v6, %v3495_v30  ;;  %v2885_v8 = vld [vmem:[#allocation2 + $0x757] sm:$0xff] }
 0x215   :  { %v2804_v38 = vmul.f32 %v6477_v50, %v3077_v18  ;;  %v2852_v33 = vmul.f32 %v6483_v26, %v6624_v4  ;;  %v2900_v3 = vmul.f32 %v6394_v45, %v2884_v49  ;;  %v2948_v39 = vmul.f32 %v6401_v14, %v2932_v16  ;;  %v2933_v24 = vld [vmem:[#allocation2 + $0x578] sm:$0xff] }
 0x216   :  { %4661 = vmatprep.mubr.msk.f32.mxu0 %vm54_vm0, %v3156_v61  ;;  %v2996_v35 = vmul.f32 %v6434_v62, %v2980_v47  ;;  %v3782_v19 = vadd.f32 %v6613_v36, %v3734_v12  ;;  %v3011_v54 = vadd.f32 %v2995_v21, %v2963_v44  ;;  %v3591_v22 = vadd.f32 %v3575_v59, %v3543_v43  ;;  %v6688_v59 = vpop.f32.mrf.mxu1  ;;  %v6701_v61 = vpop.f32.mrf.mxu0 }
 0x217   :  { %v2820_v13 = vadd.f32 %v2804_v38, %v2772_v41  ;;  %v3045_v37 = vmul.f32 %v6408_v31, %v3029_v60  ;;  %v6671_v32 = vmul.f32 %v6442_v2, %v6653_v5  ;;  %v6675_v27 = vmul.f32 %v6418_v7, %v6655_v57 }
 0x218   :  { %v3448_v46 = vmul.f32 %v6451_v10, %v3077_v18  ;;  %v3830_v36 = vadd.f32 %v6616_v53, %v3782_v19  ;;  %v3060_v21 = vadd.f32 %v3044_v40, %v3011_v54  ;;  %v3639_v20 = vadd.f32 %v3623_v51, %v3591_v22 }
 0x219   :  { %v2868_v11 = vadd.f32 %v2852_v33, %v2820_v13  ;;  %v3480_v52 = vmul.f32 %v6477_v50, %v6624_v4  ;;  %v3528_v17 = vmul.f32 %v6483_v26, %v3799_v9  ;;  %v3576_v34 = vmul.f32 %v6394_v45, %v2932_v16  ;;  %v3079_v33 = vld [vmem:[#allocation2 + $0x1d0] sm:$0xff] }
 0x21a   :  { %v3624_v56 = vmul.f32 %v6401_v14, %v2980_v47  ;;  %4687 = vmatprep.mubr.msk.f32.mxu1 %vm54_vm0, %v3830_v36  ;;  %v3109_v18 = vadd.f32 %v3093_v15, %v3060_v21  ;;  %v3687_v6 = vadd.f32 %v3671_v63, %v3639_v20  ;;  %v3672_v40 = vmul.f32 %v6434_v62, %v3656_v23  ;;  %v2981_v15 = vld [vmem:[#allocation2 + $0x758] sm:$0xff]  ;;  %v3030_v47 = vld [vmem:[#allocation2 + $0x3af] sm:$0xff]  ;;  %v1935_v21 = vpop.f32.mrf.mxu0 }
 0x21b   :  { %v2916_v53 = vadd.f32 %v2900_v3, %v2868_v11  ;;  %v3496_v51 = vadd.f32 %v3480_v52, %v3448_v46  ;;  %v3720_v4 = vmul.f32 %v6408_v31, %v6653_v5  ;;  %v6694_v9 = vmul.f32 %v6442_v2, %v6655_v57  ;;  %v6711_v3 = vpop.f32.mrf.mxu1  ;;  %v3127_v13 = vld [vmem:[#allocation2 + $0x3b0] sm:$0xff]  ;;  %v3657_v46 = vld [vmem:[#allocation2 + $0x579] sm:$0xff] }
 0x21c   :  { %v6697_v29 = vmul.f32 %v6418_v7, %v3800_v42  ;;  %v3157_v63 = vadd.f32 %v6634_v1, %v3109_v18  ;;  %v3735_v30 = vadd.f32 %v3719_v0, %v3687_v6  ;;  %v2773_v16 = vmul.f32 %v6451_v10, %v3029_v60 }
 0x21d   :  { %v2964_v49 = vadd.f32 %v2948_v39, %v2916_v53  ;;  %v3544_v41 = vadd.f32 %v3528_v17, %v3496_v51  ;;  %v2805_v12 = vmul.f32 %v6477_v50, %v6653_v5  ;;  %v2853_v44 = vmul.f32 %v6483_v26, %v6655_v57  ;;  %v2608_v18 = vpop.f32.mrf.mxu1 }
 0x21e   :  { %v2901_v43 = vmul.f32 %v6394_v45, %v2885_v8  ;;  %4662 = vmatmul.mubr.msk.f32.gmra.mxu0 %vm54_vm0, %v3157_v63  ;;  %v3783_v38 = vadd.f32 %v3767_v58, %v3735_v30  ;;  %v2949_v0 = vmul.f32 %v6401_v14, %v2933_v24  ;;  %v2997_v60 = vmul.f32 %v6434_v62, %v2981_v15 }
 0x21f   :  { %v3012_v1 = vadd.f32 %v2996_v35, %v2964_v49  ;;  %v3592_v39 = vadd.f32 %v3576_v34, %v3544_v41  ;;  %v2821_v19 = vadd.f32 %v2805_v12, %v2773_v16  ;;  %v3046_v54 = vmul.f32 %v6408_v31, %v3030_v47  ;;  %v3801_v34 = vld [vmem:[#allocation2 + $0x1d1] sm:$0xff] }
 0x220   :  { %v3095_v22 = vmul.f32 %v6442_v2, %v3079_v33  ;;  %v3831_v23 = vadd.f32 %v6649_v55, %v3783_v38  ;;  %v6717_v58 = vmul.f32 %v6418_v7, %v3127_v13  ;;  %v3449_v35 = vmul.f32 %v6451_v10, %v6653_v5  ;;  %v6727_v55 = vld [vmem:[%s7081_s6] ss:$0 sm:$0xff] }
 0x221   :  { %v3061_v36 = vadd.f32 %v3045_v37, %v3012_v1  ;;  %v3640_v20 = vadd.f32 %v3624_v56, %v3592_v39  ;;  %v2869_v11 = vadd.f32 %v2853_v44, %v2821_v19  ;;  %v3481_v52 = vmul.f32 %v6477_v50, %v6655_v57 }
 0x222   :  { %v3529_v17 = vmul.f32 %v6483_v26, %v3800_v42  ;;  %4688 = vmatmul.mubr.msk.f32.gmra.mxu1 %vm54_vm0, %v3831_v23  ;;  %v3577_v10 = vmul.f32 %v6394_v45, %v2933_v24  ;;  %v3625_v5 = vmul.f32 %v6401_v14, %v2981_v15  ;;  %v3673_v56 = vmul.f32 %v6434_v62, %v3657_v46 }
 0x223   :  { %v3110_v37 = vadd.f32 %v6671_v32, %v3061_v36  ;;  %v3688_v50 = vadd.f32 %v3672_v40, %v3640_v20  ;;  %v2917_v57 = vadd.f32 %v2901_v43, %v2869_v11  ;;  %v3497_v26 = vadd.f32 %v3481_v52, %v3449_v35  ;;  %v4599_v32 = vpop.f32.mrf.mxu0 }
 0x224   :  { %v3721_v42 = vmul.f32 %v6408_v31, %v3079_v33  ;;  %v3769_v53 = vmul.f32 %v6442_v2, %v3127_v13  ;;  %v6738_v8 = vmul.f32 %v6418_v7, %v3801_v34  ;;  %v1931_v45 = vadd.f32 %v6657_v25, %v6727_v55 }
 0x225   :  { %v3158_v6 = vadd.f32 %v6675_v27, %v3110_v37  ;;  %v3736_v14 = vadd.f32 %v3720_v4, %v3688_v50  ;;  %v2965_v51 = vadd.f32 %v2949_v0, %v2917_v57  ;;  %v3545_v62 = vadd.f32 %v3529_v17, %v3497_v26  ;;  %v4625_v27 = vpop.f32.mrf.mxu1  ;;  %v1945_v30 = vpop.f32.mrf.mxu0 }
 0x226   :  { %v2604_v40 = vadd.f32 %v6666_v48, %v6727_v55  ;;  %vm2005_vm7 = vcmp.gt.f32.partialorder %v1931_v45, 0.0  ;;  %v2021_v31 = vmul.f32 0.01, %v1931_v45  ;;  %v1926_v2 = vadd.f32 %v6727_v55, %v6679_v28 }
 0x227   :  { %4664 = vmatprep.mubr.msk.f32.mxu0 %vm54_vm0, %v3158_v6  ;;  %v2599_v7 = vadd.f32 %v6727_v55, %v6688_v59  ;;  %v3784_v25 = vadd.f32 %v6694_v9, %v3736_v14  ;;  %v3013_v24 = vadd.f32 %v2997_v60, %v2965_v51  ;;  %v3593_v4 = vadd.f32 %v3577_v10, %v3545_v62  ;;  %v2618_v12 = vpop.f32.mrf.mxu1  ;;  %v4602_v60 = vpop.f32.mrf.mxu0 }
 0x228   :  { %vm2678_vm8 = vcmp.gt.f32.partialorder %v2604_v40, 0.0  ;;  %v2037_v15 = vsel %vm2005_vm7, %v1931_v45, %v2021_v31  ;;  %v2694_v63 = vmul.f32 0.01, %v2604_v40  ;;  %vm2004_vm9 = vcmp.gt.f32.partialorder %v1926_v2, 0.0 }
 0x229   :  { %v2020_v48 = vmul.f32 0.01, %v1926_v2  ;;  %v3832_v49 = vadd.f32 %v6697_v29, %v3784_v25  ;;  %v3062_v16 = vadd.f32 %v3046_v54, %v3013_v24  ;;  %v3641_v47 = vadd.f32 %v3625_v5, %v3593_v4  ;;  %2053 = vst.msk [vmem:[%s7082_s7 + $0x8] sm:$0xff] %vm54_vm0, %v2037_v15  ;;  %v1955_v11 = vpop.f32.mrf.mxu0 }
 0x22a   :  { %vm2677_vm10 = vcmp.gt.f32.partialorder %v2599_v7, 0.0  ;;  %v2710_v28 = vsel %vm2678_vm8, %v2604_v40, %v2694_v63  ;;  %v2693_v9 = vmul.f32 0.01, %v2599_v7  ;;  %v1941_v41 = vadd.f32 %v6701_v61, %v6727_v55 }
 0x22b   :  { %v2036_v59 = vsel %vm2004_vm9, %v1926_v2, %v2020_v48  ;;  %4690 = vmatprep.mubr.msk.f32.mxu1 %vm54_vm0, %v3832_v49  ;;  %v3111_v44 = vadd.f32 %v3095_v22, %v3062_v16  ;;  %v3689_v43 = vadd.f32 %v3673_v56, %v3641_v47  ;;  %4258 = vst.msk [vmem:[%s7082_s7 + $0x88] sm:$0xff] %vm54_vm0, %v2710_v28  ;;  %v4628_v22 = vpop.f32.mrf.mxu1 }
 0x22c   :  { %2052 = vst.msk [vmem:[%s7082_s7] sm:$0xff] %vm54_vm0, %v2036_v59  ;;  %v2614_v29 = vadd.f32 %v6711_v3, %v6727_v55  ;;  %v1936_v61 = vadd.f32 %v6727_v55, %v1935_v21  ;;  %v2709_v38 = vsel %vm2677_vm10, %v2599_v7, %v2693_v9  ;;  %vm2007_vm11 = vcmp.gt.f32.partialorder %v1941_v41, 0.0 }
 0x22d   :  { %v2023_v1 = vmul.f32 0.01, %v1941_v41  ;;  %v2609_v0 = vadd.f32 %v6727_v55, %v2608_v18  ;;  %v3159_v33 = vadd.f32 %v6717_v58, %v3111_v44  ;;  %v3737_v39 = vadd.f32 %v3721_v42, %v3689_v43  ;;  %4257 = vst.msk [vmem:[%s7082_s7 + $0x80] sm:$0xff] %vm54_vm0, %v2709_v38  ;;  %v2628_v5 = vpop.f32.mrf.mxu1 }
 0x22e   :  { %vm2680_vm12 = vcmp.gt.f32.partialorder %v2614_v29, 0.0  ;;  %v2696_v19 = vmul.f32 0.01, %v2614_v29  ;;  %vm2006_vm13 = vcmp.gt.f32.partialorder %v1936_v61, 0.0  ;;  %v2022_v3 = vmul.f32 0.01, %v1936_v61 }
 0x22f   :  { %v2039_v54 = vsel %vm2007_vm11, %v1941_v41, %v2023_v1  ;;  %vm2679_vm14 = vcmp.gt.f32.partialorder %v2609_v0, 0.0  ;;  %4665 = vmatmul.mubr.msk.f32.gmra.mxu0 %vm54_vm0, %v3159_v33  ;;  %v3785_v13 = vadd.f32 %v3769_v53, %v3737_v39  ;;  %v2695_v23 = vmul.f32 0.01, %v2609_v0 }
 0x230   :  { %2055 = vst.msk [vmem:[%s7082_s7 + $0x18] sm:$0xff] %vm54_vm0, %v2039_v54  ;;  %v2712_v46 = vsel %vm2680_vm12, %v2614_v29, %v2696_v19  ;;  %v1951_v36 = vadd.f32 %v4599_v32, %v6727_v55  ;;  %v2038_v58 = vsel %vm2006_vm13, %v1936_v61, %v2022_v3  ;;  %v2624_v35 = vadd.f32 %v4625_v27, %v6727_v55 }
 0x231   :  { %4260 = vst.msk [vmem:[%s7082_s7 + $0x98] sm:$0xff] %vm54_vm0, %v2712_v46  ;;  %v1946_v21 = vadd.f32 %v6727_v55, %v1945_v30  ;;  %v2619_v20 = vadd.f32 %v6727_v55, %v2618_v12  ;;  %v3833_v52 = vadd.f32 %v6738_v8, %v3785_v13  ;;  %2054 = vst.msk [vmem:[%s7082_s7 + $0x10] sm:$0xff] %vm54_vm0, %v2038_v58 }
 0x232   :  { %v2711_v17 = vsel %vm2679_vm14, %v2609_v0, %v2695_v23  ;;  %vm2009_vm15 = vcmp.gt.f32.partialorder %v1951_v36, 0.0  ;;  %v2025_v34 = vmul.f32 0.01, %v1951_v36  ;;  %vm2682_vm1 = vcmp.gt.f32.partialorder %v2624_v35, 0.0 }
 0x233   :  { %4259 = vst.msk [vmem:[%s7082_s7 + $0x90] sm:$0xff] %vm54_vm0, %v2711_v17  ;;  %v2698_v37 = vmul.f32 0.01, %v2624_v35  ;;  %vm2008_vm2 = vcmp.gt.f32.partialorder %v1946_v21, 0.0  ;;  %v2024_v10 = vmul.f32 0.01, %v1946_v21  ;;  %4691 = vmatmul.mubr.msk.f32.gmra.mxu1 %vm54_vm0, %v3833_v52  ;;  %v1961_v50 = vadd.f32 %v4602_v60, %v6727_v55 }
 0x234   :  { %v2041_v56 = vsel %vm2009_vm15, %v1951_v36, %v2025_v34  ;;  %vm2681_vm3 = vcmp.gt.f32.partialorder %v2619_v20, 0.0  ;;  %v2697_v18 = vmul.f32 0.01, %v2619_v20  ;;  %v2634_v42 = vadd.f32 %v4628_v22, %v6727_v55  ;;  %v4605_v53 = vpop.f32.mrf.mxu0 }
 0x235   :  { %2057 = vst.msk [vmem:[%s7082_s7 + $0x28] sm:$0xff] %vm54_vm0, %v2041_v56  ;;  %v2714_v57 = vsel %vm2682_vm1, %v2624_v35, %v2698_v37  ;;  %v2040_v26 = vsel %vm2008_vm2, %v1946_v21, %v2024_v10  ;;  %v1956_v6 = vadd.f32 %v6727_v55, %v1955_v11  ;;  %vm2011_vm4 = vcmp.gt.f32.partialorder %v1961_v50, 0.0 }
 0x236   :  { %4262 = vst.msk [vmem:[%s7082_s7 + $0xa8] sm:$0xff] %vm54_vm0, %v2714_v57  ;;  %2056 = vst.msk [vmem:[%s7082_s7 + $0x20] sm:$0xff] %vm54_vm0, %v2040_v26  ;;  %v2713_v8 = vsel %vm2681_vm3, %v2619_v20, %v2697_v18  ;;  %v2027_v45 = vmul.f32 0.01, %v1961_v50  ;;  %v2629_v32 = vadd.f32 %v6727_v55, %v2628_v5  ;;  %vm2684_vm5 = vcmp.gt.f32.partialorder %v2634_v42, 0.0  ;;  %v1965_v62 = vpop.f32.mrf.mxu0 }
 0x237   :  { %4261 = vst.msk [vmem:[%s7082_s7 + $0xa0] sm:$0xff] %vm54_vm0, %v2713_v8  ;;  %v2700_v14 = vmul.f32 0.01, %v2634_v42  ;;  %vm2010_vm6 = vcmp.gt.f32.partialorder %v1956_v6, 0.0  ;;  %v2026_v51 = vmul.f32 0.01, %v1956_v6  ;;  %v1971_v2 = vadd.f32 %v4605_v53, %v6727_v55 }
 0x238   :  { %v2043_v40 = vsel %vm2011_vm4, %v1961_v50, %v2027_v45  ;;  %vm2683_vm7 = vcmp.gt.f32.partialorder %v2629_v32, 0.0  ;;  %v2699_v31 = vmul.f32 0.01, %v2629_v32  ;;  %v4631_v25 = vpop.f32.mrf.mxu1  ;;  %v1966_v24 = vadd.f32 %v6727_v55, %v1965_v62 }
 0x239   :  { %2059 = vst.msk [vmem:[%s7082_s7 + $0x38] sm:$0xff] %vm54_vm0, %v2043_v40  ;;  %v2716_v7 = vsel %vm2684_vm5, %v2634_v42, %v2700_v14  ;;  %v2042_v27 = vsel %vm2010_vm6, %v1956_v6, %v2026_v51  ;;  %vm2013_vm8 = vcmp.gt.f32.partialorder %v1971_v2, 0.0  ;;  %v2029_v15 = vmul.f32 0.01, %v1971_v2 }
 0x23a   :  { %4264 = vst.msk [vmem:[%s7082_s7 + $0xb8] sm:$0xff] %vm54_vm0, %v2716_v7  ;;  %2058 = vst.msk [vmem:[%s7082_s7 + $0x30] sm:$0xff] %vm54_vm0, %v2042_v27  ;;  %v2715_v4 = vsel %vm2683_vm7, %v2629_v32, %v2699_v31  ;;  %v2644_v63 = vadd.f32 %v4631_v25, %v6727_v55  ;;  %vm2012_vm9 = vcmp.gt.f32.partialorder %v1966_v24, 0.0  ;;  %v2028_v48 = vmul.f32 0.01, %v1966_v24  ;;  %v2638_v30 = vpop.f32.mrf.mxu1 }
 0x23b   :  { %4263 = vst.msk [vmem:[%s7082_s7 + $0xb0] sm:$0xff] %vm54_vm0, %v2715_v4  ;;  %v2045_v49 = vsel %vm2013_vm8, %v1971_v2, %v2029_v15  ;;  %v2639_v47 = vadd.f32 %v6727_v55, %v2638_v30 }
 0x23c   :  { %vm2686_vm10 = vcmp.gt.f32.partialorder %v2644_v63, 0.0  ;;  %v2702_v16 = vmul.f32 0.01, %v2644_v63  ;;  %2061 = vst.msk [vmem:[%s7082_s7 + $0x48] sm:$0xff] %vm54_vm0, %v2045_v49  ;;  %v2044_v28 = vsel %vm2012_vm9, %v1966_v24, %v2028_v48 }
 0x23d   :  { %2060 = vst.msk [vmem:[%s7082_s7 + $0x40] sm:$0xff] %vm54_vm0, %v2044_v28  ;;  %vm2685_vm11 = vcmp.gt.f32.partialorder %v2639_v47, 0.0  ;;  %v2701_v9 = vmul.f32 0.01, %v2639_v47 }
 0x23e   :  { %v2718_v59 = vsel %vm2686_vm10, %v2644_v63, %v2702_v16 }
 0x23f   :  { %4266 = vst.msk [vmem:[%s7082_s7 + $0xc8] sm:$0xff] %vm54_vm0, %v2718_v59  ;;  %v2717_v41 = vsel %vm2685_vm11, %v2639_v47, %v2701_v9 }
 0x240   :  { %4265 = vst.msk [vmem:[%s7082_s7 + $0xc0] sm:$0xff] %vm54_vm0, %v2717_v41 }
 0x245   :  { %v4608_v12 = vpop.f32.mrf.mxu0 }
 0x246   :  { %v1981_v44 = vadd.f32 %v4608_v12, %v6727_v55 }
 0x247   :  { %v1975_v43 = vpop.f32.mrf.mxu0 }
 0x248   :  { %vm2015_vm12 = vcmp.gt.f32.partialorder %v1981_v44, 0.0  ;;  %v2031_v29 = vmul.f32 0.01, %v1981_v44  ;;  %v1976_v61 = vadd.f32 %v6727_v55, %v1975_v43 }
 0x249   :  { %v4634_v38 = vpop.f32.mrf.mxu1 }
 0x24a   :  { %v2047_v1 = vsel %vm2015_vm12, %v1981_v44, %v2031_v29  ;;  %v2654_v0 = vadd.f32 %v4634_v38, %v6727_v55  ;;  %vm2014_vm13 = vcmp.gt.f32.partialorder %v1976_v61, 0.0  ;;  %v2030_v60 = vmul.f32 0.01, %v1976_v61 }
 0x24b   :  { %2063 = vst.msk [vmem:[%s7082_s7 + $0x58] sm:$0xff] %vm54_vm0, %v2047_v1  ;;  %v2648_v33 = vpop.f32.mrf.mxu1 }
 0x24c   :  { %vm2688_vm14 = vcmp.gt.f32.partialorder %v2654_v0, 0.0  ;;  %v2704_v39 = vmul.f32 0.01, %v2654_v0  ;;  %v2046_v19 = vsel %vm2014_vm13, %v1976_v61, %v2030_v60  ;;  %v2649_v54 = vadd.f32 %v6727_v55, %v2648_v33 }
 0x24d   :  { %2062 = vst.msk [vmem:[%s7082_s7 + $0x50] sm:$0xff] %vm54_vm0, %v2046_v19 }
 0x24e   :  { %v2720_v3 = vsel %vm2688_vm14, %v2654_v0, %v2704_v39  ;;  %vm2687_vm15 = vcmp.gt.f32.partialorder %v2649_v54, 0.0  ;;  %v2703_v22 = vmul.f32 0.01, %v2649_v54 }
 0x24f   :  { %4268 = vst.msk [vmem:[%s7082_s7 + $0xd8] sm:$0xff] %vm54_vm0, %v2720_v3 }
 0x250   :  { %v2719_v13 = vsel %vm2687_vm15, %v2649_v54, %v2703_v22 }
 0x251   :  { %4267 = vst.msk [vmem:[%s7082_s7 + $0xd0] sm:$0xff] %vm54_vm0, %v2719_v13 }
 0x256   :  { %v4611_v46 = vpop.f32.mrf.mxu0 }
 0x257   :  { %v1991_v23 = vadd.f32 %v4611_v46, %v6727_v55 }
 0x258   :  { %v1985_v36 = vpop.f32.mrf.mxu0 }
 0x259   :  { %vm2017_vm1 = vcmp.gt.f32.partialorder %v1991_v23, 0.0  ;;  %v2033_v58 = vmul.f32 0.01, %v1991_v23  ;;  %v1986_v35 = vadd.f32 %v6727_v55, %v1985_v36 }
 0x25a   :  { %v4637_v21 = vpop.f32.mrf.mxu1 }
 0x25b   :  { %v2049_v20 = vsel %vm2017_vm1, %v1991_v23, %v2033_v58  ;;  %v2664_v11 = vadd.f32 %v4637_v21, %v6727_v55  ;;  %vm2016_vm2 = vcmp.gt.f32.partialorder %v1986_v35, 0.0  ;;  %v2032_v52 = vmul.f32 0.01, %v1986_v35 }
 0x25c   :  { %2065 = vst.msk [vmem:[%s7082_s7 + $0x68] sm:$0xff] %vm54_vm0, %v2049_v20  ;;  %v2658_v17 = vpop.f32.mrf.mxu1 }
 0x25d   :  { %vm2690_vm3 = vcmp.gt.f32.partialorder %v2664_v11, 0.0  ;;  %v2706_v34 = vmul.f32 0.01, %v2664_v11  ;;  %v2048_v37 = vsel %vm2016_vm2, %v1986_v35, %v2032_v52  ;;  %v2659_v10 = vadd.f32 %v6727_v55, %v2658_v17 }
 0x25e   :  { %2064 = vst.msk [vmem:[%s7082_s7 + $0x60] sm:$0xff] %vm54_vm0, %v2048_v37 }
 0x25f   :  { %v2722_v5 = vsel %vm2690_vm3, %v2664_v11, %v2706_v34  ;;  %vm2689_vm4 = vcmp.gt.f32.partialorder %v2659_v10, 0.0  ;;  %v2705_v56 = vmul.f32 0.01, %v2659_v10 }
 0x260   :  { %4270 = vst.msk [vmem:[%s7082_s7 + $0xe8] sm:$0xff] %vm54_vm0, %v2722_v5 }
 0x261   :  { %v2721_v18 = vsel %vm2689_vm4, %v2659_v10, %v2705_v56 }
 0x262   :  { %4269 = vst.msk [vmem:[%s7082_s7 + $0xe0] sm:$0xff] %vm54_vm0, %v2721_v18 }
 0x267   :  { %v4614_v50 = vpop.f32.mrf.mxu0 }
 0x268   :  { %v2001_v57 = vadd.f32 %v4614_v50, %v6727_v55 }
 0x269   :  { %v1995_v26 = vpop.f32.mrf.mxu0 }
 0x26a   :  { %vm2019_vm5 = vcmp.gt.f32.partialorder %v2001_v57, 0.0  ;;  %v2035_v42 = vmul.f32 0.01, %v2001_v57  ;;  %v1996_v6 = vadd.f32 %v6727_v55, %v1995_v26 }
 0x26b   :  { %v4640_v53 = vpop.f32.mrf.mxu1 }
 0x26c   :  { %v2051_v8 = vsel %vm2019_vm5, %v2001_v57, %v2035_v42  ;;  %v2674_v45 = vadd.f32 %v4640_v53, %v6727_v55  ;;  %vm2018_vm6 = vcmp.gt.f32.partialorder %v1996_v6, 0.0  ;;  %v2034_v32 = vmul.f32 0.01, %v1996_v6 }
 0x26d   :  { %2067 = vst.msk [vmem:[%s7082_s7 + $0x78] sm:$0xff] %vm54_vm0, %v2051_v8  ;;  %v2668_v14 = vpop.f32.mrf.mxu1 }
 0x26e   :  { %vm2692_vm7 = vcmp.gt.f32.partialorder %v2674_v45, 0.0  ;;  %v2708_v51 = vmul.f32 0.01, %v2674_v45  ;;  %v2050_v62 = vsel %vm2018_vm6, %v1996_v6, %v2034_v32  ;;  %v2669_v40 = vadd.f32 %v6727_v55, %v2668_v14 }
 0x26f   :  { %2066 = vst.msk [vmem:[%s7082_s7 + $0x70] sm:$0xff] %vm54_vm0, %v2050_v62 }
 0x270   :  { %v2724_v31 = vsel %vm2692_vm7, %v2674_v45, %v2708_v51  ;;  %vm2691_vm8 = vcmp.gt.f32.partialorder %v2669_v40, 0.0  ;;  %v2707_v2 = vmul.f32 0.01, %v2669_v40 }
 0x271   :  { %4272 = vst.msk [vmem:[%s7082_s7 + $0xf8] sm:$0xff] %vm54_vm0, %v2724_v31 }
 0x272   :  { %v2723_v7 = vsel %vm2691_vm8, %v2669_v40, %v2707_v2 }
 0x273   :  { %4271 = vst.msk [vmem:[%s7082_s7 + $0xf0] sm:$0xff] %vm54_vm0, %v2723_v7 }
 0x278   :  { %v4645_v27 = vpop.f32.mrf.mxu0 }
 0x279   :  { %v3280_v25 = vadd.f32 %v4645_v27, %v6727_v55 }
 0x27a   :  { %v3274_v24 = vpop.f32.mrf.mxu0 }
 0x27b   :  { %vm3354_vm9 = vcmp.gt.f32.partialorder %v3280_v25, 0.0  ;;  %v3370_v4 = vmul.f32 0.01, %v3280_v25  ;;  %v3275_v15 = vadd.f32 %v6727_v55, %v3274_v24 }
 0x27c   :  { %v4671_v63 = vpop.f32.mrf.mxu1 }
 0x27d   :  { %v3386_v48 = vsel %vm3354_vm9, %v3280_v25, %v3370_v4  ;;  %v3954_v30 = vadd.f32 %v4671_v63, %v6727_v55  ;;  %vm3353_vm10 = vcmp.gt.f32.partialorder %v3275_v15, 0.0  ;;  %v3369_v49 = vmul.f32 0.01, %v3275_v15 }
 0x27e   :  { %4290 = vst.msk [vmem:[%s7082_s7 + $0x108] sm:$0xff] %vm54_vm0, %v3386_v48  ;;  %v3948_v16 = vpop.f32.mrf.mxu1 }
 0x27f   :  { %vm4028_vm11 = vcmp.gt.f32.partialorder %v3954_v30, 0.0  ;;  %v4044_v47 = vmul.f32 0.01, %v3954_v30  ;;  %v3385_v28 = vsel %vm3353_vm10, %v3275_v15, %v3369_v49  ;;  %v3949_v59 = vadd.f32 %v6727_v55, %v3948_v16 }
 0x280   :  { %4289 = vst.msk [vmem:[%s7082_s7 + $0x100] sm:$0xff] %vm54_vm0, %v3385_v28 }
 0x281   :  { %v4060_v9 = vsel %vm4028_vm11, %v3954_v30, %v4044_v47  ;;  %vm4027_vm12 = vcmp.gt.f32.partialorder %v3949_v59, 0.0  ;;  %v4043_v41 = vmul.f32 0.01, %v3949_v59 }
 0x282   :  { %4322 = vst.msk [vmem:[%s7082_s7 + $0x188] sm:$0xff] %vm54_vm0, %v4060_v9 }
 0x283   :  { %v4059_v12 = vsel %vm4027_vm12, %v3949_v59, %v4043_v41 }
 0x284   :  { %4321 = vst.msk [vmem:[%s7082_s7 + $0x180] sm:$0xff] %vm54_vm0, %v4059_v12 }
 0x289   :  { %v4648_v44 = vpop.f32.mrf.mxu0 }
 0x28a   :  { %v3290_v43 = vadd.f32 %v4648_v44, %v6727_v55 }
 0x28b   :  { %v3284_v29 = vpop.f32.mrf.mxu0 }
 0x28c   :  { %vm3356_vm13 = vcmp.gt.f32.partialorder %v3290_v43, 0.0  ;;  %v3372_v61 = vmul.f32 0.01, %v3290_v43  ;;  %v3285_v38 = vadd.f32 %v6727_v55, %v3284_v29 }
 0x28d   :  { %v4674_v1 = vpop.f32.mrf.mxu1 }
 0x28e   :  { %v3388_v0 = vsel %vm3356_vm13, %v3290_v43, %v3372_v61  ;;  %v3964_v60 = vadd.f32 %v4674_v1, %v6727_v55  ;;  %vm3355_vm14 = vcmp.gt.f32.partialorder %v3285_v38, 0.0  ;;  %v3371_v33 = vmul.f32 0.01, %v3285_v38 }
 0x28f   :  { %4292 = vst.msk [vmem:[%s7082_s7 + $0x118] sm:$0xff] %vm54_vm0, %v3388_v0  ;;  %v3958_v39 = vpop.f32.mrf.mxu1 }
 0x290   :  { %vm4030_vm15 = vcmp.gt.f32.partialorder %v3964_v60, 0.0  ;;  %v4046_v19 = vmul.f32 0.01, %v3964_v60  ;;  %v3387_v54 = vsel %vm3355_vm14, %v3285_v38, %v3371_v33  ;;  %v3959_v3 = vadd.f32 %v6727_v55, %v3958_v39 }
 0x291   :  { %4291 = vst.msk [vmem:[%s7082_s7 + $0x110] sm:$0xff] %vm54_vm0, %v3387_v54 }
 0x292   :  { %v4062_v22 = vsel %vm4030_vm15, %v3964_v60, %v4046_v19  ;;  %vm4029_vm1 = vcmp.gt.f32.partialorder %v3959_v3, 0.0  ;;  %v4045_v13 = vmul.f32 0.01, %v3959_v3 }
 0x293   :  { %4324 = vst.msk [vmem:[%s7082_s7 + $0x198] sm:$0xff] %vm54_vm0, %v4062_v22 }
 0x294   :  { %v4061_v46 = vsel %vm4029_vm1, %v3959_v3, %v4045_v13 }
 0x295   :  { %4323 = vst.msk [vmem:[%s7082_s7 + $0x190] sm:$0xff] %vm54_vm0, %v4061_v46 }
 0x29a   :  { %v4651_v23 = vpop.f32.mrf.mxu0 }
 0x29b   :  { %v3300_v36 = vadd.f32 %v4651_v23, %v6727_v55 }
 0x29c   :  { %v3294_v58 = vpop.f32.mrf.mxu0 }
 0x29d   :  { %vm3358_vm2 = vcmp.gt.f32.partialorder %v3300_v36, 0.0  ;;  %v3374_v35 = vmul.f32 0.01, %v3300_v36  ;;  %v3295_v21 = vadd.f32 %v6727_v55, %v3294_v58 }
 0x29e   :  { %v4677_v20 = vpop.f32.mrf.mxu1 }
 0x29f   :  { %v3390_v11 = vsel %vm3358_vm2, %v3300_v36, %v3374_v35  ;;  %v3974_v52 = vadd.f32 %v4677_v20, %v6727_v55  ;;  %vm3357_vm3 = vcmp.gt.f32.partialorder %v3295_v21, 0.0  ;;  %v3373_v17 = vmul.f32 0.01, %v3295_v21 }
 0x2a0   :  { %4294 = vst.msk [vmem:[%s7082_s7 + $0x128] sm:$0xff] %vm54_vm0, %v3390_v11  ;;  %v3968_v34 = vpop.f32.mrf.mxu1 }
 0x2a1   :  { %vm4032_vm4 = vcmp.gt.f32.partialorder %v3974_v52, 0.0  ;;  %v4048_v37 = vmul.f32 0.01, %v3974_v52  ;;  %v3389_v10 = vsel %vm3357_vm3, %v3295_v21, %v3373_v17  ;;  %v3969_v5 = vadd.f32 %v6727_v55, %v3968_v34 }
 0x2a2   :  { %4293 = vst.msk [vmem:[%s7082_s7 + $0x120] sm:$0xff] %vm54_vm0, %v3389_v10 }
 0x2a3   :  { %v4064_v56 = vsel %vm4032_vm4, %v3974_v52, %v4048_v37  ;;  %vm4031_vm5 = vcmp.gt.f32.partialorder %v3969_v5, 0.0  ;;  %v4047_v18 = vmul.f32 0.01, %v3969_v5 }
 0x2a4   :  { %4326 = vst.msk [vmem:[%s7082_s7 + $0x1a8] sm:$0xff] %vm54_vm0, %v4064_v56 }
 0x2a5   :  { %v4063_v50 = vsel %vm4031_vm5, %v3969_v5, %v4047_v18 }
 0x2a6   :  { %4325 = vst.msk [vmem:[%s7082_s7 + $0x1a0] sm:$0xff] %vm54_vm0, %v4063_v50 }
 0x2ab   :  { %v4654_v57 = vpop.f32.mrf.mxu0 }
 0x2ac   :  { %v3310_v26 = vadd.f32 %v4654_v57, %v6727_v55 }
 0x2ad   :  { %v3304_v42 = vpop.f32.mrf.mxu0 }
 0x2ae   :  { %vm3360_vm6 = vcmp.gt.f32.partialorder %v3310_v26, 0.0  ;;  %v3376_v6 = vmul.f32 0.01, %v3310_v26  ;;  %v3305_v53 = vadd.f32 %v6727_v55, %v3304_v42 }
 0x2af   :  { %v4680_v8 = vpop.f32.mrf.mxu1 }
 0x2b0   :  { %v3392_v45 = vsel %vm3360_vm6, %v3310_v26, %v3376_v6  ;;  %v3984_v32 = vadd.f32 %v4680_v8, %v6727_v55  ;;  %vm3359_vm7 = vcmp.gt.f32.partialorder %v3305_v53, 0.0  ;;  %v3375_v14 = vmul.f32 0.01, %v3305_v53 }
 0x2b1   :  { %4296 = vst.msk [vmem:[%s7082_s7 + $0x138] sm:$0xff] %vm54_vm0, %v3392_v45  ;;  %v3978_v51 = vpop.f32.mrf.mxu1 }
 0x2b2   :  { %vm4034_vm8 = vcmp.gt.f32.partialorder %v3984_v32, 0.0  ;;  %v4050_v62 = vmul.f32 0.01, %v3984_v32  ;;  %v3391_v40 = vsel %vm3359_vm7, %v3305_v53, %v3375_v14  ;;  %v3979_v31 = vadd.f32 %v6727_v55, %v3978_v51 }
 0x2b3   :  { %4295 = vst.msk [vmem:[%s7082_s7 + $0x130] sm:$0xff] %vm54_vm0, %v3391_v40 }
 0x2b4   :  { %v4066_v2 = vsel %vm4034_vm8, %v3984_v32, %v4050_v62  ;;  %vm4033_vm9 = vcmp.gt.f32.partialorder %v3979_v31, 0.0  ;;  %v4049_v7 = vmul.f32 0.01, %v3979_v31 }
 0x2b5   :  { %4328 = vst.msk [vmem:[%s7082_s7 + $0x1b8] sm:$0xff] %vm54_vm0, %v4066_v2 }
 0x2b6   :  { %v4065_v27 = vsel %vm4033_vm9, %v3979_v31, %v4049_v7 }
 0x2b7   :  { %4327 = vst.msk [vmem:[%s7082_s7 + $0x1b0] sm:$0xff] %vm54_vm0, %v4065_v27 }
 0x2bc   :  { %v4657_v25 = vpop.f32.mrf.mxu0 }
 0x2bd   :  { %v3320_v24 = vadd.f32 %v4657_v25, %v6727_v55 }
 0x2be   :  { %v3314_v4 = vpop.f32.mrf.mxu0 }
 0x2bf   :  { %vm3362_vm10 = vcmp.gt.f32.partialorder %v3320_v24, 0.0  ;;  %v3378_v15 = vmul.f32 0.01, %v3320_v24  ;;  %v3315_v63 = vadd.f32 %v6727_v55, %v3314_v4 }
 0x2c0   :  { %v4683_v48 = vpop.f32.mrf.mxu1 }
 0x2c1   :  { %v3394_v30 = vsel %vm3362_vm10, %v3320_v24, %v3378_v15  ;;  %v3994_v49 = vadd.f32 %v4683_v48, %v6727_v55  ;;  %vm3361_vm11 = vcmp.gt.f32.partialorder %v3315_v63, 0.0  ;;  %v3377_v16 = vmul.f32 0.01, %v3315_v63 }
 0x2c2   :  { %4298 = vst.msk [vmem:[%s7082_s7 + $0x148] sm:$0xff] %vm54_vm0, %v3394_v30  ;;  %v3988_v47 = vpop.f32.mrf.mxu1 }
 0x2c3   :  { %vm4036_vm12 = vcmp.gt.f32.partialorder %v3994_v49, 0.0  ;;  %v4052_v28 = vmul.f32 0.01, %v3994_v49  ;;  %v3393_v59 = vsel %vm3361_vm11, %v3315_v63, %v3377_v16  ;;  %v3989_v9 = vadd.f32 %v6727_v55, %v3988_v47 }
 0x2c4   :  { %4297 = vst.msk [vmem:[%s7082_s7 + $0x140] sm:$0xff] %vm54_vm0, %v3393_v59 }
 0x2c5   :  { %v4068_v41 = vsel %vm4036_vm12, %v3994_v49, %v4052_v28  ;;  %vm4035_vm13 = vcmp.gt.f32.partialorder %v3989_v9, 0.0  ;;  %v4051_v12 = vmul.f32 0.01, %v3989_v9 }
 0x2c6   :  { %4330 = vst.msk [vmem:[%s7082_s7 + $0x1c8] sm:$0xff] %vm54_vm0, %v4068_v41 }
 0x2c7   :  { %v4067_v44 = vsel %vm4035_vm13, %v3989_v9, %v4051_v12 }
 0x2c8   :  { %4329 = vst.msk [vmem:[%s7082_s7 + $0x1c0] sm:$0xff] %vm54_vm0, %v4067_v44 }
 0x2cd   :  { %v4660_v43 = vpop.f32.mrf.mxu0 }
 0x2ce   :  { %v3330_v29 = vadd.f32 %v4660_v43, %v6727_v55 }
 0x2cf   :  { %v3324_v61 = vpop.f32.mrf.mxu0 }
 0x2d0   :  { %vm3364_vm14 = vcmp.gt.f32.partialorder %v3330_v29, 0.0  ;;  %v3380_v38 = vmul.f32 0.01, %v3330_v29  ;;  %v3325_v1 = vadd.f32 %v6727_v55, %v3324_v61 }
 0x2d1   :  { %v4686_v0 = vpop.f32.mrf.mxu1 }
 0x2d2   :  { %v3396_v60 = vsel %vm3364_vm14, %v3330_v29, %v3380_v38  ;;  %v4004_v33 = vadd.f32 %v4686_v0, %v6727_v55  ;;  %vm3363_vm15 = vcmp.gt.f32.partialorder %v3325_v1, 0.0  ;;  %v3379_v39 = vmul.f32 0.01, %v3325_v1 }
 0x2d3   :  { %4300 = vst.msk [vmem:[%s7082_s7 + $0x158] sm:$0xff] %vm54_vm0, %v3396_v60  ;;  %v3998_v19 = vpop.f32.mrf.mxu1 }
 0x2d4   :  { %vm4038_vm1 = vcmp.gt.f32.partialorder %v4004_v33, 0.0  ;;  %v4054_v54 = vmul.f32 0.01, %v4004_v33  ;;  %v3395_v3 = vsel %vm3363_vm15, %v3325_v1, %v3379_v39  ;;  %v3999_v22 = vadd.f32 %v6727_v55, %v3998_v19 }
 0x2d5   :  { %4299 = vst.msk [vmem:[%s7082_s7 + $0x150] sm:$0xff] %vm54_vm0, %v3395_v3 }
 0x2d6   :  { %v4070_v13 = vsel %vm4038_vm1, %v4004_v33, %v4054_v54  ;;  %vm4037_vm2 = vcmp.gt.f32.partialorder %v3999_v22, 0.0  ;;  %v4053_v46 = vmul.f32 0.01, %v3999_v22 }
 0x2d7   :  { %4332 = vst.msk [vmem:[%s7082_s7 + $0x1d8] sm:$0xff] %vm54_vm0, %v4070_v13 }
 0x2d8   :  { %v4069_v23 = vsel %vm4037_vm2, %v3999_v22, %v4053_v46 }
 0x2d9   :  { %4331 = vst.msk [vmem:[%s7082_s7 + $0x1d0] sm:$0xff] %vm54_vm0, %v4069_v23 }
 0x2de   :  { %v4663_v36 = vpop.f32.mrf.mxu0 }
 0x2df   :  { %v3340_v58 = vadd.f32 %v4663_v36, %v6727_v55 }
 0x2e0   :  { %v3334_v35 = vpop.f32.mrf.mxu0 }
 0x2e1   :  { %vm3366_vm3 = vcmp.gt.f32.partialorder %v3340_v58, 0.0  ;;  %v3382_v21 = vmul.f32 0.01, %v3340_v58  ;;  %v3335_v20 = vadd.f32 %v6727_v55, %v3334_v35 }
 0x2e2   :  { %v4689_v11 = vpop.f32.mrf.mxu1 }
 0x2e3   :  { %v3398_v52 = vsel %vm3366_vm3, %v3340_v58, %v3382_v21  ;;  %v4014_v17 = vadd.f32 %v4689_v11, %v6727_v55  ;;  %vm3365_vm4 = vcmp.gt.f32.partialorder %v3335_v20, 0.0  ;;  %v3381_v34 = vmul.f32 0.01, %v3335_v20 }
 0x2e4   :  { %4302 = vst.msk [vmem:[%s7082_s7 + $0x168] sm:$0xff] %vm54_vm0, %v3398_v52  ;;  %v4008_v37 = vpop.f32.mrf.mxu1 }
 0x2e5   :  { %vm4040_vm5 = vcmp.gt.f32.partialorder %v4014_v17, 0.0  ;;  %v4056_v10 = vmul.f32 0.01, %v4014_v17  ;;  %v3397_v5 = vsel %vm3365_vm4, %v3335_v20, %v3381_v34  ;;  %v4009_v56 = vadd.f32 %v6727_v55, %v4008_v37 }
 0x2e6   :  { %4301 = vst.msk [vmem:[%s7082_s7 + $0x160] sm:$0xff] %vm54_vm0, %v3397_v5 }
 0x2e7   :  { %v4072_v18 = vsel %vm4040_vm5, %v4014_v17, %v4056_v10  ;;  %vm4039_vm6 = vcmp.gt.f32.partialorder %v4009_v56, 0.0  ;;  %v4055_v50 = vmul.f32 0.01, %v4009_v56 }
 0x2e8   :  { %4334 = vst.msk [vmem:[%s7082_s7 + $0x1e8] sm:$0xff] %vm54_vm0, %v4072_v18 }
 0x2e9   :  { %v4071_v57 = vsel %vm4039_vm6, %v4009_v56, %v4055_v50 }
 0x2ea   :  { %4333 = vst.msk [vmem:[%s7082_s7 + $0x1e0] sm:$0xff] %vm54_vm0, %v4071_v57 }
 0x2ef   :  { %v4666_v26 = vpop.f32.mrf.mxu0 }
 0x2f0   :  { %v3350_v42 = vadd.f32 %v4666_v26, %v6727_v55 }
 0x2f1   :  { %v3344_v6 = vpop.f32.mrf.mxu0 }
 0x2f2   :  { %vm3368_vm7 = vcmp.gt.f32.partialorder %v3350_v42, 0.0  ;;  %v3384_v53 = vmul.f32 0.01, %v3350_v42  ;;  %v3345_v8 = vadd.f32 %v6727_v55, %v3344_v6 }
 0x2f3   :  { %v4692_v45 = vpop.f32.mrf.mxu1 }
 0x2f4   :  { %v3400_v32 = vsel %vm3368_vm7, %v3350_v42, %v3384_v53  ;;  %v4024_v14 = vadd.f32 %v4692_v45, %v6727_v55  ;;  %vm3367_vm8 = vcmp.gt.f32.partialorder %v3345_v8, 0.0  ;;  %v3383_v51 = vmul.f32 0.01, %v3345_v8 }
 0x2f5   :  { %4304 = vst.msk [vmem:[%s7082_s7 + $0x178] sm:$0xff] %vm54_vm0, %v3400_v32  ;;  %v4018_v62 = vpop.f32.mrf.mxu1 }
 0x2f6   :  { %vm4042_vm9 = vcmp.gt.f32.partialorder %v4024_v14, 0.0  ;;  %v4058_v40 = vmul.f32 0.01, %v4024_v14  ;;  %v3399_v31 = vsel %vm3367_vm8, %v3345_v8, %v3383_v51  ;;  %v4019_v2 = vadd.f32 %v6727_v55, %v4018_v62 }
 0x2f7   :  { %4303 = vst.msk [vmem:[%s7082_s7 + $0x170] sm:$0xff] %vm54_vm0, %v3399_v31 }
 0x2f8   :  { %v4074_v7 = vsel %vm4042_vm9, %v4024_v14, %v4058_v40  ;;  %vm4041_vm10 = vcmp.gt.f32.partialorder %v4019_v2, 0.0  ;;  %v4057_v27 = vmul.f32 0.01, %v4019_v2 }
 0x2f9   :  { %4336 = vst.msk [vmem:[%s7082_s7 + $0x1f8] sm:$0xff] %vm54_vm0, %v4074_v7 }
 0x2fa   :  { %v4073_v25 = vsel %vm4041_vm10, %v4019_v2, %v4057_v27 }
 0x2fb   :  { %4335 = vst.msk [vmem:[%s7082_s7 + $0x1f0] sm:$0xff] %vm54_vm0, %v4073_v25 }

</bundles_post_ra>
